<compile_context>
chip_gen: v5e
topology: v5e:2x2
jax: 0.10.0
libtpu: 0.0.40
codegen_flags: <defaults>
</compile_context>

<pallas_src>
import functools

import jax
import jax.numpy as jnp
from jax.experimental import pallas as pl
from jax.experimental.pallas import tpu as pltpu

LANES = 128            # lane-padded channel/feature width
K1P = 32               # conv1 contraction 1*5*5=25 padded to 32
FC1_IN = 16 * LANES    # 4*4 pooled pixels * 128 padded channels


# ----------------------------------------------------------------------------
# Fused Pallas kernel (one image per grid step)
# ----------------------------------------------------------------------------

def cnn_fused_kernel(p1_ref, w1_ref, b1_ref, w2_ref, b2_ref,
                     wf1_ref, bf1_ref, wf2_ref, bf2_ref,
                     o_ref, h1_scr, c2_scr, h2_scr):
    # ---- conv1 (single matmul) + 2x2 maxpool + ReLU -------------------------
    # p1_ref[0]: (576, 32) pool-folded im2col rows, row = j*144 + (ph*12 + pw)
    y = jnp.dot(p1_ref[0], w1_ref[...],
                preferred_element_type=jnp.float32)          # (576, 128)
    m = jnp.maximum(jnp.maximum(y[0:144], y[144:288]),
                    jnp.maximum(y[288:432], y[432:576]))     # max over 2x2 window
    h1 = jnp.maximum(m + b1_ref[...], 0.0)                   # bias once, then ReLU

    # lay h1 out as a (12, 12, C) spatial map for the in-kernel conv2 im2col
    for r in range(12):
        h1_scr[r, :, :] = h1[r * 12:(r + 1) * 12, :]

    # ---- conv2: 25 unrolled taps, each a lane-dense (64,128)@(128,128) ------
    acc = jnp.zeros((64, LANES), jnp.float32)
    for kh in range(5):
        for kw in range(5):
            patch = h1_scr[kh:kh + 8, kw:kw + 8, :].reshape(64, LANES)
            acc = acc + jnp.dot(patch.astype(jnp.bfloat16),
                                w2_ref[kh * 5 + kw],
                                preferred_element_type=jnp.float32)
    # TODO(synk): Dropout2d (after conv2) and F.dropout (after fc1) are the
    # eval-mode identity here; training-mode dropout is not implemented.
    c2_scr[...] = acc + b2_ref[...]                          # (64,128), row = oh*8+ow

    # ---- 2x2 maxpool + ReLU, packed lane-contiguous for fc1 -----------------
    for ph in range(4):
        for pw in range(4):
            r0 = 16 * ph + 2 * pw
            top = c2_scr[r0:r0 + 2, :]          # rows (2ph,   2pw:2pw+2)
            bot = c2_scr[r0 + 8:r0 + 10, :]     # rows (2ph+1, 2pw:2pw+2)
            v = jnp.max(jnp.maximum(top, bot), axis=0, keepdims=True)   # (1,128)
            s = ph * 4 + pw
            h2_scr[:, s * LANES:(s + 1) * LANES] = jnp.maximum(v, 0.0)

    # ---- fc1 + ReLU + (dropout, eval) + fc2 ---------------------------------
    h2 = h2_scr[...].astype(jnp.bfloat16)                    # (1, 2048)
    hfc = jnp.dot(h2, wf1_ref[...],
                  preferred_element_type=jnp.float32) + bf1_ref[...]
    hfc = jnp.maximum(hfc, 0.0).astype(jnp.bfloat16)         # (1, 128)
    out = jnp.dot(hfc, wf2_ref[...],
                  preferred_element_type=jnp.float32) + bf2_ref[...]
    o_ref[0] = out                                           # (1, 128) lane-dense


# ----------------------------------------------------------------------------
# Host-side weight / input preparation (pure indexing + zero padding)
# ----------------------------------------------------------------------------

def _pad_bias(b):
    return jnp.pad(b.astype(jnp.float32), (0, LANES - b.shape[0])).reshape(1, LANES)


def _prep_conv1_w(w1):
    # (10,1,5,5) -> (K=25, Cout=10), pad to (32, 128)
    w = w1.reshape(10, 25).T
    return jnp.pad(w, ((0, K1P - 25), (0, LANES - 10))).astype(jnp.bfloat16)


def _prep_conv2_w(w2):
    # (20,10,5,5) -> (kh*5+kw, Cin, Cout), pad to (25, 128, 128)
    w = w2.transpose(2, 3, 1, 0).reshape(25, 10, 20)
    return jnp.pad(w, ((0, 0), (0, LANES - 10), (0, LANES - 20))).astype(jnp.bfloat16)


def _prep_fc1_w(fw):
    # torch flatten order of the (20,4,4) map is (c, ph, pw); our in-kernel h2
    # row is (ph, pw, c)-major with c padded to 128 -> permute columns to match.
    w = fw.reshape(50, 20, 4, 4).transpose(2, 3, 1, 0)        # (ph, pw, c, n)
    w = jnp.pad(w, ((0, 0), (0, 0), (0, LANES - 20), (0, LANES - 50)))
    return w.reshape(FC1_IN, LANES).astype(jnp.bfloat16)


def _prep_fc2_w(fw):
    num_output = fw.shape[0]
    w = fw.T                                                  # (50, O)
    return jnp.pad(w, ((0, LANES - 50), (0, LANES - num_output))).astype(jnp.bfloat16)


def _conv1_patches(x):
    """x: (B,1,28,28) NCHW -> pool-folded im2col (B, 576, 32) bf16.

    Row order: j*144 + (ph*12 + pw) with j = 2*dh + dw the 2x2-pool offset;
    K order: kh*5 + kw (Cin=1), matching torch conv1.weight.reshape(10, 25)."""
    B = x.shape[0]
    xi = x[:, 0]                                              # (B, 28, 28)
    cols = jnp.stack([xi[:, kh:kh + 24, kw:kw + 24]
                      for kh in range(5) for kw in range(5)], axis=-1)  # (B,24,24,25)
    cols = cols.reshape(B, 12, 2, 12, 2, 25)                  # (B, ph, dh, pw, dw, k)
    cols = cols.transpose(0, 2, 4, 1, 3, 5)                   # (B, dh, dw, ph, pw, k)
    cols = cols.reshape(B, 576, 25)
    cols = jnp.pad(cols, ((0, 0), (0, 0), (0, K1P - 25)))
    return cols.astype(jnp.bfloat16)


# ----------------------------------------------------------------------------
# Full forward pass (eval mode)
# ----------------------------------------------------------------------------

def cnn_forward(x, params, num_output=10):
    B = x.shape[0]
    w1, b1, w2, b2, fc1_w, fc1_b, fc2_w, fc2_b = params

    patches = _conv1_patches(x)                               # (B, 576, 32) bf16
    w1p = _prep_conv1_w(w1)                                   # (32, 128)
    w2p = _prep_conv2_w(w2)                                   # (25, 128, 128)
    wf1 = _prep_fc1_w(fc1_w)                                  # (2048, 128)
    wf2 = _prep_fc2_w(fc2_w)                                  # (128, 128)
    b1p, b2p, bf1p, bf2p = (_pad_bias(b) for b in (b1, b2, fc1_b, fc2_b))

    out = pl.pallas_call(
        cnn_fused_kernel,
        out_shape=jax.ShapeDtypeStruct((B, 1, LANES), jnp.float32),
        grid=(B,),
        in_specs=[
            pl.BlockSpec((1, 576, K1P), lambda b: (b, 0, 0)),       # patches
            pl.BlockSpec((K1P, LANES), lambda b: (0, 0)),           # conv1 w
            pl.BlockSpec((1, LANES), lambda b: (0, 0)),             # conv1 b
            pl.BlockSpec((25, LANES, LANES), lambda b: (0, 0, 0)),  # conv2 w (per tap)
            pl.BlockSpec((1, LANES), lambda b: (0, 0)),             # conv2 b
            pl.BlockSpec((FC1_IN, LANES), lambda b: (0, 0)),        # fc1 w
            pl.BlockSpec((1, LANES), lambda b: (0, 0)),             # fc1 b
            pl.BlockSpec((LANES, LANES), lambda b: (0, 0)),         # fc2 w
            pl.BlockSpec((1, LANES), lambda b: (0, 0)),             # fc2 b
        ],
        out_specs=pl.BlockSpec((1, 1, LANES), lambda b: (b, 0, 0)),
        scratch_shapes=[
            pltpu.VMEM((12, 12, LANES), jnp.float32),   # conv1 output spatial map
            pltpu.VMEM((64, LANES), jnp.float32),       # conv2 pre-pool output
            pltpu.VMEM((1, FC1_IN), jnp.float32),       # flattened fc1 input row
        ],
        compiler_params=pltpu.CompilerParams(dimension_semantics=("parallel",)),
    )(patches, w1p, b1p, w2p, b2p, wf1, bf1p, wf2, bf2p)

    return out.reshape(B, LANES)[:, :num_output]


def init_params(key, num_output=10):
    ks = jax.random.split(key, 8)
    w1 = 0.1 * jax.random.normal(ks[0], (10, 1, 5, 5), jnp.float32)
    b1 = 0.1 * jax.random.normal(ks[1], (10,), jnp.float32)
    w2 = 0.1 * jax.random.normal(ks[2], (20, 10, 5, 5), jnp.float32)
    b2 = 0.1 * jax.random.normal(ks[3], (20,), jnp.float32)
    fc1_w = 0.1 * jax.random.normal(ks[4], (50, 320), jnp.float32)
    fc1_b = 0.1 * jax.random.normal(ks[5], (50,), jnp.float32)
    fc2_w = 0.1 * jax.random.normal(ks[6], (num_output, 50), jnp.float32)
    fc2_b = 0.1 * jax.random.normal(ks[7], (num_output,), jnp.float32)
    return (w1, b1, w2, b2, fc1_w, fc1_b, fc2_w, fc2_b)


if __name__ == "__main__":
    key = jax.random.PRNGKey(0)
    k_x, k_p = jax.random.split(key)
    # MNIST-shaped input: the forward's view(-1, 320) implies 1x28x28 inputs.
    x = jax.random.normal(k_x, (2, 1, 28, 28), jnp.float32)
    params = init_params(k_p, num_output=10)

    fwd = jax.jit(functools.partial(cnn_forward, num_output=10))
    out = jax.block_until_ready(fwd(x, params))
    assert out.shape == (2, 10) and out.dtype == jnp.float32
    print("KERNEL_OK")
</pallas_src>

<mosaic_0001>
module attributes {stable_mosaic.version = 11 : i64} {
  func.func @cnn_fused_kernel(%arg0: i32, %arg1: memref<1x576x32xbf16, #tpu.memory_space<vmem>>, %arg2: memref<32x128xbf16, #tpu.memory_space<vmem>>, %arg3: memref<1x128xf32, #tpu.memory_space<vmem>>, %arg4: memref<25x128x128xbf16, #tpu.memory_space<vmem>>, %arg5: memref<1x128xf32, #tpu.memory_space<vmem>>, %arg6: memref<2048x128xbf16, #tpu.memory_space<vmem>>, %arg7: memref<1x128xf32, #tpu.memory_space<vmem>>, %arg8: memref<128x128xbf16, #tpu.memory_space<vmem>>, %arg9: memref<1x128xf32, #tpu.memory_space<vmem>>, %arg10: memref<1x1x128xf32, #tpu.memory_space<vmem>>, %arg11: memref<12x12x128xf32, #tpu.memory_space<vmem>>, %arg12: memref<64x128xf32, #tpu.memory_space<vmem>>, %arg13: memref<1x2048xf32, #tpu.memory_space<vmem>>) attributes {dimension_semantics = [#tpu.dimension_semantics<parallel>], iteration_bounds = array<i64: 2>, scalar_prefetch = 0 : i64, scratch_operands = 3 : i64, tpu.core_type = #tpu.core_type<tc>, window_params = [{transform_indices = @transform_0, window_bounds = array<i64: 1, 576, 32>}, {pipeline_mode = #tpu.pipeline_mode<synchronous>, transform_indices = @transform_1, window_bounds = array<i64: 32, 128>}, {pipeline_mode = #tpu.pipeline_mode<synchronous>, transform_indices = @transform_2, window_bounds = array<i64: 1, 128>}, {pipeline_mode = #tpu.pipeline_mode<synchronous>, transform_indices = @transform_3, window_bounds = array<i64: 25, 128, 128>}, {pipeline_mode = #tpu.pipeline_mode<synchronous>, transform_indices = @transform_4, window_bounds = array<i64: 1, 128>}, {pipeline_mode = #tpu.pipeline_mode<synchronous>, transform_indices = @transform_5, window_bounds = array<i64: 2048, 128>}, {pipeline_mode = #tpu.pipeline_mode<synchronous>, transform_indices = @transform_6, window_bounds = array<i64: 1, 128>}, {pipeline_mode = #tpu.pipeline_mode<synchronous>, transform_indices = @transform_7, window_bounds = array<i64: 128, 128>}, {pipeline_mode = #tpu.pipeline_mode<synchronous>, transform_indices = @transform_8, window_bounds = array<i64: 1, 128>}, {transform_indices = @transform_9, window_bounds = array<i64: 1, 1, 128>}]} {
    %c0 = arith.constant 0 : index
    %c0_0 = arith.constant 0 : index
    %c0_1 = arith.constant 0 : index
    %0 = vector.load %arg1[%c0, %c0_0, %c0_1] : memref<1x576x32xbf16, #tpu.memory_space<vmem>>, vector<1x576x32xbf16>
    %1 = vector.shape_cast %0 : vector<1x576x32xbf16> to vector<576x32xbf16>
    %c0_2 = arith.constant 0 : index
    %c0_3 = arith.constant 0 : index
    %2 = vector.load %arg2[%c0_2, %c0_3] : memref<32x128xbf16, #tpu.memory_space<vmem>>, vector<32x128xbf16>
    %cst = arith.constant dense<0.000000e+00> : vector<576x128xf32>
    %3 = tpu.matmul %1, %2, %cst {dimension_numbers = #tpu.dot_dimension_numbers<[1], [0], [0], [1], [0, 0, 1, 1], [], []>} : vector<576x32xbf16>, vector<32x128xbf16>, vector<576x128xf32> -> vector<576x128xf32>
    %4 = vector.extract_strided_slice %3 {offsets = [0, 0], sizes = [144, 128], strides = [1, 1]} : vector<576x128xf32> to vector<144x128xf32>
    %5 = vector.extract_strided_slice %3 {offsets = [144, 0], sizes = [144, 128], strides = [1, 1]} : vector<576x128xf32> to vector<144x128xf32>
    %6 = arith.maximumf %4, %5 : vector<144x128xf32>
    %7 = vector.extract_strided_slice %3 {offsets = [288, 0], sizes = [144, 128], strides = [1, 1]} : vector<576x128xf32> to vector<144x128xf32>
    %8 = vector.extract_strided_slice %3 {offsets = [432, 0], sizes = [144, 128], strides = [1, 1]} : vector<576x128xf32> to vector<144x128xf32>
    %9 = arith.maximumf %7, %8 : vector<144x128xf32>
    %10 = arith.maximumf %6, %9 : vector<144x128xf32>
    %c0_4 = arith.constant 0 : index
    %c0_5 = arith.constant 0 : index
    %11 = vector.load %arg3[%c0_4, %c0_5] : memref<1x128xf32, #tpu.memory_space<vmem>>, vector<1x128xf32>
    %12 = vector.broadcast %11 : vector<1x128xf32> to vector<144x128xf32>
    %13 = arith.addf %10, %12 : vector<144x128xf32>
    %cst_6 = arith.constant 0.000000e+00 : f32
    %14 = vector.broadcast %cst_6 : f32 to vector<144x128xf32>
    %15 = arith.maximumf %13, %14 : vector<144x128xf32>
    %16 = vector.extract_strided_slice %15 {offsets = [0, 0], sizes = [12, 128], strides = [1, 1]} : vector<144x128xf32> to vector<12x128xf32>
    %c0_7 = arith.constant 0 : index
    %c0_8 = arith.constant 0 : index
    %c0_9 = arith.constant 0 : index
    %17 = vector.load %arg11[%c0_7, %c0_8, %c0_9] : memref<12x12x128xf32, #tpu.memory_space<vmem>>, vector<1x12x128xf32>
    %18 = vector.shape_cast %17 : vector<1x12x128xf32> to vector<12x128xf32>
    %19 = vector.shape_cast %16 : vector<12x128xf32> to vector<1x12x128xf32>
    tpu.vector_store %arg11[%c0_7, %c0_8, %c0_9], %19 {strides = array<i32>} : memref<12x12x128xf32, #tpu.memory_space<vmem>>, vector<1x12x128xf32>,
    %20 = vector.extract_strided_slice %15 {offsets = [12, 0], sizes = [12, 128], strides = [1, 1]} : vector<144x128xf32> to vector<12x128xf32>
    %c1 = arith.constant 1 : index
    %c0_10 = arith.constant 0 : index
    %c0_11 = arith.constant 0 : index
    %21 = vector.load %arg11[%c1, %c0_10, %c0_11] : memref<12x12x128xf32, #tpu.memory_space<vmem>>, vector<1x12x128xf32>
    %22 = vector.shape_cast %21 : vector<1x12x128xf32> to vector<12x128xf32>
    %23 = vector.shape_cast %20 : vector<12x128xf32> to vector<1x12x128xf32>
    tpu.vector_store %arg11[%c1, %c0_10, %c0_11], %23 {strides = array<i32>} : memref<12x12x128xf32, #tpu.memory_space<vmem>>, vector<1x12x128xf32>,
    %24 = vector.extract_strided_slice %15 {offsets = [24, 0], sizes = [12, 128], strides = [1, 1]} : vector<144x128xf32> to vector<12x128xf32>
    %c2 = arith.constant 2 : index
    %c0_12 = arith.constant 0 : index
    %c0_13 = arith.constant 0 : index
    %25 = vector.load %arg11[%c2, %c0_12, %c0_13] : memref<12x12x128xf32, #tpu.memory_space<vmem>>, vector<1x12x128xf32>
    %26 = vector.shape_cast %25 : vector<1x12x128xf32> to vector<12x128xf32>
    %27 = vector.shape_cast %24 : vector<12x128xf32> to vector<1x12x128xf32>
    tpu.vector_store %arg11[%c2, %c0_12, %c0_13], %27 {strides = array<i32>} : memref<12x12x128xf32, #tpu.memory_space<vmem>>, vector<1x12x128xf32>,
    %28 = vector.extract_strided_slice %15 {offsets = [36, 0], sizes = [12, 128], strides = [1, 1]} : vector<144x128xf32> to vector<12x128xf32>
    %c3 = arith.constant 3 : index
    %c0_14 = arith.constant 0 : index
    %c0_15 = arith.constant 0 : index
    %29 = vector.load %arg11[%c3, %c0_14, %c0_15] : memref<12x12x128xf32, #tpu.memory_space<vmem>>, vector<1x12x128xf32>
    %30 = vector.shape_cast %29 : vector<1x12x128xf32> to vector<12x128xf32>
    %31 = vector.shape_cast %28 : vector<12x128xf32> to vector<1x12x128xf32>
    tpu.vector_store %arg11[%c3, %c0_14, %c0_15], %31 {strides = array<i32>} : memref<12x12x128xf32, #tpu.memory_space<vmem>>, vector<1x12x128xf32>,
    %32 = vector.extract_strided_slice %15 {offsets = [48, 0], sizes = [12, 128], strides = [1, 1]} : vector<144x128xf32> to vector<12x128xf32>
    %c4 = arith.constant 4 : index
    %c0_16 = arith.constant 0 : index
    %c0_17 = arith.constant 0 : index
    %33 = vector.load %arg11[%c4, %c0_16, %c0_17] : memref<12x12x128xf32, #tpu.memory_space<vmem>>, vector<1x12x128xf32>
    %34 = vector.shape_cast %33 : vector<1x12x128xf32> to vector<12x128xf32>
    %35 = vector.shape_cast %32 : vector<12x128xf32> to vector<1x12x128xf32>
    tpu.vector_store %arg11[%c4, %c0_16, %c0_17], %35 {strides = array<i32>} : memref<12x12x128xf32, #tpu.memory_space<vmem>>, vector<1x12x128xf32>,
    %36 = vector.extract_strided_slice %15 {offsets = [60, 0], sizes = [12, 128], strides = [1, 1]} : vector<144x128xf32> to vector<12x128xf32>
    %c5 = arith.constant 5 : index
    %c0_18 = arith.constant 0 : index
    %c0_19 = arith.constant 0 : index
    %37 = vector.load %arg11[%c5, %c0_18, %c0_19] : memref<12x12x128xf32, #tpu.memory_space<vmem>>, vector<1x12x128xf32>
    %38 = vector.shape_cast %37 : vector<1x12x128xf32> to vector<12x128xf32>
    %39 = vector.shape_cast %36 : vector<12x128xf32> to vector<1x12x128xf32>
    tpu.vector_store %arg11[%c5, %c0_18, %c0_19], %39 {strides = array<i32>} : memref<12x12x128xf32, #tpu.memory_space<vmem>>, vector<1x12x128xf32>,
    %40 = vector.extract_strided_slice %15 {offsets = [72, 0], sizes = [12, 128], strides = [1, 1]} : vector<144x128xf32> to vector<12x128xf32>
    %c6 = arith.constant 6 : index
    %c0_20 = arith.constant 0 : index
    %c0_21 = arith.constant 0 : index
    %41 = vector.load %arg11[%c6, %c0_20, %c0_21] : memref<12x12x128xf32, #tpu.memory_space<vmem>>, vector<1x12x128xf32>
    %42 = vector.shape_cast %41 : vector<1x12x128xf32> to vector<12x128xf32>
    %43 = vector.shape_cast %40 : vector<12x128xf32> to vector<1x12x128xf32>
    tpu.vector_store %arg11[%c6, %c0_20, %c0_21], %43 {strides = array<i32>} : memref<12x12x128xf32, #tpu.memory_space<vmem>>, vector<1x12x128xf32>,
    %44 = vector.extract_strided_slice %15 {offsets = [84, 0], sizes = [12, 128], strides = [1, 1]} : vector<144x128xf32> to vector<12x128xf32>
    %c7 = arith.constant 7 : index
    %c0_22 = arith.constant 0 : index
    %c0_23 = arith.constant 0 : index
    %45 = vector.load %arg11[%c7, %c0_22, %c0_23] : memref<12x12x128xf32, #tpu.memory_space<vmem>>, vector<1x12x128xf32>
    %46 = vector.shape_cast %45 : vector<1x12x128xf32> to vector<12x128xf32>
    %47 = vector.shape_cast %44 : vector<12x128xf32> to vector<1x12x128xf32>
    tpu.vector_store %arg11[%c7, %c0_22, %c0_23], %47 {strides = array<i32>} : memref<12x12x128xf32, #tpu.memory_space<vmem>>, vector<1x12x128xf32>,
    %48 = vector.extract_strided_slice %15 {offsets = [96, 0], sizes = [12, 128], strides = [1, 1]} : vector<144x128xf32> to vector<12x128xf32>
    %c8 = arith.constant 8 : index
    %c0_24 = arith.constant 0 : index
    %c0_25 = arith.constant 0 : index
    %49 = vector.load %arg11[%c8, %c0_24, %c0_25] : memref<12x12x128xf32, #tpu.memory_space<vmem>>, vector<1x12x128xf32>
    %50 = vector.shape_cast %49 : vector<1x12x128xf32> to vector<12x128xf32>
    %51 = vector.shape_cast %48 : vector<12x128xf32> to vector<1x12x128xf32>
    tpu.vector_store %arg11[%c8, %c0_24, %c0_25], %51 {strides = array<i32>} : memref<12x12x128xf32, #tpu.memory_space<vmem>>, vector<1x12x128xf32>,
    %52 = vector.extract_strided_slice %15 {offsets = [108, 0], sizes = [12, 128], strides = [1, 1]} : vector<144x128xf32> to vector<12x128xf32>
    %c9 = arith.constant 9 : index
    %c0_26 = arith.constant 0 : index
    %c0_27 = arith.constant 0 : index
    %53 = vector.load %arg11[%c9, %c0_26, %c0_27] : memref<12x12x128xf32, #tpu.memory_space<vmem>>, vector<1x12x128xf32>
    %54 = vector.shape_cast %53 : vector<1x12x128xf32> to vector<12x128xf32>
    %55 = vector.shape_cast %52 : vector<12x128xf32> to vector<1x12x128xf32>
    tpu.vector_store %arg11[%c9, %c0_26, %c0_27], %55 {strides = array<i32>} : memref<12x12x128xf32, #tpu.memory_space<vmem>>, vector<1x12x128xf32>,
    %56 = vector.extract_strided_slice %15 {offsets = [120, 0], sizes = [12, 128], strides = [1, 1]} : vector<144x128xf32> to vector<12x128xf32>
    %c10 = arith.constant 10 : index
    %c0_28 = arith.constant 0 : index
    %c0_29 = arith.constant 0 : index
    %57 = vector.load %arg11[%c10, %c0_28, %c0_29] : memref<12x12x128xf32, #tpu.memory_space<vmem>>, vector<1x12x128xf32>
    %58 = vector.shape_cast %57 : vector<1x12x128xf32> to vector<12x128xf32>
    %59 = vector.shape_cast %56 : vector<12x128xf32> to vector<1x12x128xf32>
    tpu.vector_store %arg11[%c10, %c0_28, %c0_29], %59 {strides = array<i32>} : memref<12x12x128xf32, #tpu.memory_space<vmem>>, vector<1x12x128xf32>,
    %60 = vector.extract_strided_slice %15 {offsets = [132, 0], sizes = [12, 128], strides = [1, 1]} : vector<144x128xf32> to vector<12x128xf32>
    %c11 = arith.constant 11 : index
    %c0_30 = arith.constant 0 : index
    %c0_31 = arith.constant 0 : index
    %61 = vector.load %arg11[%c11, %c0_30, %c0_31] : memref<12x12x128xf32, #tpu.memory_space<vmem>>, vector<1x12x128xf32>
    %62 = vector.shape_cast %61 : vector<1x12x128xf32> to vector<12x128xf32>
    %63 = vector.shape_cast %60 : vector<12x128xf32> to vector<1x12x128xf32>
    tpu.vector_store %arg11[%c11, %c0_30, %c0_31], %63 {strides = array<i32>} : memref<12x12x128xf32, #tpu.memory_space<vmem>>, vector<1x12x128xf32>,
    %cst_32 = arith.constant 0.000000e+00 : f32
    %64 = vector.broadcast %cst_32 : f32 to vector<64x128xf32>
    %c0_33 = arith.constant 0 : index
    %c0_34 = arith.constant 0 : index
    %c0_35 = arith.constant 0 : index
    %65 = vector.load %arg11[%c0_33, %c0_34, %c0_35] : memref<12x12x128xf32, #tpu.memory_space<vmem>>, vector<8x8x128xf32>
    %66 = vector.shape_cast %65 : vector<8x8x128xf32> to vector<64x128xf32>
    %67 = arith.truncf %66 : vector<64x128xf32> to vector<64x128xbf16>
    %c0_36 = arith.constant 0 : index
    %c0_37 = arith.constant 0 : index
    %c0_38 = arith.constant 0 : index
    %68 = vector.load %arg4[%c0_36, %c0_37, %c0_38] : memref<25x128x128xbf16, #tpu.memory_space<vmem>>, vector<1x128x128xbf16>
    %69 = vector.shape_cast %68 : vector<1x128x128xbf16> to vector<128x128xbf16>
    %cst_39 = arith.constant dense<0.000000e+00> : vector<64x128xf32>
    %70 = tpu.matmul %67, %69, %cst_39 {dimension_numbers = #tpu.dot_dimension_numbers<[1], [0], [0], [1], [0, 0, 1, 1], [], []>} : vector<64x128xbf16>, vector<128x128xbf16>, vector<64x128xf32> -> vector<64x128xf32>
    %71 = arith.addf %64, %70 : vector<64x128xf32>
    %c0_40 = arith.constant 0 : index
    %c1_41 = arith.constant 1 : index
    %c0_42 = arith.constant 0 : index
    %72 = vector.load %arg11[%c0_40, %c1_41, %c0_42] : memref<12x12x128xf32, #tpu.memory_space<vmem>>, vector<8x8x128xf32>
    %73 = vector.shape_cast %72 : vector<8x8x128xf32> to vector<64x128xf32>
    %74 = arith.truncf %73 : vector<64x128xf32> to vector<64x128xbf16>
    %c1_43 = arith.constant 1 : index
    %c0_44 = arith.constant 0 : index
    %c0_45 = arith.constant 0 : index
    %75 = vector.load %arg4[%c1_43, %c0_44, %c0_45] : memref<25x128x128xbf16, #tpu.memory_space<vmem>>, vector<1x128x128xbf16>
    %76 = vector.shape_cast %75 : vector<1x128x128xbf16> to vector<128x128xbf16>
    %cst_46 = arith.constant dense<0.000000e+00> : vector<64x128xf32>
    %77 = tpu.matmul %74, %76, %cst_46 {dimension_numbers = #tpu.dot_dimension_numbers<[1], [0], [0], [1], [0, 0, 1, 1], [], []>} : vector<64x128xbf16>, vector<128x128xbf16>, vector<64x128xf32> -> vector<64x128xf32>
    %78 = arith.addf %71, %77 : vector<64x128xf32>
    %c0_47 = arith.constant 0 : index
    %c2_48 = arith.constant 2 : index
    %c0_49 = arith.constant 0 : index
    %79 = vector.load %arg11[%c0_47, %c2_48, %c0_49] : memref<12x12x128xf32, #tpu.memory_space<vmem>>, vector<8x8x128xf32>
    %80 = vector.shape_cast %79 : vector<8x8x128xf32> to vector<64x128xf32>
    %81 = arith.truncf %80 : vector<64x128xf32> to vector<64x128xbf16>
    %c2_50 = arith.constant 2 : index
    %c0_51 = arith.constant 0 : index
    %c0_52 = arith.constant 0 : index
    %82 = vector.load %arg4[%c2_50, %c0_51, %c0_52] : memref<25x128x128xbf16, #tpu.memory_space<vmem>>, vector<1x128x128xbf16>
    %83 = vector.shape_cast %82 : vector<1x128x128xbf16> to vector<128x128xbf16>
    %cst_53 = arith.constant dense<0.000000e+00> : vector<64x128xf32>
    %84 = tpu.matmul %81, %83, %cst_53 {dimension_numbers = #tpu.dot_dimension_numbers<[1], [0], [0], [1], [0, 0, 1, 1], [], []>} : vector<64x128xbf16>, vector<128x128xbf16>, vector<64x128xf32> -> vector<64x128xf32>
    %85 = arith.addf %78, %84 : vector<64x128xf32>
    %c0_54 = arith.constant 0 : index
    %c3_55 = arith.constant 3 : index
    %c0_56 = arith.constant 0 : index
    %86 = vector.load %arg11[%c0_54, %c3_55, %c0_56] : memref<12x12x128xf32, #tpu.memory_space<vmem>>, vector<8x8x128xf32>
    %87 = vector.shape_cast %86 : vector<8x8x128xf32> to vector<64x128xf32>
    %88 = arith.truncf %87 : vector<64x128xf32> to vector<64x128xbf16>
    %c3_57 = arith.constant 3 : index
    %c0_58 = arith.constant 0 : index
    %c0_59 = arith.constant 0 : index
    %89 = vector.load %arg4[%c3_57, %c0_58, %c0_59] : memref<25x128x128xbf16, #tpu.memory_space<vmem>>, vector<1x128x128xbf16>
    %90 = vector.shape_cast %89 : vector<1x128x128xbf16> to vector<128x128xbf16>
    %cst_60 = arith.constant dense<0.000000e+00> : vector<64x128xf32>
    %91 = tpu.matmul %88, %90, %cst_60 {dimension_numbers = #tpu.dot_dimension_numbers<[1], [0], [0], [1], [0, 0, 1, 1], [], []>} : vector<64x128xbf16>, vector<128x128xbf16>, vector<64x128xf32> -> vector<64x128xf32>
    %92 = arith.addf %85, %91 : vector<64x128xf32>
    %c0_61 = arith.constant 0 : index
    %c4_62 = arith.constant 4 : index
    %c0_63 = arith.constant 0 : index
    %93 = vector.load %arg11[%c0_61, %c4_62, %c0_63] : memref<12x12x128xf32, #tpu.memory_space<vmem>>, vector<8x8x128xf32>
    %94 = vector.shape_cast %93 : vector<8x8x128xf32> to vector<64x128xf32>
    %95 = arith.truncf %94 : vector<64x128xf32> to vector<64x128xbf16>
    %c4_64 = arith.constant 4 : index
    %c0_65 = arith.constant 0 : index
    %c0_66 = arith.constant 0 : index
    %96 = vector.load %arg4[%c4_64, %c0_65, %c0_66] : memref<25x128x128xbf16, #tpu.memory_space<vmem>>, vector<1x128x128xbf16>
    %97 = vector.shape_cast %96 : vector<1x128x128xbf16> to vector<128x128xbf16>
    %cst_67 = arith.constant dense<0.000000e+00> : vector<64x128xf32>
    %98 = tpu.matmul %95, %97, %cst_67 {dimension_numbers = #tpu.dot_dimension_numbers<[1], [0], [0], [1], [0, 0, 1, 1], [], []>} : vector<64x128xbf16>, vector<128x128xbf16>, vector<64x128xf32> -> vector<64x128xf32>
    %99 = arith.addf %92, %98 : vector<64x128xf32>
    %c1_68 = arith.constant 1 : index
    %c0_69 = arith.constant 0 : index
    %c0_70 = arith.constant 0 : index
    %100 = vector.load %arg11[%c1_68, %c0_69, %c0_70] : memref<12x12x128xf32, #tpu.memory_space<vmem>>, vector<8x8x128xf32>
    %101 = vector.shape_cast %100 : vector<8x8x128xf32> to vector<64x128xf32>
    %102 = arith.truncf %101 : vector<64x128xf32> to vector<64x128xbf16>
    %c5_71 = arith.constant 5 : index
    %c0_72 = arith.constant 0 : index
    %c0_73 = arith.constant 0 : index
    %103 = vector.load %arg4[%c5_71, %c0_72, %c0_73] : memref<25x128x128xbf16, #tpu.memory_space<vmem>>, vector<1x128x128xbf16>
    %104 = vector.shape_cast %103 : vector<1x128x128xbf16> to vector<128x128xbf16>
    %cst_74 = arith.constant dense<0.000000e+00> : vector<64x128xf32>
    %105 = tpu.matmul %102, %104, %cst_74 {dimension_numbers = #tpu.dot_dimension_numbers<[1], [0], [0], [1], [0, 0, 1, 1], [], []>} : vector<64x128xbf16>, vector<128x128xbf16>, vector<64x128xf32> -> vector<64x128xf32>
    %106 = arith.addf %99, %105 : vector<64x128xf32>
    %c1_75 = arith.constant 1 : index
    %c1_76 = arith.constant 1 : index
    %c0_77 = arith.constant 0 : index
    %107 = vector.load %arg11[%c1_75, %c1_76, %c0_77] : memref<12x12x128xf32, #tpu.memory_space<vmem>>, vector<8x8x128xf32>
    %108 = vector.shape_cast %107 : vector<8x8x128xf32> to vector<64x128xf32>
    %109 = arith.truncf %108 : vector<64x128xf32> to vector<64x128xbf16>
    %c6_78 = arith.constant 6 : index
    %c0_79 = arith.constant 0 : index
    %c0_80 = arith.constant 0 : index
    %110 = vector.load %arg4[%c6_78, %c0_79, %c0_80] : memref<25x128x128xbf16, #tpu.memory_space<vmem>>, vector<1x128x128xbf16>
    %111 = vector.shape_cast %110 : vector<1x128x128xbf16> to vector<128x128xbf16>
    %cst_81 = arith.constant dense<0.000000e+00> : vector<64x128xf32>
    %112 = tpu.matmul %109, %111, %cst_81 {dimension_numbers = #tpu.dot_dimension_numbers<[1], [0], [0], [1], [0, 0, 1, 1], [], []>} : vector<64x128xbf16>, vector<128x128xbf16>, vector<64x128xf32> -> vector<64x128xf32>
    %113 = arith.addf %106, %112 : vector<64x128xf32>
    %c1_82 = arith.constant 1 : index
    %c2_83 = arith.constant 2 : index
    %c0_84 = arith.constant 0 : index
    %114 = vector.load %arg11[%c1_82, %c2_83, %c0_84] : memref<12x12x128xf32, #tpu.memory_space<vmem>>, vector<8x8x128xf32>
    %115 = vector.shape_cast %114 : vector<8x8x128xf32> to vector<64x128xf32>
    %116 = arith.truncf %115 : vector<64x128xf32> to vector<64x128xbf16>
    %c7_85 = arith.constant 7 : index
    %c0_86 = arith.constant 0 : index
    %c0_87 = arith.constant 0 : index
    %117 = vector.load %arg4[%c7_85, %c0_86, %c0_87] : memref<25x128x128xbf16, #tpu.memory_space<vmem>>, vector<1x128x128xbf16>
    %118 = vector.shape_cast %117 : vector<1x128x128xbf16> to vector<128x128xbf16>
    %cst_88 = arith.constant dense<0.000000e+00> : vector<64x128xf32>
    %119 = tpu.matmul %116, %118, %cst_88 {dimension_numbers = #tpu.dot_dimension_numbers<[1], [0], [0], [1], [0, 0, 1, 1], [], []>} : vector<64x128xbf16>, vector<128x128xbf16>, vector<64x128xf32> -> vector<64x128xf32>
    %120 = arith.addf %113, %119 : vector<64x128xf32>
    %c1_89 = arith.constant 1 : index
    %c3_90 = arith.constant 3 : index
    %c0_91 = arith.constant 0 : index
    %121 = vector.load %arg11[%c1_89, %c3_90, %c0_91] : memref<12x12x128xf32, #tpu.memory_space<vmem>>, vector<8x8x128xf32>
    %122 = vector.shape_cast %121 : vector<8x8x128xf32> to vector<64x128xf32>
    %123 = arith.truncf %122 : vector<64x128xf32> to vector<64x128xbf16>
    %c8_92 = arith.constant 8 : index
    %c0_93 = arith.constant 0 : index
    %c0_94 = arith.constant 0 : index
    %124 = vector.load %arg4[%c8_92, %c0_93, %c0_94] : memref<25x128x128xbf16, #tpu.memory_space<vmem>>, vector<1x128x128xbf16>
    %125 = vector.shape_cast %124 : vector<1x128x128xbf16> to vector<128x128xbf16>
    %cst_95 = arith.constant dense<0.000000e+00> : vector<64x128xf32>
    %126 = tpu.matmul %123, %125, %cst_95 {dimension_numbers = #tpu.dot_dimension_numbers<[1], [0], [0], [1], [0, 0, 1, 1], [], []>} : vector<64x128xbf16>, vector<128x128xbf16>, vector<64x128xf32> -> vector<64x128xf32>
    %127 = arith.addf %120, %126 : vector<64x128xf32>
    %c1_96 = arith.constant 1 : index
    %c4_97 = arith.constant 4 : index
    %c0_98 = arith.constant 0 : index
    %128 = vector.load %arg11[%c1_96, %c4_97, %c0_98] : memref<12x12x128xf32, #tpu.memory_space<vmem>>, vector<8x8x128xf32>
    %129 = vector.shape_cast %128 : vector<8x8x128xf32> to vector<64x128xf32>
    %130 = arith.truncf %129 : vector<64x128xf32> to vector<64x128xbf16>
    %c9_99 = arith.constant 9 : index
    %c0_100 = arith.constant 0 : index
    %c0_101 = arith.constant 0 : index
    %131 = vector.load %arg4[%c9_99, %c0_100, %c0_101] : memref<25x128x128xbf16, #tpu.memory_space<vmem>>, vector<1x128x128xbf16>
    %132 = vector.shape_cast %131 : vector<1x128x128xbf16> to vector<128x128xbf16>
    %cst_102 = arith.constant dense<0.000000e+00> : vector<64x128xf32>
    %133 = tpu.matmul %130, %132, %cst_102 {dimension_numbers = #tpu.dot_dimension_numbers<[1], [0], [0], [1], [0, 0, 1, 1], [], []>} : vector<64x128xbf16>, vector<128x128xbf16>, vector<64x128xf32> -> vector<64x128xf32>
    %134 = arith.addf %127, %133 : vector<64x128xf32>
    %c2_103 = arith.constant 2 : index
    %c0_104 = arith.constant 0 : index
    %c0_105 = arith.constant 0 : index
    %135 = vector.load %arg11[%c2_103, %c0_104, %c0_105] : memref<12x12x128xf32, #tpu.memory_space<vmem>>, vector<8x8x128xf32>
    %136 = vector.shape_cast %135 : vector<8x8x128xf32> to vector<64x128xf32>
    %137 = arith.truncf %136 : vector<64x128xf32> to vector<64x128xbf16>
    %c10_106 = arith.constant 10 : index
    %c0_107 = arith.constant 0 : index
    %c0_108 = arith.constant 0 : index
    %138 = vector.load %arg4[%c10_106, %c0_107, %c0_108] : memref<25x128x128xbf16, #tpu.memory_space<vmem>>, vector<1x128x128xbf16>
    %139 = vector.shape_cast %138 : vector<1x128x128xbf16> to vector<128x128xbf16>
    %cst_109 = arith.constant dense<0.000000e+00> : vector<64x128xf32>
    %140 = tpu.matmul %137, %139, %cst_109 {dimension_numbers = #tpu.dot_dimension_numbers<[1], [0], [0], [1], [0, 0, 1, 1], [], []>} : vector<64x128xbf16>, vector<128x128xbf16>, vector<64x128xf32> -> vector<64x128xf32>
    %141 = arith.addf %134, %140 : vector<64x128xf32>
    %c2_110 = arith.constant 2 : index
    %c1_111 = arith.constant 1 : index
    %c0_112 = arith.constant 0 : index
    %142 = vector.load %arg11[%c2_110, %c1_111, %c0_112] : memref<12x12x128xf32, #tpu.memory_space<vmem>>, vector<8x8x128xf32>
    %143 = vector.shape_cast %142 : vector<8x8x128xf32> to vector<64x128xf32>
    %144 = arith.truncf %143 : vector<64x128xf32> to vector<64x128xbf16>
    %c11_113 = arith.constant 11 : index
    %c0_114 = arith.constant 0 : index
    %c0_115 = arith.constant 0 : index
    %145 = vector.load %arg4[%c11_113, %c0_114, %c0_115] : memref<25x128x128xbf16, #tpu.memory_space<vmem>>, vector<1x128x128xbf16>
    %146 = vector.shape_cast %145 : vector<1x128x128xbf16> to vector<128x128xbf16>
    %cst_116 = arith.constant dense<0.000000e+00> : vector<64x128xf32>
    %147 = tpu.matmul %144, %146, %cst_116 {dimension_numbers = #tpu.dot_dimension_numbers<[1], [0], [0], [1], [0, 0, 1, 1], [], []>} : vector<64x128xbf16>, vector<128x128xbf16>, vector<64x128xf32> -> vector<64x128xf32>
    %148 = arith.addf %141, %147 : vector<64x128xf32>
    %c2_117 = arith.constant 2 : index
    %c2_118 = arith.constant 2 : index
    %c0_119 = arith.constant 0 : index
    %149 = vector.load %arg11[%c2_117, %c2_118, %c0_119] : memref<12x12x128xf32, #tpu.memory_space<vmem>>, vector<8x8x128xf32>
    %150 = vector.shape_cast %149 : vector<8x8x128xf32> to vector<64x128xf32>
    %151 = arith.truncf %150 : vector<64x128xf32> to vector<64x128xbf16>
    %c12 = arith.constant 12 : index
    %c0_120 = arith.constant 0 : index
    %c0_121 = arith.constant 0 : index
    %152 = vector.load %arg4[%c12, %c0_120, %c0_121] : memref<25x128x128xbf16, #tpu.memory_space<vmem>>, vector<1x128x128xbf16>
    %153 = vector.shape_cast %152 : vector<1x128x128xbf16> to vector<128x128xbf16>
    %cst_122 = arith.constant dense<0.000000e+00> : vector<64x128xf32>
    %154 = tpu.matmul %151, %153, %cst_122 {dimension_numbers = #tpu.dot_dimension_numbers<[1], [0], [0], [1], [0, 0, 1, 1], [], []>} : vector<64x128xbf16>, vector<128x128xbf16>, vector<64x128xf32> -> vector<64x128xf32>
    %155 = arith.addf %148, %154 : vector<64x128xf32>
    %c2_123 = arith.constant 2 : index
    %c3_124 = arith.constant 3 : index
    %c0_125 = arith.constant 0 : index
    %156 = vector.load %arg11[%c2_123, %c3_124, %c0_125] : memref<12x12x128xf32, #tpu.memory_space<vmem>>, vector<8x8x128xf32>
    %157 = vector.shape_cast %156 : vector<8x8x128xf32> to vector<64x128xf32>
    %158 = arith.truncf %157 : vector<64x128xf32> to vector<64x128xbf16>
    %c13 = arith.constant 13 : index
    %c0_126 = arith.constant 0 : index
    %c0_127 = arith.constant 0 : index
    %159 = vector.load %arg4[%c13, %c0_126, %c0_127] : memref<25x128x128xbf16, #tpu.memory_space<vmem>>, vector<1x128x128xbf16>
    %160 = vector.shape_cast %159 : vector<1x128x128xbf16> to vector<128x128xbf16>
    %cst_128 = arith.constant dense<0.000000e+00> : vector<64x128xf32>
    %161 = tpu.matmul %158, %160, %cst_128 {dimension_numbers = #tpu.dot_dimension_numbers<[1], [0], [0], [1], [0, 0, 1, 1], [], []>} : vector<64x128xbf16>, vector<128x128xbf16>, vector<64x128xf32> -> vector<64x128xf32>
    %162 = arith.addf %155, %161 : vector<64x128xf32>
    %c2_129 = arith.constant 2 : index
    %c4_130 = arith.constant 4 : index
    %c0_131 = arith.constant 0 : index
    %163 = vector.load %arg11[%c2_129, %c4_130, %c0_131] : memref<12x12x128xf32, #tpu.memory_space<vmem>>, vector<8x8x128xf32>
    %164 = vector.shape_cast %163 : vector<8x8x128xf32> to vector<64x128xf32>
    %165 = arith.truncf %164 : vector<64x128xf32> to vector<64x128xbf16>
    %c14 = arith.constant 14 : index
    %c0_132 = arith.constant 0 : index
    %c0_133 = arith.constant 0 : index
    %166 = vector.load %arg4[%c14, %c0_132, %c0_133] : memref<25x128x128xbf16, #tpu.memory_space<vmem>>, vector<1x128x128xbf16>
    %167 = vector.shape_cast %166 : vector<1x128x128xbf16> to vector<128x128xbf16>
    %cst_134 = arith.constant dense<0.000000e+00> : vector<64x128xf32>
    %168 = tpu.matmul %165, %167, %cst_134 {dimension_numbers = #tpu.dot_dimension_numbers<[1], [0], [0], [1], [0, 0, 1, 1], [], []>} : vector<64x128xbf16>, vector<128x128xbf16>, vector<64x128xf32> -> vector<64x128xf32>
    %169 = arith.addf %162, %168 : vector<64x128xf32>
    %c3_135 = arith.constant 3 : index
    %c0_136 = arith.constant 0 : index
    %c0_137 = arith.constant 0 : index
    %170 = vector.load %arg11[%c3_135, %c0_136, %c0_137] : memref<12x12x128xf32, #tpu.memory_space<vmem>>, vector<8x8x128xf32>
    %171 = vector.shape_cast %170 : vector<8x8x128xf32> to vector<64x128xf32>
    %172 = arith.truncf %171 : vector<64x128xf32> to vector<64x128xbf16>
    %c15 = arith.constant 15 : index
    %c0_138 = arith.constant 0 : index
    %c0_139 = arith.constant 0 : index
    %173 = vector.load %arg4[%c15, %c0_138, %c0_139] : memref<25x128x128xbf16, #tpu.memory_space<vmem>>, vector<1x128x128xbf16>
    %174 = vector.shape_cast %173 : vector<1x128x128xbf16> to vector<128x128xbf16>
    %cst_140 = arith.constant dense<0.000000e+00> : vector<64x128xf32>
    %175 = tpu.matmul %172, %174, %cst_140 {dimension_numbers = #tpu.dot_dimension_numbers<[1], [0], [0], [1], [0, 0, 1, 1], [], []>} : vector<64x128xbf16>, vector<128x128xbf16>, vector<64x128xf32> -> vector<64x128xf32>
    %176 = arith.addf %169, %175 : vector<64x128xf32>
    %c3_141 = arith.constant 3 : index
    %c1_142 = arith.constant 1 : index
    %c0_143 = arith.constant 0 : index
    %177 = vector.load %arg11[%c3_141, %c1_142, %c0_143] : memref<12x12x128xf32, #tpu.memory_space<vmem>>, vector<8x8x128xf32>
    %178 = vector.shape_cast %177 : vector<8x8x128xf32> to vector<64x128xf32>
    %179 = arith.truncf %178 : vector<64x128xf32> to vector<64x128xbf16>
    %c16 = arith.constant 16 : index
    %c0_144 = arith.constant 0 : index
    %c0_145 = arith.constant 0 : index
    %180 = vector.load %arg4[%c16, %c0_144, %c0_145] : memref<25x128x128xbf16, #tpu.memory_space<vmem>>, vector<1x128x128xbf16>
    %181 = vector.shape_cast %180 : vector<1x128x128xbf16> to vector<128x128xbf16>
    %cst_146 = arith.constant dense<0.000000e+00> : vector<64x128xf32>
    %182 = tpu.matmul %179, %181, %cst_146 {dimension_numbers = #tpu.dot_dimension_numbers<[1], [0], [0], [1], [0, 0, 1, 1], [], []>} : vector<64x128xbf16>, vector<128x128xbf16>, vector<64x128xf32> -> vector<64x128xf32>
    %183 = arith.addf %176, %182 : vector<64x128xf32>
    %c3_147 = arith.constant 3 : index
    %c2_148 = arith.constant 2 : index
    %c0_149 = arith.constant 0 : index
    %184 = vector.load %arg11[%c3_147, %c2_148, %c0_149] : memref<12x12x128xf32, #tpu.memory_space<vmem>>, vector<8x8x128xf32>
    %185 = vector.shape_cast %184 : vector<8x8x128xf32> to vector<64x128xf32>
    %186 = arith.truncf %185 : vector<64x128xf32> to vector<64x128xbf16>
    %c17 = arith.constant 17 : index
    %c0_150 = arith.constant 0 : index
    %c0_151 = arith.constant 0 : index
    %187 = vector.load %arg4[%c17, %c0_150, %c0_151] : memref<25x128x128xbf16, #tpu.memory_space<vmem>>, vector<1x128x128xbf16>
    %188 = vector.shape_cast %187 : vector<1x128x128xbf16> to vector<128x128xbf16>
    %cst_152 = arith.constant dense<0.000000e+00> : vector<64x128xf32>
    %189 = tpu.matmul %186, %188, %cst_152 {dimension_numbers = #tpu.dot_dimension_numbers<[1], [0], [0], [1], [0, 0, 1, 1], [], []>} : vector<64x128xbf16>, vector<128x128xbf16>, vector<64x128xf32> -> vector<64x128xf32>
    %190 = arith.addf %183, %189 : vector<64x128xf32>
    %c3_153 = arith.constant 3 : index
    %c3_154 = arith.constant 3 : index
    %c0_155 = arith.constant 0 : index
    %191 = vector.load %arg11[%c3_153, %c3_154, %c0_155] : memref<12x12x128xf32, #tpu.memory_space<vmem>>, vector<8x8x128xf32>
    %192 = vector.shape_cast %191 : vector<8x8x128xf32> to vector<64x128xf32>
    %193 = arith.truncf %192 : vector<64x128xf32> to vector<64x128xbf16>
    %c18 = arith.constant 18 : index
    %c0_156 = arith.constant 0 : index
    %c0_157 = arith.constant 0 : index
    %194 = vector.load %arg4[%c18, %c0_156, %c0_157] : memref<25x128x128xbf16, #tpu.memory_space<vmem>>, vector<1x128x128xbf16>
    %195 = vector.shape_cast %194 : vector<1x128x128xbf16> to vector<128x128xbf16>
    %cst_158 = arith.constant dense<0.000000e+00> : vector<64x128xf32>
    %196 = tpu.matmul %193, %195, %cst_158 {dimension_numbers = #tpu.dot_dimension_numbers<[1], [0], [0], [1], [0, 0, 1, 1], [], []>} : vector<64x128xbf16>, vector<128x128xbf16>, vector<64x128xf32> -> vector<64x128xf32>
    %197 = arith.addf %190, %196 : vector<64x128xf32>
    %c3_159 = arith.constant 3 : index
    %c4_160 = arith.constant 4 : index
    %c0_161 = arith.constant 0 : index
    %198 = vector.load %arg11[%c3_159, %c4_160, %c0_161] : memref<12x12x128xf32, #tpu.memory_space<vmem>>, vector<8x8x128xf32>
    %199 = vector.shape_cast %198 : vector<8x8x128xf32> to vector<64x128xf32>
    %200 = arith.truncf %199 : vector<64x128xf32> to vector<64x128xbf16>
    %c19 = arith.constant 19 : index
    %c0_162 = arith.constant 0 : index
    %c0_163 = arith.constant 0 : index
    %201 = vector.load %arg4[%c19, %c0_162, %c0_163] : memref<25x128x128xbf16, #tpu.memory_space<vmem>>, vector<1x128x128xbf16>
    %202 = vector.shape_cast %201 : vector<1x128x128xbf16> to vector<128x128xbf16>
    %cst_164 = arith.constant dense<0.000000e+00> : vector<64x128xf32>
    %203 = tpu.matmul %200, %202, %cst_164 {dimension_numbers = #tpu.dot_dimension_numbers<[1], [0], [0], [1], [0, 0, 1, 1], [], []>} : vector<64x128xbf16>, vector<128x128xbf16>, vector<64x128xf32> -> vector<64x128xf32>
    %204 = arith.addf %197, %203 : vector<64x128xf32>
    %c4_165 = arith.constant 4 : index
    %c0_166 = arith.constant 0 : index
    %c0_167 = arith.constant 0 : index
    %205 = vector.load %arg11[%c4_165, %c0_166, %c0_167] : memref<12x12x128xf32, #tpu.memory_space<vmem>>, vector<8x8x128xf32>
    %206 = vector.shape_cast %205 : vector<8x8x128xf32> to vector<64x128xf32>
    %207 = arith.truncf %206 : vector<64x128xf32> to vector<64x128xbf16>
    %c20 = arith.constant 20 : index
    %c0_168 = arith.constant 0 : index
    %c0_169 = arith.constant 0 : index
    %208 = vector.load %arg4[%c20, %c0_168, %c0_169] : memref<25x128x128xbf16, #tpu.memory_space<vmem>>, vector<1x128x128xbf16>
    %209 = vector.shape_cast %208 : vector<1x128x128xbf16> to vector<128x128xbf16>
    %cst_170 = arith.constant dense<0.000000e+00> : vector<64x128xf32>
    %210 = tpu.matmul %207, %209, %cst_170 {dimension_numbers = #tpu.dot_dimension_numbers<[1], [0], [0], [1], [0, 0, 1, 1], [], []>} : vector<64x128xbf16>, vector<128x128xbf16>, vector<64x128xf32> -> vector<64x128xf32>
    %211 = arith.addf %204, %210 : vector<64x128xf32>
    %c4_171 = arith.constant 4 : index
    %c1_172 = arith.constant 1 : index
    %c0_173 = arith.constant 0 : index
    %212 = vector.load %arg11[%c4_171, %c1_172, %c0_173] : memref<12x12x128xf32, #tpu.memory_space<vmem>>, vector<8x8x128xf32>
    %213 = vector.shape_cast %212 : vector<8x8x128xf32> to vector<64x128xf32>
    %214 = arith.truncf %213 : vector<64x128xf32> to vector<64x128xbf16>
    %c21 = arith.constant 21 : index
    %c0_174 = arith.constant 0 : index
    %c0_175 = arith.constant 0 : index
    %215 = vector.load %arg4[%c21, %c0_174, %c0_175] : memref<25x128x128xbf16, #tpu.memory_space<vmem>>, vector<1x128x128xbf16>
    %216 = vector.shape_cast %215 : vector<1x128x128xbf16> to vector<128x128xbf16>
    %cst_176 = arith.constant dense<0.000000e+00> : vector<64x128xf32>
    %217 = tpu.matmul %214, %216, %cst_176 {dimension_numbers = #tpu.dot_dimension_numbers<[1], [0], [0], [1], [0, 0, 1, 1], [], []>} : vector<64x128xbf16>, vector<128x128xbf16>, vector<64x128xf32> -> vector<64x128xf32>
    %218 = arith.addf %211, %217 : vector<64x128xf32>
    %c4_177 = arith.constant 4 : index
    %c2_178 = arith.constant 2 : index
    %c0_179 = arith.constant 0 : index
    %219 = vector.load %arg11[%c4_177, %c2_178, %c0_179] : memref<12x12x128xf32, #tpu.memory_space<vmem>>, vector<8x8x128xf32>
    %220 = vector.shape_cast %219 : vector<8x8x128xf32> to vector<64x128xf32>
    %221 = arith.truncf %220 : vector<64x128xf32> to vector<64x128xbf16>
    %c22 = arith.constant 22 : index
    %c0_180 = arith.constant 0 : index
    %c0_181 = arith.constant 0 : index
    %222 = vector.load %arg4[%c22, %c0_180, %c0_181] : memref<25x128x128xbf16, #tpu.memory_space<vmem>>, vector<1x128x128xbf16>
    %223 = vector.shape_cast %222 : vector<1x128x128xbf16> to vector<128x128xbf16>
    %cst_182 = arith.constant dense<0.000000e+00> : vector<64x128xf32>
    %224 = tpu.matmul %221, %223, %cst_182 {dimension_numbers = #tpu.dot_dimension_numbers<[1], [0], [0], [1], [0, 0, 1, 1], [], []>} : vector<64x128xbf16>, vector<128x128xbf16>, vector<64x128xf32> -> vector<64x128xf32>
    %225 = arith.addf %218, %224 : vector<64x128xf32>
    %c4_183 = arith.constant 4 : index
    %c3_184 = arith.constant 3 : index
    %c0_185 = arith.constant 0 : index
    %226 = vector.load %arg11[%c4_183, %c3_184, %c0_185] : memref<12x12x128xf32, #tpu.memory_space<vmem>>, vector<8x8x128xf32>
    %227 = vector.shape_cast %226 : vector<8x8x128xf32> to vector<64x128xf32>
    %228 = arith.truncf %227 : vector<64x128xf32> to vector<64x128xbf16>
    %c23 = arith.constant 23 : index
    %c0_186 = arith.constant 0 : index
    %c0_187 = arith.constant 0 : index
    %229 = vector.load %arg4[%c23, %c0_186, %c0_187] : memref<25x128x128xbf16, #tpu.memory_space<vmem>>, vector<1x128x128xbf16>
    %230 = vector.shape_cast %229 : vector<1x128x128xbf16> to vector<128x128xbf16>
    %cst_188 = arith.constant dense<0.000000e+00> : vector<64x128xf32>
    %231 = tpu.matmul %228, %230, %cst_188 {dimension_numbers = #tpu.dot_dimension_numbers<[1], [0], [0], [1], [0, 0, 1, 1], [], []>} : vector<64x128xbf16>, vector<128x128xbf16>, vector<64x128xf32> -> vector<64x128xf32>
    %232 = arith.addf %225, %231 : vector<64x128xf32>
    %c4_189 = arith.constant 4 : index
    %c4_190 = arith.constant 4 : index
    %c0_191 = arith.constant 0 : index
    %233 = vector.load %arg11[%c4_189, %c4_190, %c0_191] : memref<12x12x128xf32, #tpu.memory_space<vmem>>, vector<8x8x128xf32>
    %234 = vector.shape_cast %233 : vector<8x8x128xf32> to vector<64x128xf32>
    %235 = arith.truncf %234 : vector<64x128xf32> to vector<64x128xbf16>
    %c24 = arith.constant 24 : index
    %c0_192 = arith.constant 0 : index
    %c0_193 = arith.constant 0 : index
    %236 = vector.load %arg4[%c24, %c0_192, %c0_193] : memref<25x128x128xbf16, #tpu.memory_space<vmem>>, vector<1x128x128xbf16>
    %237 = vector.shape_cast %236 : vector<1x128x128xbf16> to vector<128x128xbf16>
    %cst_194 = arith.constant dense<0.000000e+00> : vector<64x128xf32>
    %238 = tpu.matmul %235, %237, %cst_194 {dimension_numbers = #tpu.dot_dimension_numbers<[1], [0], [0], [1], [0, 0, 1, 1], [], []>} : vector<64x128xbf16>, vector<128x128xbf16>, vector<64x128xf32> -> vector<64x128xf32>
    %239 = arith.addf %232, %238 : vector<64x128xf32>
    %c0_195 = arith.constant 0 : index
    %c0_196 = arith.constant 0 : index
    %240 = vector.load %arg5[%c0_195, %c0_196] : memref<1x128xf32, #tpu.memory_space<vmem>>, vector<1x128xf32>
    %241 = vector.broadcast %240 : vector<1x128xf32> to vector<64x128xf32>
    %242 = arith.addf %239, %241 : vector<64x128xf32>
    %c0_197 = arith.constant 0 : index
    %c0_198 = arith.constant 0 : index
    %243 = vector.load %arg12[%c0_197, %c0_198] : memref<64x128xf32, #tpu.memory_space<vmem>>, vector<64x128xf32>
    tpu.vector_store %arg12[%c0_197, %c0_198], %242 {strides = array<i32>} : memref<64x128xf32, #tpu.memory_space<vmem>>, vector<64x128xf32>,
    %c0_199 = arith.constant 0 : index
    %c0_200 = arith.constant 0 : index
    %244 = vector.load %arg12[%c0_199, %c0_200] : memref<64x128xf32, #tpu.memory_space<vmem>>, vector<2x128xf32>
    %c8_201 = arith.constant 8 : index
    %c0_202 = arith.constant 0 : index
    %245 = vector.load %arg12[%c8_201, %c0_202] : memref<64x128xf32, #tpu.memory_space<vmem>>, vector<2x128xf32>
    %246 = arith.maximumf %244, %245 : vector<2x128xf32>
    %cst_203 = arith.constant dense<0xFF800000> : vector<128xf32>
    %247 = vector.multi_reduction <maximumf>, %246, %cst_203 [0] : vector<2x128xf32> to vector<128xf32>
    %248 = vector.shape_cast %247 : vector<128xf32> to vector<1x128xf32>
    %cst_204 = arith.constant 0.000000e+00 : f32
    %249 = vector.broadcast %cst_204 : f32 to vector<1x128xf32>
    %250 = arith.maximumf %248, %249 : vector<1x128xf32>
    %c0_205 = arith.constant 0 : index
    %c0_206 = arith.constant 0 : index
    %251 = vector.load %arg13[%c0_205, %c0_206] : memref<1x2048xf32, #tpu.memory_space<vmem>>, vector<1x128xf32>
    tpu.vector_store %arg13[%c0_205, %c0_206], %250 {strides = array<i32>} : memref<1x2048xf32, #tpu.memory_space<vmem>>, vector<1x128xf32>,
    %c2_207 = arith.constant 2 : index
    %c0_208 = arith.constant 0 : index
    %252 = vector.load %arg12[%c2_207, %c0_208] : memref<64x128xf32, #tpu.memory_space<vmem>>, vector<2x128xf32>
    %c10_209 = arith.constant 10 : index
    %c0_210 = arith.constant 0 : index
    %253 = vector.load %arg12[%c10_209, %c0_210] : memref<64x128xf32, #tpu.memory_space<vmem>>, vector<2x128xf32>
    %254 = arith.maximumf %252, %253 : vector<2x128xf32>
    %cst_211 = arith.constant dense<0xFF800000> : vector<128xf32>
    %255 = vector.multi_reduction <maximumf>, %254, %cst_211 [0] : vector<2x128xf32> to vector<128xf32>
    %256 = vector.shape_cast %255 : vector<128xf32> to vector<1x128xf32>
    %cst_212 = arith.constant 0.000000e+00 : f32
    %257 = vector.broadcast %cst_212 : f32 to vector<1x128xf32>
    %258 = arith.maximumf %256, %257 : vector<1x128xf32>
    %c0_213 = arith.constant 0 : index
    %c128 = arith.constant 128 : index
    %259 = vector.load %arg13[%c0_213, %c128] : memref<1x2048xf32, #tpu.memory_space<vmem>>, vector<1x128xf32>
    tpu.vector_store %arg13[%c0_213, %c128], %258 {strides = array<i32>} : memref<1x2048xf32, #tpu.memory_space<vmem>>, vector<1x128xf32>,
    %c4_214 = arith.constant 4 : index
    %c0_215 = arith.constant 0 : index
    %260 = vector.load %arg12[%c4_214, %c0_215] : memref<64x128xf32, #tpu.memory_space<vmem>>, vector<2x128xf32>
    %c12_216 = arith.constant 12 : index
    %c0_217 = arith.constant 0 : index
    %261 = vector.load %arg12[%c12_216, %c0_217] : memref<64x128xf32, #tpu.memory_space<vmem>>, vector<2x128xf32>
    %262 = arith.maximumf %260, %261 : vector<2x128xf32>
    %cst_218 = arith.constant dense<0xFF800000> : vector<128xf32>
    %263 = vector.multi_reduction <maximumf>, %262, %cst_218 [0] : vector<2x128xf32> to vector<128xf32>
    %264 = vector.shape_cast %263 : vector<128xf32> to vector<1x128xf32>
    %cst_219 = arith.constant 0.000000e+00 : f32
    %265 = vector.broadcast %cst_219 : f32 to vector<1x128xf32>
    %266 = arith.maximumf %264, %265 : vector<1x128xf32>
    %c0_220 = arith.constant 0 : index
    %c256 = arith.constant 256 : index
    %267 = vector.load %arg13[%c0_220, %c256] : memref<1x2048xf32, #tpu.memory_space<vmem>>, vector<1x128xf32>
    tpu.vector_store %arg13[%c0_220, %c256], %266 {strides = array<i32>} : memref<1x2048xf32, #tpu.memory_space<vmem>>, vector<1x128xf32>,
    %c6_221 = arith.constant 6 : index
    %c0_222 = arith.constant 0 : index
    %268 = vector.load %arg12[%c6_221, %c0_222] : memref<64x128xf32, #tpu.memory_space<vmem>>, vector<2x128xf32>
    %c14_223 = arith.constant 14 : index
    %c0_224 = arith.constant 0 : index
    %269 = vector.load %arg12[%c14_223, %c0_224] : memref<64x128xf32, #tpu.memory_space<vmem>>, vector<2x128xf32>
    %270 = arith.maximumf %268, %269 : vector<2x128xf32>
    %cst_225 = arith.constant dense<0xFF800000> : vector<128xf32>
    %271 = vector.multi_reduction <maximumf>, %270, %cst_225 [0] : vector<2x128xf32> to vector<128xf32>
    %272 = vector.shape_cast %271 : vector<128xf32> to vector<1x128xf32>
    %cst_226 = arith.constant 0.000000e+00 : f32
    %273 = vector.broadcast %cst_226 : f32 to vector<1x128xf32>
    %274 = arith.maximumf %272, %273 : vector<1x128xf32>
    %c0_227 = arith.constant 0 : index
    %c384 = arith.constant 384 : index
    %275 = vector.load %arg13[%c0_227, %c384] : memref<1x2048xf32, #tpu.memory_space<vmem>>, vector<1x128xf32>
    tpu.vector_store %arg13[%c0_227, %c384], %274 {strides = array<i32>} : memref<1x2048xf32, #tpu.memory_space<vmem>>, vector<1x128xf32>,
    %c16_228 = arith.constant 16 : index
    %c0_229 = arith.constant 0 : index
    %276 = vector.load %arg12[%c16_228, %c0_229] : memref<64x128xf32, #tpu.memory_space<vmem>>, vector<2x128xf32>
    %c24_230 = arith.constant 24 : index
    %c0_231 = arith.constant 0 : index
    %277 = vector.load %arg12[%c24_230, %c0_231] : memref<64x128xf32, #tpu.memory_space<vmem>>, vector<2x128xf32>
    %278 = arith.maximumf %276, %277 : vector<2x128xf32>
    %cst_232 = arith.constant dense<0xFF800000> : vector<128xf32>
    %279 = vector.multi_reduction <maximumf>, %278, %cst_232 [0] : vector<2x128xf32> to vector<128xf32>
    %280 = vector.shape_cast %279 : vector<128xf32> to vector<1x128xf32>
    %cst_233 = arith.constant 0.000000e+00 : f32
    %281 = vector.broadcast %cst_233 : f32 to vector<1x128xf32>
    %282 = arith.maximumf %280, %281 : vector<1x128xf32>
    %c0_234 = arith.constant 0 : index
    %c512 = arith.constant 512 : index
    %283 = vector.load %arg13[%c0_234, %c512] : memref<1x2048xf32, #tpu.memory_space<vmem>>, vector<1x128xf32>
    tpu.vector_store %arg13[%c0_234, %c512], %282 {strides = array<i32>} : memref<1x2048xf32, #tpu.memory_space<vmem>>, vector<1x128xf32>,
    %c18_235 = arith.constant 18 : index
    %c0_236 = arith.constant 0 : index
    %284 = vector.load %arg12[%c18_235, %c0_236] : memref<64x128xf32, #tpu.memory_space<vmem>>, vector<2x128xf32>
    %c26 = arith.constant 26 : index
    %c0_237 = arith.constant 0 : index
    %285 = vector.load %arg12[%c26, %c0_237] : memref<64x128xf32, #tpu.memory_space<vmem>>, vector<2x128xf32>
    %286 = arith.maximumf %284, %285 : vector<2x128xf32>
    %cst_238 = arith.constant dense<0xFF800000> : vector<128xf32>
    %287 = vector.multi_reduction <maximumf>, %286, %cst_238 [0] : vector<2x128xf32> to vector<128xf32>
    %288 = vector.shape_cast %287 : vector<128xf32> to vector<1x128xf32>
    %cst_239 = arith.constant 0.000000e+00 : f32
    %289 = vector.broadcast %cst_239 : f32 to vector<1x128xf32>
    %290 = arith.maximumf %288, %289 : vector<1x128xf32>
    %c0_240 = arith.constant 0 : index
    %c640 = arith.constant 640 : index
    %291 = vector.load %arg13[%c0_240, %c640] : memref<1x2048xf32, #tpu.memory_space<vmem>>, vector<1x128xf32>
    tpu.vector_store %arg13[%c0_240, %c640], %290 {strides = array<i32>} : memref<1x2048xf32, #tpu.memory_space<vmem>>, vector<1x128xf32>,
    %c20_241 = arith.constant 20 : index
    %c0_242 = arith.constant 0 : index
    %292 = vector.load %arg12[%c20_241, %c0_242] : memref<64x128xf32, #tpu.memory_space<vmem>>, vector<2x128xf32>
    %c28 = arith.constant 28 : index
    %c0_243 = arith.constant 0 : index
    %293 = vector.load %arg12[%c28, %c0_243] : memref<64x128xf32, #tpu.memory_space<vmem>>, vector<2x128xf32>
    %294 = arith.maximumf %292, %293 : vector<2x128xf32>
    %cst_244 = arith.constant dense<0xFF800000> : vector<128xf32>
    %295 = vector.multi_reduction <maximumf>, %294, %cst_244 [0] : vector<2x128xf32> to vector<128xf32>
    %296 = vector.shape_cast %295 : vector<128xf32> to vector<1x128xf32>
    %cst_245 = arith.constant 0.000000e+00 : f32
    %297 = vector.broadcast %cst_245 : f32 to vector<1x128xf32>
    %298 = arith.maximumf %296, %297 : vector<1x128xf32>
    %c0_246 = arith.constant 0 : index
    %c768 = arith.constant 768 : index
    %299 = vector.load %arg13[%c0_246, %c768] : memref<1x2048xf32, #tpu.memory_space<vmem>>, vector<1x128xf32>
    tpu.vector_store %arg13[%c0_246, %c768], %298 {strides = array<i32>} : memref<1x2048xf32, #tpu.memory_space<vmem>>, vector<1x128xf32>,
    %c22_247 = arith.constant 22 : index
    %c0_248 = arith.constant 0 : index
    %300 = vector.load %arg12[%c22_247, %c0_248] : memref<64x128xf32, #tpu.memory_space<vmem>>, vector<2x128xf32>
    %c30 = arith.constant 30 : index
    %c0_249 = arith.constant 0 : index
    %301 = vector.load %arg12[%c30, %c0_249] : memref<64x128xf32, #tpu.memory_space<vmem>>, vector<2x128xf32>
    %302 = arith.maximumf %300, %301 : vector<2x128xf32>
    %cst_250 = arith.constant dense<0xFF800000> : vector<128xf32>
    %303 = vector.multi_reduction <maximumf>, %302, %cst_250 [0] : vector<2x128xf32> to vector<128xf32>
    %304 = vector.shape_cast %303 : vector<128xf32> to vector<1x128xf32>
    %cst_251 = arith.constant 0.000000e+00 : f32
    %305 = vector.broadcast %cst_251 : f32 to vector<1x128xf32>
    %306 = arith.maximumf %304, %305 : vector<1x128xf32>
    %c0_252 = arith.constant 0 : index
    %c896 = arith.constant 896 : index
    %307 = vector.load %arg13[%c0_252, %c896] : memref<1x2048xf32, #tpu.memory_space<vmem>>, vector<1x128xf32>
    tpu.vector_store %arg13[%c0_252, %c896], %306 {strides = array<i32>} : memref<1x2048xf32, #tpu.memory_space<vmem>>, vector<1x128xf32>,
    %c32 = arith.constant 32 : index
    %c0_253 = arith.constant 0 : index
    %308 = vector.load %arg12[%c32, %c0_253] : memref<64x128xf32, #tpu.memory_space<vmem>>, vector<2x128xf32>
    %c40 = arith.constant 40 : index
    %c0_254 = arith.constant 0 : index
    %309 = vector.load %arg12[%c40, %c0_254] : memref<64x128xf32, #tpu.memory_space<vmem>>, vector<2x128xf32>
    %310 = arith.maximumf %308, %309 : vector<2x128xf32>
    %cst_255 = arith.constant dense<0xFF800000> : vector<128xf32>
    %311 = vector.multi_reduction <maximumf>, %310, %cst_255 [0] : vector<2x128xf32> to vector<128xf32>
    %312 = vector.shape_cast %311 : vector<128xf32> to vector<1x128xf32>
    %cst_256 = arith.constant 0.000000e+00 : f32
    %313 = vector.broadcast %cst_256 : f32 to vector<1x128xf32>
    %314 = arith.maximumf %312, %313 : vector<1x128xf32>
    %c0_257 = arith.constant 0 : index
    %c1024 = arith.constant 1024 : index
    %315 = vector.load %arg13[%c0_257, %c1024] : memref<1x2048xf32, #tpu.memory_space<vmem>>, vector<1x128xf32>
    tpu.vector_store %arg13[%c0_257, %c1024], %314 {strides = array<i32>} : memref<1x2048xf32, #tpu.memory_space<vmem>>, vector<1x128xf32>,
    %c34 = arith.constant 34 : index
    %c0_258 = arith.constant 0 : index
    %316 = vector.load %arg12[%c34, %c0_258] : memref<64x128xf32, #tpu.memory_space<vmem>>, vector<2x128xf32>
    %c42 = arith.constant 42 : index
    %c0_259 = arith.constant 0 : index
    %317 = vector.load %arg12[%c42, %c0_259] : memref<64x128xf32, #tpu.memory_space<vmem>>, vector<2x128xf32>
    %318 = arith.maximumf %316, %317 : vector<2x128xf32>
    %cst_260 = arith.constant dense<0xFF800000> : vector<128xf32>
    %319 = vector.multi_reduction <maximumf>, %318, %cst_260 [0] : vector<2x128xf32> to vector<128xf32>
    %320 = vector.shape_cast %319 : vector<128xf32> to vector<1x128xf32>
    %cst_261 = arith.constant 0.000000e+00 : f32
    %321 = vector.broadcast %cst_261 : f32 to vector<1x128xf32>
    %322 = arith.maximumf %320, %321 : vector<1x128xf32>
    %c0_262 = arith.constant 0 : index
    %c1152 = arith.constant 1152 : index
    %323 = vector.load %arg13[%c0_262, %c1152] : memref<1x2048xf32, #tpu.memory_space<vmem>>, vector<1x128xf32>
    tpu.vector_store %arg13[%c0_262, %c1152], %322 {strides = array<i32>} : memref<1x2048xf32, #tpu.memory_space<vmem>>, vector<1x128xf32>,
    %c36 = arith.constant 36 : index
    %c0_263 = arith.constant 0 : index
    %324 = vector.load %arg12[%c36, %c0_263] : memref<64x128xf32, #tpu.memory_space<vmem>>, vector<2x128xf32>
    %c44 = arith.constant 44 : index
    %c0_264 = arith.constant 0 : index
    %325 = vector.load %arg12[%c44, %c0_264] : memref<64x128xf32, #tpu.memory_space<vmem>>, vector<2x128xf32>
    %326 = arith.maximumf %324, %325 : vector<2x128xf32>
    %cst_265 = arith.constant dense<0xFF800000> : vector<128xf32>
    %327 = vector.multi_reduction <maximumf>, %326, %cst_265 [0] : vector<2x128xf32> to vector<128xf32>
    %328 = vector.shape_cast %327 : vector<128xf32> to vector<1x128xf32>
    %cst_266 = arith.constant 0.000000e+00 : f32
    %329 = vector.broadcast %cst_266 : f32 to vector<1x128xf32>
    %330 = arith.maximumf %328, %329 : vector<1x128xf32>
    %c0_267 = arith.constant 0 : index
    %c1280 = arith.constant 1280 : index
    %331 = vector.load %arg13[%c0_267, %c1280] : memref<1x2048xf32, #tpu.memory_space<vmem>>, vector<1x128xf32>
    tpu.vector_store %arg13[%c0_267, %c1280], %330 {strides = array<i32>} : memref<1x2048xf32, #tpu.memory_space<vmem>>, vector<1x128xf32>,
    %c38 = arith.constant 38 : index
    %c0_268 = arith.constant 0 : index
    %332 = vector.load %arg12[%c38, %c0_268] : memref<64x128xf32, #tpu.memory_space<vmem>>, vector<2x128xf32>
    %c46 = arith.constant 46 : index
    %c0_269 = arith.constant 0 : index
    %333 = vector.load %arg12[%c46, %c0_269] : memref<64x128xf32, #tpu.memory_space<vmem>>, vector<2x128xf32>
    %334 = arith.maximumf %332, %333 : vector<2x128xf32>
    %cst_270 = arith.constant dense<0xFF800000> : vector<128xf32>
    %335 = vector.multi_reduction <maximumf>, %334, %cst_270 [0] : vector<2x128xf32> to vector<128xf32>
    %336 = vector.shape_cast %335 : vector<128xf32> to vector<1x128xf32>
    %cst_271 = arith.constant 0.000000e+00 : f32
    %337 = vector.broadcast %cst_271 : f32 to vector<1x128xf32>
    %338 = arith.maximumf %336, %337 : vector<1x128xf32>
    %c0_272 = arith.constant 0 : index
    %c1408 = arith.constant 1408 : index
    %339 = vector.load %arg13[%c0_272, %c1408] : memref<1x2048xf32, #tpu.memory_space<vmem>>, vector<1x128xf32>
    tpu.vector_store %arg13[%c0_272, %c1408], %338 {strides = array<i32>} : memref<1x2048xf32, #tpu.memory_space<vmem>>, vector<1x128xf32>,
    %c48 = arith.constant 48 : index
    %c0_273 = arith.constant 0 : index
    %340 = vector.load %arg12[%c48, %c0_273] : memref<64x128xf32, #tpu.memory_space<vmem>>, vector<2x128xf32>
    %c56 = arith.constant 56 : index
    %c0_274 = arith.constant 0 : index
    %341 = vector.load %arg12[%c56, %c0_274] : memref<64x128xf32, #tpu.memory_space<vmem>>, vector<2x128xf32>
    %342 = arith.maximumf %340, %341 : vector<2x128xf32>
    %cst_275 = arith.constant dense<0xFF800000> : vector<128xf32>
    %343 = vector.multi_reduction <maximumf>, %342, %cst_275 [0] : vector<2x128xf32> to vector<128xf32>
    %344 = vector.shape_cast %343 : vector<128xf32> to vector<1x128xf32>
    %cst_276 = arith.constant 0.000000e+00 : f32
    %345 = vector.broadcast %cst_276 : f32 to vector<1x128xf32>
    %346 = arith.maximumf %344, %345 : vector<1x128xf32>
    %c0_277 = arith.constant 0 : index
    %c1536 = arith.constant 1536 : index
    %347 = vector.load %arg13[%c0_277, %c1536] : memref<1x2048xf32, #tpu.memory_space<vmem>>, vector<1x128xf32>
    tpu.vector_store %arg13[%c0_277, %c1536], %346 {strides = array<i32>} : memref<1x2048xf32, #tpu.memory_space<vmem>>, vector<1x128xf32>,
    %c50 = arith.constant 50 : index
    %c0_278 = arith.constant 0 : index
    %348 = vector.load %arg12[%c50, %c0_278] : memref<64x128xf32, #tpu.memory_space<vmem>>, vector<2x128xf32>
    %c58 = arith.constant 58 : index
    %c0_279 = arith.constant 0 : index
    %349 = vector.load %arg12[%c58, %c0_279] : memref<64x128xf32, #tpu.memory_space<vmem>>, vector<2x128xf32>
    %350 = arith.maximumf %348, %349 : vector<2x128xf32>
    %cst_280 = arith.constant dense<0xFF800000> : vector<128xf32>
    %351 = vector.multi_reduction <maximumf>, %350, %cst_280 [0] : vector<2x128xf32> to vector<128xf32>
    %352 = vector.shape_cast %351 : vector<128xf32> to vector<1x128xf32>
    %cst_281 = arith.constant 0.000000e+00 : f32
    %353 = vector.broadcast %cst_281 : f32 to vector<1x128xf32>
    %354 = arith.maximumf %352, %353 : vector<1x128xf32>
    %c0_282 = arith.constant 0 : index
    %c1664 = arith.constant 1664 : index
    %355 = vector.load %arg13[%c0_282, %c1664] : memref<1x2048xf32, #tpu.memory_space<vmem>>, vector<1x128xf32>
    tpu.vector_store %arg13[%c0_282, %c1664], %354 {strides = array<i32>} : memref<1x2048xf32, #tpu.memory_space<vmem>>, vector<1x128xf32>,
    %c52 = arith.constant 52 : index
    %c0_283 = arith.constant 0 : index
    %356 = vector.load %arg12[%c52, %c0_283] : memref<64x128xf32, #tpu.memory_space<vmem>>, vector<2x128xf32>
    %c60 = arith.constant 60 : index
    %c0_284 = arith.constant 0 : index
    %357 = vector.load %arg12[%c60, %c0_284] : memref<64x128xf32, #tpu.memory_space<vmem>>, vector<2x128xf32>
    %358 = arith.maximumf %356, %357 : vector<2x128xf32>
    %cst_285 = arith.constant dense<0xFF800000> : vector<128xf32>
    %359 = vector.multi_reduction <maximumf>, %358, %cst_285 [0] : vector<2x128xf32> to vector<128xf32>
    %360 = vector.shape_cast %359 : vector<128xf32> to vector<1x128xf32>
    %cst_286 = arith.constant 0.000000e+00 : f32
    %361 = vector.broadcast %cst_286 : f32 to vector<1x128xf32>
    %362 = arith.maximumf %360, %361 : vector<1x128xf32>
    %c0_287 = arith.constant 0 : index
    %c1792 = arith.constant 1792 : index
    %363 = vector.load %arg13[%c0_287, %c1792] : memref<1x2048xf32, #tpu.memory_space<vmem>>, vector<1x128xf32>
    tpu.vector_store %arg13[%c0_287, %c1792], %362 {strides = array<i32>} : memref<1x2048xf32, #tpu.memory_space<vmem>>, vector<1x128xf32>,
    %c54 = arith.constant 54 : index
    %c0_288 = arith.constant 0 : index
    %364 = vector.load %arg12[%c54, %c0_288] : memref<64x128xf32, #tpu.memory_space<vmem>>, vector<2x128xf32>
    %c62 = arith.constant 62 : index
    %c0_289 = arith.constant 0 : index
    %365 = vector.load %arg12[%c62, %c0_289] : memref<64x128xf32, #tpu.memory_space<vmem>>, vector<2x128xf32>
    %366 = arith.maximumf %364, %365 : vector<2x128xf32>
    %cst_290 = arith.constant dense<0xFF800000> : vector<128xf32>
    %367 = vector.multi_reduction <maximumf>, %366, %cst_290 [0] : vector<2x128xf32> to vector<128xf32>
    %368 = vector.shape_cast %367 : vector<128xf32> to vector<1x128xf32>
    %cst_291 = arith.constant 0.000000e+00 : f32
    %369 = vector.broadcast %cst_291 : f32 to vector<1x128xf32>
    %370 = arith.maximumf %368, %369 : vector<1x128xf32>
    %c0_292 = arith.constant 0 : index
    %c1920 = arith.constant 1920 : index
    %371 = vector.load %arg13[%c0_292, %c1920] : memref<1x2048xf32, #tpu.memory_space<vmem>>, vector<1x128xf32>
    tpu.vector_store %arg13[%c0_292, %c1920], %370 {strides = array<i32>} : memref<1x2048xf32, #tpu.memory_space<vmem>>, vector<1x128xf32>,
    %c0_293 = arith.constant 0 : index
    %c0_294 = arith.constant 0 : index
    %372 = vector.load %arg13[%c0_293, %c0_294] : memref<1x2048xf32, #tpu.memory_space<vmem>>, vector<1x2048xf32>
    %373 = arith.truncf %372 : vector<1x2048xf32> to vector<1x2048xbf16>
    %c0_295 = arith.constant 0 : index
    %c0_296 = arith.constant 0 : index
    %374 = vector.load %arg6[%c0_295, %c0_296] : memref<2048x128xbf16, #tpu.memory_space<vmem>>, vector<2048x128xbf16>
    %cst_297 = arith.constant dense<0.000000e+00> : vector<1x128xf32>
    %375 = tpu.matmul %373, %374, %cst_297 {dimension_numbers = #tpu.dot_dimension_numbers<[1], [0], [0], [1], [0, 0, 1, 1], [], []>} : vector<1x2048xbf16>, vector<2048x128xbf16>, vector<1x128xf32> -> vector<1x128xf32>
    %c0_298 = arith.constant 0 : index
    %c0_299 = arith.constant 0 : index
    %376 = vector.load %arg7[%c0_298, %c0_299] : memref<1x128xf32, #tpu.memory_space<vmem>>, vector<1x128xf32>
    %377 = arith.addf %375, %376 : vector<1x128xf32>
    %cst_300 = arith.constant 0.000000e+00 : f32
    %378 = vector.broadcast %cst_300 : f32 to vector<1x128xf32>
    %379 = arith.maximumf %377, %378 : vector<1x128xf32>
    %380 = arith.truncf %379 : vector<1x128xf32> to vector<1x128xbf16>
    %c0_301 = arith.constant 0 : index
    %c0_302 = arith.constant 0 : index
    %381 = vector.load %arg8[%c0_301, %c0_302] : memref<128x128xbf16, #tpu.memory_space<vmem>>, vector<128x128xbf16>
    %cst_303 = arith.constant dense<0.000000e+00> : vector<1x128xf32>
    %382 = tpu.matmul %380, %381, %cst_303 {dimension_numbers = #tpu.dot_dimension_numbers<[1], [0], [0], [1], [0, 0, 1, 1], [], []>} : vector<1x128xbf16>, vector<128x128xbf16>, vector<1x128xf32> -> vector<1x128xf32>
    %c0_304 = arith.constant 0 : index
    %c0_305 = arith.constant 0 : index
    %383 = vector.load %arg9[%c0_304, %c0_305] : memref<1x128xf32, #tpu.memory_space<vmem>>, vector<1x128xf32>
    %384 = arith.addf %382, %383 : vector<1x128xf32>
    %c0_306 = arith.constant 0 : index
    %c0_307 = arith.constant 0 : index
    %c0_308 = arith.constant 0 : index
    %385 = vector.load %arg10[%c0_306, %c0_307, %c0_308] : memref<1x1x128xf32, #tpu.memory_space<vmem>>, vector<1x1x128xf32>
    %386 = vector.shape_cast %385 : vector<1x1x128xf32> to vector<1x128xf32>
    %387 = vector.shape_cast %384 : vector<1x128xf32> to vector<1x1x128xf32>
    tpu.vector_store %arg10[%c0_306, %c0_307, %c0_308], %387 {strides = array<i32>} : memref<1x1x128xf32, #tpu.memory_space<vmem>>, vector<1x1x128xf32>,
    return
  }
  func.func @transform_0(%arg0: i32) -> (i32, i32, i32) {
    %c0_i32 = arith.constant 0 : i32
    %c0_i32_0 = arith.constant 0 : i32
    %c0_i32_1 = arith.constant 0 : i32
    return %arg0, %c0_i32, %c0_i32_0 : i32, i32, i32
  }
  func.func @transform_1(%arg0: i32) -> (i32, i32) {
    %c0_i32 = arith.constant 0 : i32
    %c0_i32_0 = arith.constant 0 : i32
    %c0_i32_1 = arith.constant 0 : i32
    return %c0_i32, %c0_i32_0 : i32, i32
  }
  func.func @transform_2(%arg0: i32) -> (i32, i32) {
    %c0_i32 = arith.constant 0 : i32
    %c0_i32_0 = arith.constant 0 : i32
    %c0_i32_1 = arith.constant 0 : i32
    return %c0_i32, %c0_i32_0 : i32, i32
  }
  func.func @transform_3(%arg0: i32) -> (i32, i32, i32) {
    %c0_i32 = arith.constant 0 : i32
    %c0_i32_0 = arith.constant 0 : i32
    %c0_i32_1 = arith.constant 0 : i32
    %c0_i32_2 = arith.constant 0 : i32
    return %c0_i32, %c0_i32_0, %c0_i32_1 : i32, i32, i32
  }
  func.func @transform_4(%arg0: i32) -> (i32, i32) {
    %c0_i32 = arith.constant 0 : i32
    %c0_i32_0 = arith.constant 0 : i32
    %c0_i32_1 = arith.constant 0 : i32
    return %c0_i32, %c0_i32_0 : i32, i32
  }
  func.func @transform_5(%arg0: i32) -> (i32, i32) {
    %c0_i32 = arith.constant 0 : i32
    %c0_i32_0 = arith.constant 0 : i32
    %c0_i32_1 = arith.constant 0 : i32
    return %c0_i32, %c0_i32_0 : i32, i32
  }
  func.func @transform_6(%arg0: i32) -> (i32, i32) {
    %c0_i32 = arith.constant 0 : i32
    %c0_i32_0 = arith.constant 0 : i32
    %c0_i32_1 = arith.constant 0 : i32
    return %c0_i32, %c0_i32_0 : i32, i32
  }
  func.func @transform_7(%arg0: i32) -> (i32, i32) {
    %c0_i32 = arith.constant 0 : i32
    %c0_i32_0 = arith.constant 0 : i32
    %c0_i32_1 = arith.constant 0 : i32
    return %c0_i32, %c0_i32_0 : i32, i32
  }
  func.func @transform_8(%arg0: i32) -> (i32, i32) {
    %c0_i32 = arith.constant 0 : i32
    %c0_i32_0 = arith.constant 0 : i32
    %c0_i32_1 = arith.constant 0 : i32
    return %c0_i32, %c0_i32_0 : i32, i32
  }
  func.func @transform_9(%arg0: i32) -> (i32, i32, i32) {
    %c0_i32 = arith.constant 0 : i32
    %c0_i32_0 = arith.constant 0 : i32
    %c0_i32_1 = arith.constant 0 : i32
    return %arg0, %c0_i32, %c0_i32_0 : i32, i32, i32
  }
}

</mosaic_0001>

<bundles_post_ra>
// kernel: cnn_forward.1
= control target key start
LH: loop header
LB: loop body
LE: loop exit
PB: predicated region body
PF: predicated region fallthrough
CT: control target
= control target key end

     0   :  { %14 = vsyncpa [#allocation6], 0  ;;  %s10052_s0 = inlined_call_operand.vmem [shape: bf16[2,576,32], index: 0, kind: input, shape index: {}]   ;;  %s10053_s1 = inlined_call_operand.vmem [shape: bf16[32,128], index: 1, kind: input, shape index: {}]   ;;  %s10054_s2 = inlined_call_operand.vmem [shape: f32[1,128], index: 2, kind: input, shape index: {}]   ;;  %s10055_s3 = inlined_call_operand.vmem [shape: bf16[25,128,128], index: 3, kind: input, shape index: {}]   ;;  %s10056_s4 = inlined_call_operand.vmem [shape: f32[1,128], index: 4, kind: input, shape index: {}]   ;;  %s10057_s5 = inlined_call_operand.vmem [shape: bf16[2048,128], index: 5, kind: input, shape index: {}]   ;;  %s10058_s6 = inlined_call_operand.vmem [shape: f32[1,128], index: 6, kind: input, shape index: {}]   ;;  %s10059_s7 = inlined_call_operand.vmem [shape: bf16[128,128], index: 7, kind: input, shape index: {}]   ;;  %s10060_s8 = inlined_call_operand.vmem [shape: f32[1,128], index: 8, kind: input, shape index: {}]   ;;  %s10061_s9 = inlined_call_operand.hbm [shape: f32[2,1,128], index: 9, kind: output, shape index: {}]  }
   0x1   :  { %16 = vsyncpa [#allocation6 + $0x1], 0  ;;  %s7967_s30 = smov 0   ;;  %s7969_s10 = smov 0  }
   0x2   :  { %s7971_s11 = smov 0   ;;  %s7973_s12 = smov 0  }
   0x3 LB: > { %s7988_s13 = sadd.s32 4294967295, %s7915_s12   ;;  %s5510_s14 = sadd.s32 4294967294, %s7915_s12   ;;  %s7915_s12 = sphi %s7973_s12, %s10093_s12   ;;  %s7911_s11 = sphi %s7971_s11, %s10092_s11   ;;  %s7907_s10 = sphi %s7969_s10, %s10091_s10   ;;  %s7903_s30 = sphi %s7967_s30, %s10090_s30  }
   0x4   : > { %s7992_s15 = sadd.s32 1, %s7915_s12   ;;  %s223_s16 = sadd.s32 1, %s7911_s11 }
   0x5   : > { %s220_s17 = ssub.s32 %s7915_s12, %s7992_s15  ;;  %p233_p0 = scmp.ne.s32.totalorder %s7911_s11, %s7907_s10 }
   0x6   : > { %p221_p1 = scmp.eq.s32.totalorder %s220_s17, 0  ;;  %p234_p2 = scmp.eq.s32.totalorder %s7988_s13, 1 }
   0x7   : > { %p239_p3 = scmp.ne.s32.totalorder %s7907_s10, %s7903_s30  ;;  %p240_p4 = scmp.eq.s32.totalorder %s5510_s14, 1 }
   0x8   : > { %s8003_s18 = scalar_select %p221_p1, %s7911_s11, %s223_s16  }
   0x9   : > { %p8005_p5 = por %p234_p2, %p233_p0  ;;  %p8009_p6 = por %p240_p4, %p239_p3 }
   0xa   : > { %p5513_p7 = scmp.ge.s32.totalorder %s7915_s12, 1  ;;  %p290_p8 = scmp.lt.s32.totalorder %s7915_s12, 3 }
   0xc   : > { %p291_p9 = pnand %p5513_p7, %p290_p8 }
   0xe   : > { %294 = sbr.rel (%p291_p9) target bundleno = 1719 (0x6b7), region = 56 }
  0x13   : > { %v7470_v0 = vld [vmem:[%s10053_s1 + $0x8] sm:$0xff]  ;;  %p325_p10 = scmp.lt.s32.totalorder %s7988_s13, 1  ;;  %v7469_v1 = vld [vmem:[%s10053_s1] sm:$0xff]  ;;  %vm599_vm0 = vcmask 261120   ;;  %vm3882_vm1 = vcmask 1041408   ;;  %s323_s27 = sand.u32 1, %s7907_s10  }
  0x14   : > { %714 = vmatpush.bf16.msra.mxu0 %v7470_v0  ;;  %s5451_s16 = scalar_lea.hbm %s10061_s9, %s7988_s13  ;;  %s5443_s24 = scalar_lea.sflag [#allocation6], %s323_s27 }
  0x15   : > { %s326_s25 = scalar_select %p325_p10, %s7988_s13, 1 }
  0x16   : > { %s5455_s23 = sshll.u32 %s5451_s16, 4  ;;  %s7873_s14 = scalar_lea.hbm %s10061_s9, 2  ;;  %s5456_s23 = int_to_ptr.hbm [resolvable:$true] %s5455_s23 }
  0x17   : > { %s7807_s26 = smul.u32 288, %s326_s25  ;;  %s7867_s25 = sshra.s32 %s5456_s23, 4  ;;  %s7868_s25 = int_to_ptr.hbm [resolvable:$true] %s7867_s25 }
  0x18   : > { %715 = vmatpush.bf16.msra.mxu0 %v7469_v1  ;;  %p7874_p0 = scmp.lt.s32.totalorder %s7868_s25, %s10061_s9 }
  0x19   : > { %s8026_s29 = scalar_lea.vmem %s10052_s0, %s7807_s26  ;;  %s7869_s26 = scalar_lea.hbm %s7868_s25, 1 }
  0x1a   : > { %v7433_v2 = vld [vmem:[%s8026_s29] sm:$0xff]  ;;  %v7434_v3 = vld [vmem:[%s8026_s29 + $0x8] sm:$0xff]  ;;  %v7435_v4 = vld [vmem:[%s8026_s29 + $0x10] sm:$0xff]  ;;  %p7870_p11 = scmp.ne.s32.totalorder %s7868_s25, %s7869_s26  ;;  %p7875_p1 = scmp.lt.s32.totalorder %s7873_s14, %s7869_s26 }
  0x1b   : > { %5667 = vmatmul.msk.bf16.vlgmr.msra.gmra.mxu0 %vm599_vm0, %v7433_v2  ;;  %v7436_v5 = vld [vmem:[%s8026_s29 + $0x18] sm:$0xff]  ;;  %v7437_v6 = vld [vmem:[%s8026_s29 + $0x20] sm:$0xff]  ;;  %v7438_v7 = vld [vmem:[%s8026_s29 + $0x28] sm:$0xff] }
  0x1c   : > { %v7439_v8 = vld [vmem:[%s8026_s29 + $0x30] sm:$0xff]  ;;  %v7440_v9 = vld [vmem:[%s8026_s29 + $0x38] sm:$0xff]  ;;  %v7441_v10 = vld [vmem:[%s8026_s29 + $0x40] sm:$0xff]  ;;  %p7871_p12 = pnand %p7870_p11, %p8005_p5  ;;  %p7876_p2 = por %p7875_p1, %p7874_p0 }
  0x1d   : > { %v7442_v13 = vld [vmem:[%s8026_s29 + $0x48] sm:$0xff]  ;;  %v7443_v16 = vld [vmem:[%s8026_s29 + $0x50] sm:$0xff]  ;;  %v7444_v19 = vld [vmem:[%s8026_s29 + $0x58] sm:$0xff] }
  0x1e   : > { %v7445_v22 = vld [vmem:[%s8026_s29 + $0x60] sm:$0xff]  ;;  %v7446_v25 = vld [vmem:[%s8026_s29 + $0x68] sm:$0xff]  ;;  %v7447_v28 = vld [vmem:[%s8026_s29 + $0x70] sm:$0xff]  ;;  %p7872_p13 = pneg %p7871_p12 }
  0x1f   : > { %v7448_v31 = vld [vmem:[%s8026_s29 + $0x78] sm:$0xff]  ;;  %v7449_v34 = vld [vmem:[%s8026_s29 + $0x80] sm:$0xff]  ;;  %v7450_v37 = vld [vmem:[%s8026_s29 + $0x88] sm:$0xff] }
  0x20   : > { %v7451_v40 = vld [vmem:[%s8026_s29 + $0x90] sm:$0xff]  ;;  %v7452_v43 = vld [vmem:[%s8026_s29 + $0x98] sm:$0xff]  ;;  %v7453_v46 = vld [vmem:[%s8026_s29 + $0xa0] sm:$0xff]  ;;  %p7877_p3 = pnand %p7876_p2, %p7872_p13 }
  0x21   : > { %v7454_v49 = vld [vmem:[%s8026_s29 + $0xa8] sm:$0xff]  ;;  %v7455_v52 = vld [vmem:[%s8026_s29 + $0xb0] sm:$0xff]  ;;  %v7456_v55 = vld [vmem:[%s8026_s29 + $0xb8] sm:$0xff] }
  0x22   : > { %v7457_v58 = vld [vmem:[%s8026_s29 + $0xc0] sm:$0xff]  ;;  %v7458_v61 = vld [vmem:[%s8026_s29 + $0xc8] sm:$0xff]  ;;  %v7459_v0 = vld [vmem:[%s8026_s29 + $0xd0] sm:$0xff] }
  0x2b   : > { %5668 = vmatmul.msk.bf16.gmra.mxu0 %vm599_vm0, %v7434_v3  ;;  %v7460_v3 = vld [vmem:[%s8026_s29 + $0xd8] sm:$0xff] }
  0x3b   : > { %5669 = vmatmul.msk.bf16.gmra.mxu0 %vm599_vm0, %v7435_v4 }
  0x4b   : > { %5670 = vmatmul.msk.bf16.gmra.mxu0 %vm599_vm0, %v7436_v5 }
  0x5b   : > { %5671 = vmatmul.msk.bf16.gmra.mxu0 %vm599_vm0, %v7437_v6  ;;  %v7461_v6 = vld [vmem:[%s8026_s29 + $0xe0] sm:$0xff] }
  0x6b   : > { %5672 = vmatmul.msk.bf16.gmra.mxu0 %vm599_vm0, %v7438_v7 }
  0x7b   : > { %5673 = vmatmul.msk.bf16.gmra.mxu0 %vm599_vm0, %v7439_v8 }
  0x8b   : > { %5674 = vmatmul.msk.bf16.gmra.mxu0 %vm599_vm0, %v7440_v9  ;;  %v7462_v9 = vld [vmem:[%s8026_s29 + $0xe8] sm:$0xff] }
  0x98   : > { %v8045_v11 = vpop.f32.mrf.mxu0 }
  0x9b   : > { %5675 = vmatmul.msk.bf16.gmra.mxu0 %vm599_vm0, %v7441_v10 }
  0xa0   : > { %v8048_v12 = vpop.f32.mrf.mxu0 }
  0xa8   : > { %v8051_v14 = vpop.f32.mrf.mxu0 }
  0xab   : > { %5676 = vmatmul.msk.bf16.gmra.mxu0 %vm599_vm0, %v7442_v13 }
  0xb0   : > { %v8054_v15 = vpop.f32.mrf.mxu0 }
  0xb8   : > { %v8057_v17 = vpop.f32.mrf.mxu0 }
  0xbb   : > { %5677 = vmatmul.msk.bf16.gmra.mxu0 %vm599_vm0, %v7443_v16  ;;  %v7463_v16 = vld [vmem:[%s8026_s29 + $0xf0] sm:$0xff] }
  0xc0   : > { %v8060_v18 = vpop.f32.mrf.mxu0 }
  0xc8   : > { %v8063_v20 = vpop.f32.mrf.mxu0 }
  0xcb   : > { %5678 = vmatmul.msk.bf16.gmra.mxu0 %vm599_vm0, %v7444_v19 }
  0xd0   : > { %v8066_v21 = vpop.f32.mrf.mxu0 }
  0xd8   : > { %v8069_v23 = vpop.f32.mrf.mxu0 }
  0xdb   : > { %5679 = vmatmul.msk.bf16.gmra.mxu0 %vm599_vm0, %v7445_v22 }
  0xe0   : > { %v8072_v24 = vpop.f32.mrf.mxu0 }
  0xe8   : > { %v8075_v26 = vpop.f32.mrf.mxu0 }
  0xeb   : > { %5680 = vmatmul.msk.bf16.gmra.mxu0 %vm599_vm0, %v7446_v25  ;;  %v7464_v25 = vld [vmem:[%s8026_s29 + $0xf8] sm:$0xff] }
  0xf0   : > { %v8078_v27 = vpop.f32.mrf.mxu0 }
  0xf8   : > { %v8081_v29 = vpop.f32.mrf.mxu0 }
  0xfb   : > { %5681 = vmatmul.msk.bf16.gmra.mxu0 %vm599_vm0, %v7447_v28 }
 0x100   : > { %v8084_v30 = vpop.f32.mrf.mxu0 }
 0x108   : > { %v8087_v32 = vpop.f32.mrf.mxu0 }
 0x10b   : > { %5682 = vmatmul.msk.bf16.gmra.mxu0 %vm599_vm0, %v7448_v31 }
 0x110   : > { %v8090_v33 = vpop.f32.mrf.mxu0 }
 0x118   : > { %v8093_v35 = vpop.f32.mrf.mxu0 }
 0x11b   : > { %5683 = vmatmul.msk.bf16.gmra.mxu0 %vm599_vm0, %v7449_v34  ;;  %v7465_v34 = vld [vmem:[%s8026_s29 + $0x100] sm:$0xff] }
 0x120   : > { %v8096_v36 = vpop.f32.mrf.mxu0 }
 0x121   : > { %10066 = vst [vmem:[#allocation8_spill] sm:$0xff] %v8096_v36 }
 0x128   : > { %v8099_v38 = vpop.f32.mrf.mxu0 }
 0x12b   : > { %5684 = vmatmul.msk.bf16.gmra.mxu0 %vm599_vm0, %v7450_v37 }
 0x130   : > { %v8102_v39 = vpop.f32.mrf.mxu0 }
 0x138   : > { %v8105_v41 = vpop.f32.mrf.mxu0 }
 0x13b   : > { %5685 = vmatmul.msk.bf16.gmra.mxu0 %vm599_vm0, %v7451_v40 }
 0x140   : > { %v8108_v42 = vpop.f32.mrf.mxu0 }
 0x148   : > { %v8111_v44 = vpop.f32.mrf.mxu0 }
 0x14b   : > { %5686 = vmatmul.msk.bf16.gmra.mxu0 %vm599_vm0, %v7452_v43  ;;  %v7466_v43 = vld [vmem:[%s8026_s29 + $0x108] sm:$0xff] }
 0x150   : > { %v8114_v45 = vpop.f32.mrf.mxu0 }
 0x158   : > { %v8117_v47 = vpop.f32.mrf.mxu0 }
 0x15b   : > { %5687 = vmatmul.msk.bf16.gmra.mxu0 %vm599_vm0, %v7453_v46 }
 0x160   : > { %v8120_v48 = vpop.f32.mrf.mxu0 }
 0x168   : > { %v8123_v50 = vpop.f32.mrf.mxu0 }
 0x16b   : > { %5688 = vmatmul.msk.bf16.gmra.mxu0 %vm599_vm0, %v7454_v49  ;;  %v7486_v49 = vld [vmem:[%s10055_s3 + $0x78] sm:$0xff] }
 0x16c   : > { %1131 = vmatpush.bf16.msra.mxu1 %v7486_v49  ;;  %v7491_v49 = vld [vmem:[%s10055_s3 + $0xa0] sm:$0xff] }
 0x170   : > { %v8126_v51 = vpop.f32.mrf.mxu0 }
 0x178   : > { %v8129_v53 = vpop.f32.mrf.mxu0 }
 0x17b   : > { %5689 = vmatmul.msk.bf16.gmra.mxu0 %vm599_vm0, %v7455_v52  ;;  %v7478_v52 = vld [vmem:[%s10055_s3 + $0x38] sm:$0xff] }
 0x17c   : > { %1208 = vmatpush.bf16.msra.mxu2 %v7478_v52 }
 0x180   : > { %v8132_v54 = vpop.f32.mrf.mxu0 }
 0x188   : > { %v8135_v56 = vpop.f32.mrf.mxu0 }
 0x18b   : > { %5690 = vmatmul.msk.bf16.gmra.mxu0 %vm599_vm0, %v7456_v55  ;;  %v7494_v55 = vld [vmem:[%s10055_s3 + $0xb8] sm:$0xff] }
 0x18c   : > { %1314 = vmatpush.bf16.msra.mxu3 %v7494_v55  ;;  %v7482_v55 = vld [vmem:[%s10055_s3 + $0x58] sm:$0xff] }
 0x190   : > { %v8138_v57 = vpop.f32.mrf.mxu0 }
 0x198   : > { %v8141_v59 = vpop.f32.mrf.mxu0 }
 0x19b   : > { %5691 = vmatmul.msk.bf16.gmra.mxu0 %vm599_vm0, %v7457_v58  ;;  %v7485_v58 = vld [vmem:[%s10055_s3 + $0x70] sm:$0xff] }
 0x19c   : > { %1132 = vmatpush.bf16.msra.mxu1 %v7485_v58  ;;  %v7474_v58 = vld [vmem:[%s10055_s3 + $0x18] sm:$0xff] }
 0x1a0   : > { %v8144_v60 = vpop.f32.mrf.mxu0 }
 0x1a8   : > { %v8147_v62 = vpop.f32.mrf.mxu0 }
 0x1ab   : > { %5692 = vmatmul.msk.bf16.gmra.mxu0 %vm599_vm0, %v7458_v61  ;;  %v7477_v61 = vld [vmem:[%s10055_s3 + $0x30] sm:$0xff] }
 0x1ac   : > { %1209 = vmatpush.bf16.msra.mxu2 %v7477_v61  ;;  %v7490_v61 = vld [vmem:[%s10055_s3 + $0x98] sm:$0xff] }
 0x1b0   : > { %v8150_v63 = vpop.f32.mrf.mxu0 }
 0x1b1   : > { %10067 = vst [vmem:[#allocation9_spill] sm:$0xff] %v8150_v63 }
 0x1b8   : > { %v8153_v1 = vpop.f32.mrf.mxu0 }
 0x1bb   : > { %5693 = vmatmul.msk.bf16.gmra.mxu0 %vm599_vm0, %v7459_v0  ;;  %v7493_v0 = vld [vmem:[%s10055_s3 + $0xb0] sm:$0xff] }
 0x1bc   : > { %1315 = vmatpush.bf16.msra.mxu3 %v7493_v0  ;;  %v7481_v0 = vld [vmem:[%s10055_s3 + $0x50] sm:$0xff] }
 0x1c0   : > { %v8156_v2 = vpop.f32.mrf.mxu0 }
 0x1c8   : > { %v8159_v4 = vpop.f32.mrf.mxu0 }
 0x1cb   : > { %5694 = vmatmul.msk.bf16.gmra.mxu0 %vm599_vm0, %v7460_v3 }
 0x1d0   : > { %v8162_v5 = vpop.f32.mrf.mxu0 }
 0x1d8   : > { %v8165_v7 = vpop.f32.mrf.mxu0 }
 0x1db   : > { %5695 = vmatmul.msk.bf16.gmra.mxu0 %vm599_vm0, %v7461_v6  ;;  %v7484_v6 = vld [vmem:[%s10055_s3 + $0x68] sm:$0xff] }
 0x1dc   : > { %1133 = vmatpush.bf16.msra.mxu1 %v7484_v6  ;;  %v7473_v6 = vld [vmem:[%s10055_s3 + $0x10] sm:$0xff] }
 0x1e0   : > { %v8168_v8 = vpop.f32.mrf.mxu0 }
 0x1e8   : > { %v8171_v10 = vpop.f32.mrf.mxu0 }
 0x1eb   : > { %5696 = vmatmul.msk.bf16.gmra.mxu0 %vm599_vm0, %v7462_v9  ;;  %v7476_v9 = vld [vmem:[%s10055_s3 + $0x28] sm:$0xff] }
 0x1ec   : > { %1210 = vmatpush.bf16.msra.mxu2 %v7476_v9  ;;  %v7489_v9 = vld [vmem:[%s10055_s3 + $0x90] sm:$0xff] }
 0x1f0   : > { %v8174_v13 = vpop.f32.mrf.mxu0 }
 0x1f8   : > { %v8177_v19 = vpop.f32.mrf.mxu0 }
 0x1fb   : > { %5697 = vmatmul.msk.bf16.gmra.mxu0 %vm599_vm0, %v7463_v16  ;;  %v7492_v16 = vld [vmem:[%s10055_s3 + $0xa8] sm:$0xff] }
 0x1fc   : > { %1316 = vmatpush.bf16.msra.mxu3 %v7492_v16 }
 0x200   : > { %v8180_v22 = vpop.f32.mrf.mxu0  ;;  %1317 = vmatpush.bf16.msra.mxu3 %v7491_v49  ;;  %v7468_v49 = vld [vmem:[%s8026_s29 + $0x118] sm:$0xff] }
 0x204   : > { %1318 = vmatpush.bf16.msra.mxu3 %v7490_v61  ;;  %v7487_v61 = vld [vmem:[%s10055_s3 + $0x80] sm:$0xff] }
 0x208   : > { %v8183_v28 = vpop.f32.mrf.mxu0  ;;  %1319 = vmatpush.bf16.msra.mxu3 %v7489_v9 }
 0x20b   : > { %5698 = vmatmul.msk.bf16.gmra.mxu0 %vm599_vm0, %v7464_v25  ;;  %v7467_v25 = vld [vmem:[%s8026_s29 + $0x110] sm:$0xff]  ;;  %s324_s29 = scalar_lea.vmem [#allocation5], %s323_s27 }
 0x20c   : > { %s5453_s22 = sshll.u32 %s324_s29, 4  ;;  %s5454_s22 = int_to_ptr.vmem [resolvable:$true] %s5453_s22 }
 0x210   : > { %v8186_v31 = vpop.f32.mrf.mxu0 }
 0x218   : > { %v8189_v37 = vpop.f32.mrf.mxu0 }
 0x21b   : > { %5699 = vmatmul.msk.bf16.gmra.mxu0 %vm599_vm0, %v7465_v34  ;;  %v7483_v34 = vld [vmem:[%s10055_s3 + $0x60] sm:$0xff] }
 0x21c   : > { %1134 = vmatpush.bf16.msra.mxu1 %v7483_v34  ;;  %v7472_v34 = vld [vmem:[%s10055_s3 + $0x8] sm:$0xff] }
 0x220   : > { %v8192_v40 = vpop.f32.mrf.mxu0  ;;  %1135 = vmatpush.bf16.msra.mxu1 %v7482_v55  ;;  %v7479_v55 = vld [vmem:[%s10055_s3 + $0x40] sm:$0xff] }
 0x224   : > { %1136 = vmatpush.bf16.msra.mxu1 %v7481_v0 }
 0x228   : > { %v8195_v46 = vpop.f32.mrf.mxu0 }
 0x22b   : > { %5700 = vmatmul.msk.bf16.gmra.mxu0 %vm599_vm0, %v7466_v43  ;;  %v7475_v43 = vld [vmem:[%s10055_s3 + $0x20] sm:$0xff] }
 0x22c   : > { %1211 = vmatpush.bf16.msra.mxu2 %v7475_v43  ;;  %v7488_v43 = vld [vmem:[%s10055_s3 + $0x88] sm:$0xff] }
 0x22d   : > { %1320 = vmatpush.bf16.msra.mxu3 %v7488_v43 }
 0x230   : > { %v8216_v3 = vpop.f32.mrf.mxu0  ;;  %1212 = vmatpush.bf16.msra.mxu2 %v7474_v58  ;;  %v7471_v58 = vld [vmem:[%s10055_s3] sm:$0xff] }
 0x231   : > { %1321 = vmatpush.bf16.msra.mxu3 %v7487_v61 }
 0x234   : > { %1213 = vmatpush.bf16.msra.mxu2 %v7473_v6  ;;  %v897_v6 = vmax.f32 %v8045_v11, %v8099_v38  ;;  %v898_v11 = vmax.f32 %v8048_v12, %v8102_v39 }
 0x238   : > { %v8237_v52 = vpop.f32.mrf.mxu0  ;;  %1214 = vmatpush.bf16.msra.mxu2 %v7472_v34 }
 0x23b   : > { %5701 = vmatmul.msk.bf16.gmra.mxu0 %vm599_vm0, %v7467_v25  ;;  %v7480_v25 = vld [vmem:[%s10055_s3 + $0x48] sm:$0xff] }
 0x23c   : > { %1137 = vmatpush.bf16.msra.mxu1 %v7480_v25  ;;  %v8285_v25 = vld [vmem:[%s10054_s2] ss:$0 sm:$0xff]  ;;  %1215 = vmatpush.bf16.msra.mxu2 %v7471_v58  ;;  %v899_v58 = vmax.f32 %v8051_v14, %v8105_v41 }
 0x240   : > { %v8258_v16 = vpop.f32.mrf.mxu0  ;;  %1138 = vmatpush.bf16.msra.mxu1 %v7479_v55 }
 0x241   : > { %10068 = vst [vmem:[#allocation10_spill] sm:$0xff] %v8258_v16 }
 0x248   : > { %v852_v0 = vpop.f32.mrf.mxu0 }
 0x249   : > { %v915_v9 = vmax.f32 %v8153_v1, %v852_v0 }
 0x24b   : > { %v933_v34 = vmax.f32 %v897_v6, %v915_v9  ;;  %5702 = vmatmul.msk.bf16.gmra.mxu0 %vm599_vm0, %v7468_v49 }
 0x24d   : > { %v955_v43 = vadd.f32 %v8285_v25, %v933_v34  ;;  %v901_v34 = vmax.f32 %v8057_v17, %v8111_v44 }
 0x24f   : > { %v973_v16 = vmax.f32 %v955_v43, 0.0 }
 0x250   : > { %v854_v36 = vpop.f32.mrf.mxu0 }
 0x251   : > { %991 = vst [vmem:[#allocation2] sm:$0xff] %v973_v16  ;;  %v916_v38 = vmax.f32 %v8156_v2, %v854_v36  ;;  %v900_v36 = vmax.f32 %v8054_v15, %v8108_v42 }
 0x253   : > { %v934_v1 = vmax.f32 %v898_v11, %v916_v38 }
 0x255   : > { %v956_v0 = vadd.f32 %v8285_v25, %v934_v1 }
 0x257   : > { %v974_v63 = vmax.f32 %v956_v0, 0.0 }
 0x258   : > { %v857_v55 = vpop.f32.mrf.mxu0 }
 0x259   : > { %992 = vst [vmem:[#allocation2 + $0x8] sm:$0xf] %v974_v63  ;;  %v917_v49 = vmax.f32 %v8159_v4, %v857_v55 }
 0x25a   : > { %994 = vst [vmem:[#allocation2 + $0xc] sm:$0xf0] %v974_v63 }
 0x25b   : > { %v935_v61 = vmax.f32 %v899_v58, %v917_v49 }
 0x25d   : > { %v8297_v6 = vadd.f32 %v8285_v25, %v935_v61 }
 0x25f   : > { %v975_v12 = vmax.f32 %v8297_v6, 0.0  ;;  %v7533_v6 = vld [vmem:[%s10055_s3 + $0x1f0] sm:$0xff] }
 0x260   : > { %v859_v39 = vpop.f32.mrf.mxu0  ;;  %v1054_v63 = vld [vmem:[#allocation2 + $0x1] sm:$0xff] }
 0x261   : > { %995 = vst [vmem:[#allocation2 + $0x14] sm:$0xff] %v975_v12  ;;  %v918_v2 = vmax.f32 %v8162_v5, %v859_v39  ;;  %v1237_v9 = vld [vmem:[#allocation2 + $0x2] sm:$0xff] }
 0x263   : > { %v936_v14 = vmax.f32 %v900_v36, %v918_v2 }
 0x265   : > { %v958_v41 = vadd.f32 %v8285_v25, %v936_v14 }
 0x267   : > { %v8306_v4 = vmax.f32 %v958_v41, 0.0 }
 0x268   : > { %v862_v43 = vpop.f32.mrf.mxu0  ;;  %v8310_v11 = vld [vmem:[#allocation2 + $0x11] sm:$0xff] }
 0x269   : > { %v8312_v38 = vld [vmem:[#allocation2 + $0x10] sm:$0xff]  ;;  %997 = vst [vmem:[#allocation2 + $0x20] sm:$0xff] %v8306_v4  ;;  %v919_v42 = vmax.f32 %v8165_v7, %v862_v43  ;;  %v1062_v5 = vpack.c.bf16 %v8310_v11, %v1054_v63  ;;  %v902_v7 = vmax.f32 %v8060_v18, %v8114_v45  ;;  %v903_v63 = vmax.f32 %v8063_v20, %v8117_v47 }
 0x26a   : > { %v8314_v15 = vld [vmem:[#allocation2 + $0x12] sm:$0xff]  ;;  %v1034_v1 = vpack.c.bf16 %v8312_v38, %v973_v16  ;;  %v1587_v17 = vpack.c.bf16 %v8306_v4, %v8312_v38  ;;  %v7524_v38 = vld [vmem:[%s10055_s3 + $0x1a8] sm:$0xff] }
 0x26b   : > { %v1245_v0 = vpack.c.bf16 %v8314_v15, %v1237_v9  ;;  %v937_v44 = vmax.f32 %v901_v34, %v919_v42  ;;  %1139 = vmatmul.bf16.vlgmr.msra.gmra.mxu1 %v1062_v5  ;;  %v904_v42 = vmax.f32 %v8066_v21, %v8120_v48  ;;  %v7502_v48 = vld [vmem:[%s10055_s3 + $0xf8] sm:$0xff] }
 0x26c   : > { %1216 = vmatmul.bf16.vlgmr.msra.gmra.mxu2 %v1034_v1  ;;  %1428 = vmatpush.bf16.msrb.mxu1 %v7502_v48  ;;  %v7499_v48 = vld [vmem:[%s10055_s3 + $0xe0] sm:$0xff] }
 0x26d   : > { %1322 = vmatmul.bf16.vlgmr.msra.gmra.mxu3 %v1245_v0  ;;  %v959_v55 = vadd.f32 %v8285_v25, %v937_v44 }
 0x26f   : > { %v977_v58 = vmax.f32 %v959_v55, 0.0  ;;  %v1351_v55 = vld [vmem:[#allocation2 + $0x3] sm:$0xff] }
 0x270   : > { %v864_v49 = vpop.f32.mrf.mxu0 }
 0x271   : > { %998 = vst [vmem:[#allocation2 + $0x28] sm:$0xf] %v977_v58  ;;  %v920_v61 = vmax.f32 %v8168_v8, %v864_v49  ;;  %v7518_v49 = vld [vmem:[%s10055_s3 + $0x178] sm:$0xff] }
 0x272   : > { %1000 = vst [vmem:[#allocation2 + $0x2c] sm:$0xf0] %v977_v58  ;;  %1656 = vmatpush.bf16.msrb.mxu3 %v7518_v49  ;;  %v906_v49 = vmax.f32 %v8072_v24, %v8126_v51 }
 0x273   : > { %v938_v16 = vmax.f32 %v902_v7, %v920_v61 }
 0x275   : > { %v8328_v39 = vadd.f32 %v8285_v25, %v938_v16  ;;  %v7501_v16 = vld [vmem:[%s10055_s3 + $0xf0] sm:$0xff] }
 0x276   : > { %1429 = vmatpush.bf16.msrb.mxu1 %v7501_v16 }
 0x277   : > { %v978_v36 = vmax.f32 %v8328_v39, 0.0  ;;  %v7538_v39 = vld [vmem:[%s10055_s3 + $0x218] sm:$0xff] }
 0x278   : > { %v867_v2 = vpop.f32.mrf.mxu0  ;;  %v8331_v14 = vld [vmem:[#allocation2 + $0x21] sm:$0xff] }
 0x279   : > { %v8333_v41 = vld [vmem:[#allocation2 + $0x22] sm:$0xff]  ;;  %1001 = vst [vmem:[#allocation2 + $0x34] sm:$0xff] %v978_v36  ;;  %v921_v18 = vmax.f32 %v8171_v10, %v867_v2  ;;  %v7509_v2 = vld [vmem:[%s10055_s3 + $0x130] sm:$0xff] }
 0x27b   : > { %v939_v9 = vmax.f32 %v903_v63, %v921_v18  ;;  %v7517_v63 = vld [vmem:[%s10055_s3 + $0x170] sm:$0xff] }
 0x27c   : > { %1657 = vmatpush.bf16.msrb.mxu3 %v7517_v63 }
 0x27d   : > { %v961_v34 = vadd.f32 %v8285_v25, %v939_v9 }
 0x27f   : > { %v8345_v43 = vmax.f32 %v961_v34, 0.0 }
 0x280   : > { %v869_v20 = vpop.f32.mrf.mxu0  ;;  %v8349_v47 = vld [vmem:[#allocation2 + $0x31] sm:$0xff] }
 0x281   : > { %v8351_v5 = vld [vmem:[#allocation2 + $0x30] sm:$0xff]  ;;  %1003 = vst [vmem:[#allocation2 + $0x40] sm:$0xff] %v8345_v43  ;;  %v922_v1 = vmax.f32 %v8174_v13, %v869_v20  ;;  %v1063_v0 = vpack.c.bf16 %v8349_v47, %v8331_v14  ;;  %v7510_v13 = vld [vmem:[%s10055_s3 + $0x138] sm:$0xff] }
 0x282   : > { %v8353_v10 = vld [vmem:[#allocation2 + $0x32] sm:$0xff]  ;;  %v1035_v44 = vpack.c.bf16 %v8351_v5, %v8306_v4  ;;  %1542 = vmatpush.bf16.msrb.mxu2 %v7510_v13  ;;  %v7515_v13 = vld [vmem:[%s10055_s3 + $0x160] sm:$0xff] }
 0x283   : > { %v1246_v21 = vpack.c.bf16 %v8353_v10, %v8333_v41  ;;  %v940_v58 = vmax.f32 %v904_v42, %v922_v1  ;;  %1144 = vmatmul.bf16.gmra.mxu1 %v1063_v0  ;;  %v8384_v9 = vld [vmem:[#allocation2 + $0x30] sm:$0xff]  ;;  %v905_v42 = vmax.f32 %v8069_v23, %v8123_v50  ;;  %v7516_v23 = vld [vmem:[%s10055_s3 + $0x168] sm:$0xff] }
 0x284   : > { %1221 = vmatmul.bf16.gmra.mxu2 %v1035_v44  ;;  %v7500_v44 = vld [vmem:[%s10055_s3 + $0xe8] sm:$0xff]  ;;  %1658 = vmatpush.bf16.msrb.mxu3 %v7516_v23  ;;  %v8432_v51 = vld [vmem:[#allocation2 + $0x33] sm:$0xff] }
 0x285   : > { %1327 = vmatmul.bf16.gmra.mxu3 %v1246_v21  ;;  %v962_v7 = vadd.f32 %v8285_v25, %v940_v58  ;;  %v7508_v21 = vld [vmem:[%s10055_s3 + $0x128] sm:$0xff]  ;;  %1430 = vmatpush.bf16.msrb.mxu1 %v7500_v44  ;;  %v7507_v58 = vld [vmem:[%s10055_s3 + $0x120] sm:$0xff]  ;;  %v7498_v44 = vld [vmem:[%s10055_s3 + $0xd8] sm:$0xff] }
 0x286   : > { %1543 = vmatpush.bf16.msrb.mxu2 %v7509_v2  ;;  %v7514_v23 = vld [vmem:[%s10055_s3 + $0x158] sm:$0xff] }
 0x287   : > { %v980_v61 = vmax.f32 %v962_v7, 0.0 }
 0x288   : > { %v872_v18 = vpop.f32.mrf.mxu0  ;;  %v8386_v34 = vld [vmem:[#allocation2 + $0x40] sm:$0xff]  ;;  %1659 = vmatpush.bf16.msrb.mxu3 %v7515_v13 }
 0x289   : > { %1004 = vst [vmem:[#allocation2 + $0x48] sm:$0xf] %v980_v61  ;;  %v923_v20 = vmax.f32 %v8177_v19, %v872_v18  ;;  %1431 = vmatpush.bf16.msrb.mxu1 %v7499_v48 }
 0x28a   : > { %1006 = vst [vmem:[#allocation2 + $0x4c] sm:$0xf0] %v980_v61  ;;  %1544 = vmatpush.bf16.msrb.mxu2 %v7508_v21  ;;  %v7506_v21 = vld [vmem:[%s10055_s3 + $0x118] sm:$0xff] }
 0x28b   : > { %v941_v0 = vmax.f32 %v905_v42, %v923_v20  ;;  %v8428_v42 = vld [vmem:[#allocation2 + $0x31] sm:$0xff] }
 0x28c   : > { %1660 = vmatpush.bf16.msrb.mxu3 %v7514_v23 }
 0x28d   : > { %v8403_v50 = vadd.f32 %v8285_v25, %v941_v0  ;;  %1432 = vmatpush.bf16.msrb.mxu1 %v7498_v44 }
 0x28e   : > { %1545 = vmatpush.bf16.msrb.mxu2 %v7507_v58 }
 0x28f   : > { %v10063_v19 = vmax.f32 %v8403_v50, 0.0 }
 0x290   : > { %v874_v7 = vpop.f32.mrf.mxu0  ;;  %v8417_v61 = vld [vmem:[#allocation2 + $0x41] sm:$0xff] }
 0x291   : > { %v8419_v16 = vld [vmem:[#allocation2 + $0x42] sm:$0xff]  ;;  %1007 = vst [vmem:[#allocation2 + $0x54] sm:$0xff] %v10063_v19  ;;  %v924_v2 = vmax.f32 %v8180_v22, %v874_v7  ;;  %v7505_v7 = vld [vmem:[%s10055_s3 + $0x110] sm:$0xff] }
 0x292   : > { %v8430_v24 = vld [vmem:[#allocation2 + $0x41] sm:$0xff]  ;;  %1546 = vmatpush.bf16.msrb.mxu2 %v7506_v21 }
 0x293   : > { %v8434_v20 = vld [vmem:[#allocation2 + $0x43] sm:$0xff]  ;;  %v942_v0 = vmax.f32 %v906_v49, %v924_v2  ;;  %v7497_v49 = vld [vmem:[%s10055_s3 + $0xd0] sm:$0xff]  ;;  %v907_v2 = vmax.f32 %v8075_v26, %v8129_v53 }
 0x294   : > { %v7513_v53 = vld [vmem:[%s10055_s3 + $0x150] sm:$0xff]  ;;  %1433 = vmatpush.bf16.msrb.mxu1 %v7497_v49  ;;  %v7512_v49 = vld [vmem:[%s10055_s3 + $0x148] sm:$0xff] }
 0x295   : > { %v964_v58 = vadd.f32 %v8285_v25, %v942_v0  ;;  %1661 = vmatpush.bf16.msrb.mxu3 %v7513_v53 }
 0x296   : > { %1547 = vmatpush.bf16.msrb.mxu2 %v7505_v7 }
 0x297   : > { %v8450_v13 = vmax.f32 %v964_v58, 0.0 }
 0x298   : > { %v877_v22 = vpop.f32.mrf.mxu0  ;;  %v8460_v48 = vld [vmem:[#allocation2 + $0x51] sm:$0xff] }
 0x299   : > { %v8462_v0 = vld [vmem:[#allocation2 + $0x50] sm:$0xff]  ;;  %1009 = vst [vmem:[#allocation2 + $0x60] sm:$0xff] %v8450_v13  ;;  %v925_v21 = vmax.f32 %v8183_v28, %v877_v22  ;;  %v1064_v23 = vpack.c.bf16 %v8460_v48, %v8417_v61  ;;  %v7496_v28 = vld [vmem:[%s10055_s3 + $0xc8] sm:$0xff]  ;;  %1662 = vmatpush.bf16.msrb.mxu3 %v7512_v49 }
 0x29a   : > { %v8464_v44 = vld [vmem:[#allocation2 + $0x52] sm:$0xff]  ;;  %v1036_v58 = vpack.c.bf16 %v8462_v0, %v8345_v43  ;;  %v7504_v22 = vld [vmem:[%s10055_s3 + $0x108] sm:$0xff]  ;;  %1434 = vmatpush.bf16.msrb.mxu1 %v7496_v28 }
 0x29b   : > { %v1247_v26 = vpack.c.bf16 %v8464_v44, %v8419_v16  ;;  %v943_v18 = vmax.f32 %v907_v2, %v925_v21  ;;  %1149 = vmatmul.bf16.gmra.mxu1 %v1064_v23  ;;  %1548 = vmatpush.bf16.msrb.mxu2 %v7504_v22  ;;  %v7495_v2 = vld [vmem:[%s10055_s3 + $0xc0] sm:$0xff] }
 0x29c   : > { %1226 = vmatmul.bf16.gmra.mxu2 %v1036_v58  ;;  %v7503_v21 = vld [vmem:[%s10055_s3 + $0x100] sm:$0xff]  ;;  %v8495_v58 = vld [vmem:[#allocation2 + $0x50] sm:$0xff] }
 0x29d   : > { %1332 = vmatmul.bf16.gmra.mxu3 %v1247_v26  ;;  %v965_v63 = vadd.f32 %v8285_v25, %v943_v18  ;;  %v908_v26 = vmax.f32 %v8078_v27, %v8132_v54 }
 0x29e   : > { %1435 = vmatpush.bf16.msrb.mxu1 %v7495_v2 }
 0x29f   : > { %v983_v7 = vmax.f32 %v965_v63, 0.0  ;;  %v7511_v63 = vld [vmem:[%s10055_s3 + $0x140] sm:$0xff]  ;;  %1549 = vmatpush.bf16.msrb.mxu2 %v7503_v21 }
 0x2a0   : > { %v879_v23 = vpop.f32.mrf.mxu0  ;;  %v8497_v18 = vld [vmem:[#allocation2 + $0x60] sm:$0xff]  ;;  %1663 = vmatpush.bf16.msrb.mxu3 %v7511_v63 }
 0x2a1   : > { %1010 = vst [vmem:[#allocation2 + $0x68] sm:$0xf] %v983_v7  ;;  %v926_v53 = vmax.f32 %v8186_v31, %v879_v23  ;;  %v909_v23 = vmax.f32 %v8081_v29, %v8135_v56 }
 0x2a2   : > { %1012 = vst [vmem:[#allocation2 + $0x6c] sm:$0xf0] %v983_v7 }
 0x2a3   : > { %v944_v22 = vmax.f32 %v908_v26, %v926_v53 }
 0x2a5   : > { %v8508_v8 = vadd.f32 %v8285_v25, %v944_v22  ;;  %v910_v22 = vmax.f32 %v8084_v30, %v8138_v57 }
 0x2a7   : > { %v10062_v27 = vmax.f32 %v8508_v8, 0.0 }
 0x2a8   : > { %v882_v54 = vpop.f32.mrf.mxu0  ;;  %v8511_v31 = vld [vmem:[#allocation2 + $0x61] sm:$0xff] }
 0x2a9   : > { %v8513_v49 = vld [vmem:[#allocation2 + $0x62] sm:$0xff]  ;;  %1013 = vst [vmem:[#allocation2 + $0x74] sm:$0xff] %v10062_v27  ;;  %v927_v7 = vmax.f32 %v8189_v37, %v882_v54 }
 0x2ab   : > { %v945_v26 = vmax.f32 %v909_v23, %v927_v7 }
 0x2ad   : > { %v967_v53 = vadd.f32 %v8285_v25, %v945_v26 }
 0x2af   : > { %v985_v63 = vmax.f32 %v967_v53, 0.0 }
 0x2b0   : > { %v884_v28 = vpop.f32.mrf.mxu0  ;;  %v8527_v29 = vld [vmem:[#allocation2 + $0x71] sm:$0xff] }
 0x2b1   : > { %v8529_v56 = vld [vmem:[#allocation2 + $0x70] sm:$0xff]  ;;  %1015 = vst [vmem:[#allocation2 + $0x80] sm:$0xff] %v985_v63  ;;  %v928_v37 = vmax.f32 %v8192_v40, %v884_v28  ;;  %v8536_v54 = vpack.c.bf16 %v8527_v29, %v8511_v31  ;;  %v8548_v40 = vld [vmem:[#allocation2 + $0x61] sm:$0xff] }
 0x2b2   : > { %v8531_v45 = vld [vmem:[#allocation2 + $0x72] sm:$0xff]  ;;  %v1037_v23 = vpack.c.bf16 %v8529_v56, %v8450_v13  ;;  %v8543_v57 = vpack.c.bf16 %v985_v63, %v8529_v56  ;;  %v8550_v28 = vld [vmem:[#allocation2 + $0x64] sm:$0xff] }
 0x2b3   : > { %v1248_v30 = vpack.c.bf16 %v8531_v45, %v8513_v49  ;;  %v8545_v7 = vld [vmem:[#allocation2 + $0x71] sm:$0xff]  ;;  %v946_v26 = vmax.f32 %v910_v22, %v928_v37  ;;  %1154 = vmatmul.bf16.gmra.mxu1 %v8536_v54  ;;  %v911_v37 = vmax.f32 %v8087_v32, %v8141_v59  ;;  %v912_v32 = vmax.f32 %v8090_v33, %v8144_v60 }
 0x2b4   : > { %1231 = vmatmul.bf16.gmra.mxu2 %v1037_v23  ;;  %v8552_v53 = vld [vmem:[#allocation2 + $0x74] sm:$0xff] }
 0x2b5   : > { %1337 = vmatmul.bf16.gmra.mxu3 %v1248_v30  ;;  %v968_v2 = vadd.f32 %v8285_v25, %v946_v26  ;;  %v7526_v30 = vld [vmem:[%s10055_s3 + $0x1b8] sm:$0xff]  ;;  %v1465_v26 = vld [vmem:[#allocation2 + $0x4] sm:$0xff]  ;;  %v7525_v33 = vld [vmem:[%s10055_s3 + $0x1b0] sm:$0xff] }
 0x2b6   : > { %1770 = vmatpush.bf16.msra.mxu1 %v7526_v30  ;;  %v8566_v63 = vld [vmem:[#allocation2 + $0x13] sm:$0xff] }
 0x2b7   : > { %v986_v27 = vmax.f32 %v968_v2, 0.0 }
 0x2b8   : > { %v887_v22 = vpop.f32.mrf.mxu0 }
 0x2b9   : > { %1016 = vst [vmem:[#allocation2 + $0x88] sm:$0xf] %v986_v27  ;;  %v929_v23 = vmax.f32 %v8195_v46, %v887_v22  ;;  %v1359_v46 = vpack.c.bf16 %v8566_v63, %v1351_v55 }
 0x2ba   : > { %1018 = vst [vmem:[#allocation2 + $0x8c] sm:$0xf0] %v986_v27  ;;  %v1473_v27 = vpack.c.bf16 %v975_v12, %v1465_v26  ;;  %1771 = vmatpush.bf16.msra.mxu1 %v7525_v33  ;;  %v7541_v12 = vld [vmem:[%s10055_s3 + $0x230] sm:$0xff]  ;;  %v7523_v26 = vld [vmem:[%s10055_s3 + $0x1a0] sm:$0xff] }
 0x2bb   : > { %v947_v1 = vmax.f32 %v911_v37, %v929_v23  ;;  %v7540_v37 = vld [vmem:[%s10055_s3 + $0x228] sm:$0xff] }
 0x2bd   : > { %v969_v21 = vadd.f32 %v8285_v25, %v947_v1  ;;  %v7534_v1 = vld [vmem:[%s10055_s3 + $0x1f8] sm:$0xff] }
 0x2be   : > { %1884 = vmatpush.bf16.msra.mxu2 %v7534_v1  ;;  %1772 = vmatpush.bf16.msra.mxu1 %v7524_v38  ;;  %v8621_v1 = vld [vmem:[#allocation2 + $0x23] sm:$0xff] }
 0x2bf   : > { %v987_v2 = vmax.f32 %v969_v21, 0.0  ;;  %v7542_v21 = vld [vmem:[%s10055_s3 + $0x238] sm:$0xff] }
 0x2c0   : > { %v889_v19 = vpop.f32.mrf.mxu0  ;;  %1998 = vmatpush.bf16.msra.mxu3 %v7542_v21  ;;  %v10071_v21 = vld [vmem:[#allocation10_spill] sm:$0xff] }
 0x2c1   : > { %1019 = vst [vmem:[#allocation2 + $0x94] sm:$0xff] %v987_v2  ;;  %v930_v59 = vmax.f32 %v8216_v3, %v889_v19  ;;  %v7532_v19 = vld [vmem:[%s10055_s3 + $0x1e8] sm:$0xff]  ;;  %v7531_v2 = vld [vmem:[%s10055_s3 + $0x1e0] sm:$0xff] }
 0x2c2   : > { %1885 = vmatpush.bf16.msra.mxu2 %v7533_v6  ;;  %1773 = vmatpush.bf16.msra.mxu1 %v7523_v26  ;;  %v7527_v26 = vld [vmem:[%s10055_s3 + $0x1c0] sm:$0xff] }
 0x2c3   : > { %v948_v22 = vmax.f32 %v912_v32, %v930_v59  ;;  %1436 = vmatmul.bf16.vlgmr.msrb.gmra.mxu1 %v1359_v46  ;;  %v7539_v32 = vld [vmem:[%s10055_s3 + $0x220] sm:$0xff]  ;;  %v10070_v46 = vld [vmem:[#allocation8_spill] sm:$0xff] }
 0x2c4   : > { %1550 = vmatmul.bf16.vlgmr.msrb.gmra.mxu2 %v1473_v27  ;;  %1999 = vmatpush.bf16.msra.mxu3 %v7541_v12  ;;  %v10069_v59 = vld [vmem:[#allocation9_spill] sm:$0xff] }
 0x2c5   : > { %1664 = vmatmul.bf16.vlgmr.msrb.gmra.mxu3 %v1587_v17  ;;  %v970_v60 = vadd.f32 %v8285_v25, %v948_v22  ;;  %v913_v17 = vmax.f32 %v8093_v35, %v8147_v62  ;;  %v8606_v35 = vld [vmem:[#allocation2 + $0x33] sm:$0xff]  ;;  %v8608_v62 = vld [vmem:[#allocation2 + $0x24] sm:$0xff]  ;;  %v914_v27 = vmax.f32 %v10070_v46, %v10069_v59  ;;  %v10073_v46 = vmax.f32 %v8403_v50, 0.0 }
 0x2c6   : > { %1886 = vmatpush.bf16.msra.mxu2 %v7532_v19  ;;  %v7522_v12 = vld [vmem:[%s10055_s3 + $0x198] sm:$0xff]  ;;  %v7529_v19 = vld [vmem:[%s10055_s3 + $0x1d0] sm:$0xff] }
 0x2c7   : > { %v988_v3 = vmax.f32 %v970_v60, 0.0  ;;  %v1360_v60 = vpack.c.bf16 %v8606_v35, %v8621_v1  ;;  %1774 = vmatpush.bf16.msra.mxu1 %v7522_v12 }
 0x2c8   : > { %v892_v4 = vpop.f32.mrf.mxu0  ;;  %2000 = vmatpush.bf16.msra.mxu3 %v7540_v37  ;;  %v7537_v37 = vld [vmem:[%s10055_s3 + $0x210] sm:$0xff] }
 0x2c9   : > { %1021 = vst [vmem:[#allocation2 + $0xa0] sm:$0xff] %v988_v3  ;;  %v931_v55 = vmax.f32 %v8237_v52, %v892_v4  ;;  %v1474_v3 = vpack.c.bf16 %v978_v36, %v8608_v62  ;;  %v7530_v4 = vld [vmem:[%s10055_s3 + $0x1d8] sm:$0xff]  ;;  %v10072_v36 = vpack.c.bf16 %v8345_v43, %v8351_v5  ;;  %v7528_v43 = vld [vmem:[%s10055_s3 + $0x1c8] sm:$0xff] }
 0x2ca   : > { %1887 = vmatpush.bf16.msra.mxu2 %v7531_v2  ;;  %v7536_v5 = vld [vmem:[%s10055_s3 + $0x208] sm:$0xff]  ;;  %v7535_v2 = vld [vmem:[%s10055_s3 + $0x200] sm:$0xff] }
 0x2cb   : > { %v949_v23 = vmax.f32 %v913_v17, %v931_v55  ;;  %v7521_v55 = vld [vmem:[%s10055_s3 + $0x190] sm:$0xff] }
 0x2cc   : > { %2001 = vmatpush.bf16.msra.mxu3 %v7539_v32  ;;  %1775 = vmatpush.bf16.msra.mxu1 %v7521_v55  ;;  %v8673_v32 = vld [vmem:[#allocation2 + $0x43] sm:$0xff] }
 0x2cd   : > { %v971_v30 = vadd.f32 %v8285_v25, %v949_v23  ;;  %v8660_v23 = vld [vmem:[#allocation2 + $0x53] sm:$0xff] }
 0x2ce   : > { %1888 = vmatpush.bf16.msra.mxu2 %v7530_v4  ;;  %v1361_v59 = vpack.c.bf16 %v8660_v23, %v8673_v32  ;;  %v8687_v4 = vld [vmem:[#allocation2 + $0x63] sm:$0xff] }
 0x2cf   : > { %v989_v52 = vmax.f32 %v971_v30, 0.0  ;;  %v8662_v30 = vld [vmem:[#allocation2 + $0x44] sm:$0xff] }
 0x2d0   : > { %v894_v22 = vpop.f32.mrf.mxu0  ;;  %2002 = vmatpush.bf16.msra.mxu3 %v7538_v39 }
 0x2d1   : > { %1022 = vst [vmem:[#allocation2 + $0xa8] sm:$0xf] %v989_v52  ;;  %v932_v33 = vmax.f32 %v10071_v21, %v894_v22  ;;  %v10074_v22 = vpack.c.bf16 %v8450_v13, %v8462_v0  ;;  %v10075_v13 = vmax.f32 %v8508_v8, 0.0  ;;  %v1929_v8 = vpack.c.bf16 %v8621_v1, %v8566_v63  ;;  %v7549_v63 = vld [vmem:[%s10055_s3 + $0x270] sm:$0xff] }
 0x2d2   : > { %1024 = vst [vmem:[#allocation2 + $0xac] sm:$0xf0] %v989_v52  ;;  %1889 = vmatpush.bf16.msra.mxu2 %v7529_v19  ;;  %v7519_v52 = vld [vmem:[%s10055_s3 + $0x180] sm:$0xff]  ;;  %v10076_v19 = vpack.c.bf16 %v8331_v14, %v8310_v11  ;;  %v7565_v1 = vld [vmem:[%s10055_s3 + $0x2f0] sm:$0xff] }
 0x2d3   : > { %v950_v6 = vmax.f32 %v914_v27, %v932_v33  ;;  %1441 = vmatmul.bf16.gmra.mxu1 %v1360_v60  ;;  %v1475_v27 = vpack.c.bf16 %v10073_v46, %v8662_v30  ;;  %v8683_v60 = vld [vmem:[#allocation2 + $0x73] sm:$0xff]  ;;  %v7555_v46 = vld [vmem:[%s10055_s3 + $0x2a0] sm:$0xff] }
 0x2d4   : > { %1555 = vmatmul.bf16.gmra.mxu2 %v1474_v3  ;;  %2003 = vmatpush.bf16.msra.mxu3 %v7537_v37  ;;  %v8685_v3 = vld [vmem:[#allocation2 + $0x64] sm:$0xff]  ;;  %v8693_v39 = vpack.c.bf16 %v8683_v60, %v8687_v4  ;;  %v7558_v37 = vld [vmem:[%s10055_s3 + $0x2b8] sm:$0xff] }
 0x2d5   : > { %1669 = vmatmul.bf16.gmra.mxu3 %v10072_v36  ;;  %v972_v38 = vadd.f32 %v8285_v25, %v950_v6  ;;  %v7520_v25 = vld [vmem:[%s10055_s3 + $0x188] sm:$0xff]  ;;  %v1476_v0 = vpack.c.bf16 %v10075_v13, %v8685_v3  ;;  %v7550_v36 = vld [vmem:[%s10055_s3 + $0x278] sm:$0xff]  ;;  %v7561_v13 = vld [vmem:[%s10055_s3 + $0x2d0] sm:$0xff] }
 0x2d6   : > { %1776 = vmatpush.bf16.msra.mxu1 %v7520_v25  ;;  %1890 = vmatpush.bf16.msra.mxu2 %v7528_v43  ;;  %v7566_v25 = vld [vmem:[%s10055_s3 + $0x2f8] sm:$0xff] }
 0x2d7   : > { %v990_v17 = vmax.f32 %v972_v38, 0.0 }
 0x2d8   : > { %2004 = vmatpush.bf16.msra.mxu3 %v7536_v5 }
 0x2d9   : > { %1025 = vst [vmem:[#allocation2 + $0xb4] sm:$0xff] %v990_v17 }
 0x2da   : > { %1777 = vmatpush.bf16.msra.mxu1 %v7519_v52  ;;  %1891 = vmatpush.bf16.msra.mxu2 %v7527_v26  ;;  %v7548_v52 = vld [vmem:[%s10055_s3 + $0x268] sm:$0xff] }
 0x2db   : > { %v7556_v26 = vld [vmem:[%s10055_s3 + $0x2a8] sm:$0xff] }
 0x2dc   : > { %2005 = vmatpush.bf16.msra.mxu3 %v7535_v2  ;;  %v7564_v2 = vld [vmem:[%s10055_s3 + $0x2e8] sm:$0xff] }
 0x2de   : > { %2112 = vmatpush.bf16.msrb.mxu1 %v7550_v36  ;;  %2226 = vmatpush.bf16.msrb.mxu2 %v7558_v37  ;;  %v7552_v36 = vld [vmem:[%s10055_s3 + $0x288] sm:$0xff] }
 0x2e0   : > { %2340 = vmatpush.bf16.msrb.mxu3 %v7566_v25 }
 0x2e2   : > { %2113 = vmatpush.bf16.msrb.mxu1 %v7549_v63 }
 0x2e3   : > { %1446 = vmatmul.bf16.gmra.mxu1 %v1361_v59  ;;  %v7547_v59 = vld [vmem:[%s10055_s3 + $0x260] sm:$0xff] }
 0x2e4   : > { %1560 = vmatmul.bf16.gmra.mxu2 %v1475_v27  ;;  %2341 = vmatpush.bf16.msrb.mxu3 %v7565_v1  ;;  %v7563_v27 = vld [vmem:[%s10055_s3 + $0x2e0] sm:$0xff]  ;;  %v1931_v1 = vpack.c.bf16 %v8687_v4, %v8660_v23 }
 0x2e5   : > { %1674 = vmatmul.bf16.gmra.mxu3 %v10074_v22  ;;  %v1930_v22 = vpack.c.bf16 %v8673_v32, %v8606_v35  ;;  %v7562_v35 = vld [vmem:[%s10055_s3 + $0x2d8] sm:$0xff]  ;;  %v8821_v23 = vld [vmem:[#allocation2 + $0x83] sm:$0xff] }
 0x2e6   : > { %2114 = vmatpush.bf16.msrb.mxu1 %v7548_v52  ;;  %v10081_v52 = vpack.c.bf16 %v8513_v49, %v8464_v44 }
 0x2e8   : > { %v1140_v21 = vpop.f32.mrf.mxu1  ;;  %2342 = vmatpush.bf16.msrb.mxu3 %v7564_v2 }
 0x2ea   : > { %2115 = vmatpush.bf16.msrb.mxu1 %v7547_v59 }
 0x2ec   : > { %2343 = vmatpush.bf16.msrb.mxu3 %v7563_v27 }
 0x2ef   : > { %v1217_v33 = vpop.f32.mrf.mxu2 }
 0x2f0   : > { %v1218_v6 = vadd.f32 %v1217_v33, %v1140_v21  ;;  %v1323_v12 = vpop.f32.mrf.mxu3  ;;  %v8703_v38 = vpop.f32.mrf.mxu1  ;;  %v10078_v21 = vpack.c.bf16 %v8417_v61, %v8349_v47  ;;  %v10079_v33 = vpack.c.bf16 %v8419_v16, %v8353_v10  ;;  %2344 = vmatpush.bf16.msrb.mxu3 %v7562_v35  ;;  %v7545_v61 = vld [vmem:[%s10055_s3 + $0x250] sm:$0xff] }
 0x2f1   : > { %v7553_v16 = vld [vmem:[%s10055_s3 + $0x290] sm:$0xff] }
 0x2f2   : > { %v8689_v50 = vadd.f32 %v1323_v12, %v1218_v6  ;;  %v7546_v6 = vld [vmem:[%s10055_s3 + $0x258] sm:$0xff] }
 0x2f3   : > { %1451 = vmatmul.bf16.gmra.mxu1 %v8693_v39  ;;  %v7554_v12 = vld [vmem:[%s10055_s3 + $0x298] sm:$0xff] }
 0x2f4   : > { %1565 = vmatmul.bf16.gmra.mxu2 %v1476_v0  ;;  %2116 = vmatpush.bf16.msrb.mxu1 %v7546_v6  ;;  %v7544_v0 = vld [vmem:[%s10055_s3 + $0x248] sm:$0xff] }
 0x2f5   : > { %1679 = vmatmul.bf16.gmra.mxu3 %v8543_v57  ;;  %v10077_v57 = vpack.c.bf16 %v8333_v41, %v8314_v15  ;;  %v7557_v41 = vld [vmem:[%s10055_s3 + $0x2b0] sm:$0xff] }
 0x2f6   : > { %2227 = vmatpush.bf16.msrb.mxu2 %v7557_v41  ;;  %2345 = vmatpush.bf16.msrb.mxu3 %v7561_v13 }
 0x2f7   : > { %v8705_v17 = vpop.f32.mrf.mxu2 }
 0x2f8   : > { %v8707_v55 = vpop.f32.mrf.mxu3  ;;  %2117 = vmatpush.bf16.msrb.mxu1 %v7545_v61  ;;  %v7574_v61 = vld [vmem:[%s10055_s3 + $0x338] sm:$0xff] }
 0x2fa   : > { %2228 = vmatpush.bf16.msrb.mxu2 %v7556_v26 }
 0x2fc   : > { %2118 = vmatpush.bf16.msrb.mxu1 %v7544_v0  ;;  %v2035_v0 = vld [vmem:[#allocation2 + $0x14] sm:$0xff] }
 0x2fe   : > { %2229 = vmatpush.bf16.msrb.mxu2 %v7555_v46 }
 0x300   : > { %v1145_v11 = vpop.f32.mrf.mxu1 }
 0x302   : > { %2230 = vmatpush.bf16.msrb.mxu2 %v7554_v12 }
 0x303   : > { %1778 = vmatmul.bf16.vlgmr.msra.gmra.mxu1 %v10076_v19  ;;  %v7710_v19 = vld [vmem:[%s10057_s5 + $0x138] sm:$0xff] }
 0x304   : > { %1892 = vmatmul.bf16.vlgmr.msra.gmra.mxu2 %v10077_v57  ;;  %5205 = vmatpush.bf16.msrb.mxu0 %v7710_v19  ;;  %v2043_v19 = vpack.c.bf16 %v8608_v62, %v2035_v0  ;;  %v7590_v62 = vld [vmem:[%s10055_s3 + $0x3b8] sm:$0xff] }
 0x305   : > { %2006 = vmatmul.bf16.vlgmr.msra.gmra.mxu3 %v1929_v8  ;;  %v7560_v8 = vld [vmem:[%s10055_s3 + $0x2c8] sm:$0xff] }
 0x306   : > { %2231 = vmatpush.bf16.msrb.mxu2 %v7553_v16  ;;  %2346 = vmatpush.bf16.msrb.mxu3 %v7560_v8 }
 0x307   : > { %v1222_v14 = vpop.f32.mrf.mxu2 }
 0x308   : > { %v1223_v15 = vadd.f32 %v1222_v14, %v1145_v11  ;;  %v1328_v43 = vpop.f32.mrf.mxu3  ;;  %v8769_v32 = vpop.f32.mrf.mxu1  ;;  %v7543_v11 = vld [vmem:[%s10055_s3 + $0x240] sm:$0xff] }
 0x309   : > { %v7551_v14 = vld [vmem:[%s10055_s3 + $0x280] sm:$0xff]  ;;  %2119 = vmatpush.bf16.msrb.mxu1 %v7543_v11  ;;  %v7582_v11 = vld [vmem:[%s10055_s3 + $0x378] sm:$0xff] }
 0x30a   : > { %v8732_v5 = vadd.f32 %v1328_v43, %v1223_v15  ;;  %2232 = vmatpush.bf16.msrb.mxu2 %v7552_v36  ;;  %v7559_v15 = vld [vmem:[%s10055_s3 + $0x2c0] sm:$0xff]  ;;  %v10080_v43 = vpack.c.bf16 %v8511_v31, %v8460_v48  ;;  %v1932_v31 = vpack.c.bf16 %v8821_v23, %v8683_v60 }
 0x30b   : > { %2347 = vmatpush.bf16.msrb.mxu3 %v7559_v15  ;;  %v2149_v60 = vld [vmem:[#allocation2 + $0x20] sm:$0xff] }
 0x30d   : > { %2454 = vmatpush.bf16.msra.mxu1 %v7574_v61 }
 0x30e   : > { %2233 = vmatpush.bf16.msrb.mxu2 %v7551_v14  ;;  %v1220_v14 = vadd.f32 %v8705_v17, %v8703_v38  ;;  %v7580_v38 = vld [vmem:[%s10055_s3 + $0x368] sm:$0xff] }
 0x30f   : > { %v8771_v47 = vpop.f32.mrf.mxu2  ;;  %2682 = vmatpush.bf16.msra.mxu3 %v7590_v62 }
 0x310   : > { %v8773_v10 = vpop.f32.mrf.mxu3  ;;  %v1344_v17 = vadd.f32 %v8707_v55, %v1220_v14  ;;  %v7571_v55 = vld [vmem:[%s10055_s3 + $0x320] sm:$0xff] }
 0x312   : > { %2568 = vmatpush.bf16.msra.mxu2 %v7582_v11  ;;  %v7577_v11 = vld [vmem:[%s10055_s3 + $0x350] sm:$0xff] }
 0x313   : > { %1783 = vmatmul.bf16.gmra.mxu1 %v10078_v21  ;;  %v8819_v21 = vld [vmem:[#allocation2 + $0x82] sm:$0xff] }
 0x314   : > { %1897 = vmatmul.bf16.gmra.mxu2 %v10079_v33  ;;  %v1818_v44 = vpack.c.bf16 %v8819_v21, %v8531_v45 }
 0x315   : > { %2011 = vmatmul.bf16.gmra.mxu3 %v1930_v22  ;;  %v8817_v22 = vld [vmem:[#allocation2 + $0x81] sm:$0xff] }
 0x316   : > { %v1704_v48 = vpack.c.bf16 %v8817_v22, %v8527_v29 }
 0x318   : > { %v1150_v57 = vpop.f32.mrf.mxu1 }
 0x31f   : > { %v1227_v37 = vpop.f32.mrf.mxu2 }
 0x320   : > { %v1228_v25 = vadd.f32 %v1227_v37, %v1150_v57  ;;  %v1333_v63 = vpop.f32.mrf.mxu3  ;;  %v1152_v26 = vpop.f32.mrf.mxu1  ;;  %v2157_v57 = vpack.c.bf16 %v8384_v9, %v2149_v60  ;;  %v2263_v37 = vld [vmem:[#allocation2 + $0x21] sm:$0xff]  ;;  %v7586_v60 = vld [vmem:[%s10055_s3 + $0x398] sm:$0xff] }
 0x322   : > { %v8805_v41 = vadd.f32 %v1333_v63, %v1228_v25  ;;  %v2271_v25 = vpack.c.bf16 %v8428_v42, %v2263_v37  ;;  %v7573_v63 = vld [vmem:[%s10055_s3 + $0x330] sm:$0xff] }
 0x323   : > { %1788 = vmatmul.bf16.gmra.mxu1 %v10080_v43 }
 0x324   : > { %1902 = vmatmul.bf16.gmra.mxu2 %v10081_v52  ;;  %2455 = vmatpush.bf16.msra.mxu1 %v7573_v63  ;;  %v7581_v52 = vld [vmem:[%s10055_s3 + $0x370] sm:$0xff] }
 0x325   : > { %2016 = vmatmul.bf16.gmra.mxu3 %v1931_v1  ;;  %2569 = vmatpush.bf16.msra.mxu2 %v7581_v52  ;;  %v7569_v63 = vld [vmem:[%s10055_s3 + $0x310] sm:$0xff] }
 0x327   : > { %v1229_v2 = vpop.f32.mrf.mxu2 }
 0x328   : > { %v1230_v59 = vadd.f32 %v1229_v2, %v1152_v26  ;;  %v1335_v46 = vpop.f32.mrf.mxu3  ;;  %v7589_v26 = vld [vmem:[%s10055_s3 + $0x3b0] sm:$0xff] }
 0x329   : > { %2683 = vmatpush.bf16.msra.mxu3 %v7589_v26  ;;  %2570 = vmatpush.bf16.msra.mxu2 %v7580_v38  ;;  %v8923_v38 = vld [vmem:[#allocation2 + $0x54] sm:$0xff] }
 0x32a   : > { %v8815_v27 = vadd.f32 %v1335_v46, %v1230_v59  ;;  %v7572_v59 = vld [vmem:[%s10055_s3 + $0x328] sm:$0xff] }
 0x32b   : > { %2456 = vmatpush.bf16.msra.mxu1 %v7572_v59  ;;  %v7588_v46 = vld [vmem:[%s10055_s3 + $0x3a8] sm:$0xff] }
 0x32d   : > { %2684 = vmatpush.bf16.msra.mxu3 %v7588_v46 }
 0x32f   : > { %2457 = vmatpush.bf16.msra.mxu1 %v7571_v55 }
 0x330   : > { %v1155_v4 = vpop.f32.mrf.mxu1 }
 0x333   : > { %1793 = vmatmul.bf16.gmra.mxu1 %v1704_v48 }
 0x334   : > { %1907 = vmatmul.bf16.gmra.mxu2 %v1818_v44 }
 0x335   : > { %2021 = vmatmul.bf16.gmra.mxu3 %v1932_v31 }
 0x337   : > { %v1232_v49 = vpop.f32.mrf.mxu2 }
 0x338   : > { %v1233_v33 = vadd.f32 %v1232_v49, %v1155_v4  ;;  %v1338_v6 = vpop.f32.mrf.mxu3  ;;  %v1157_v12 = vpop.f32.mrf.mxu1  ;;  %v8869_v49 = vld [vmem:[#allocation2 + $0x51] sm:$0xff] }
 0x339   : > { %v2272_v0 = vpack.c.bf16 %v8869_v49, %v8430_v24 }
 0x33a   : > { %v8829_v35 = vadd.f32 %v1338_v6, %v1233_v33  ;;  %v8871_v6 = vld [vmem:[#allocation2 + $0x34] sm:$0xff] }
 0x33f   : > { %v1234_v29 = vpop.f32.mrf.mxu2 }
 0x340   : > { %v1235_v16 = vadd.f32 %v1234_v29, %v1157_v12  ;;  %v1340_v45 = vpop.f32.mrf.mxu3  ;;  %v1437_v13 = vpop.f32.mrf.mxu1  ;;  %v7579_v12 = vld [vmem:[%s10055_s3 + $0x360] sm:$0xff] }
 0x341   : > { %v1457_v8 = vadd.f32 %v1437_v13, %v8689_v50  ;;  %v7587_v13 = vld [vmem:[%s10055_s3 + $0x3a0] sm:$0xff]  ;;  %2571 = vmatpush.bf16.msra.mxu2 %v7579_v12 }
 0x342   : > { %v8834_v36 = vadd.f32 %v1340_v45, %v1235_v16  ;;  %v2044_v16 = vpack.c.bf16 %v8662_v30, %v8871_v6  ;;  %v2158_v45 = vpack.c.bf16 %v8495_v58, %v8386_v34  ;;  %v7578_v30 = vld [vmem:[%s10055_s3 + $0x358] sm:$0xff]  ;;  %2685 = vmatpush.bf16.msra.mxu3 %v7587_v13  ;;  %v8948_v13 = vld [vmem:[#allocation2 + $0x84] sm:$0xff] }
 0x343   : > { %2120 = vmatmul.bf16.vlgmr.msrb.gmra.mxu1 %v2043_v19  ;;  %v1225_v19 = vadd.f32 %v8771_v47, %v8769_v32  ;;  %v7568_v32 = vld [vmem:[%s10055_s3 + $0x308] sm:$0xff] }
 0x344   : > { %2234 = vmatmul.bf16.vlgmr.msrb.gmra.mxu2 %v2157_v57  ;;  %v7576_v47 = vld [vmem:[%s10055_s3 + $0x348] sm:$0xff] }
 0x345   : > { %2348 = vmatmul.bf16.vlgmr.msrb.gmra.mxu3 %v2271_v25  ;;  %2572 = vmatpush.bf16.msra.mxu2 %v7578_v30  ;;  %v1346_v14 = vadd.f32 %v8773_v10, %v1225_v19  ;;  %v7575_v10 = vld [vmem:[%s10055_s3 + $0x340] sm:$0xff]  ;;  %v8952_v30 = vld [vmem:[#allocation2 + $0x91] sm:$0xff] }
 0x346   : > { %2686 = vmatpush.bf16.msra.mxu3 %v7586_v60  ;;  %v8956_v19 = vld [vmem:[#allocation2 + $0x80] sm:$0xff] }
 0x347   : > { %v1551_v50 = vpop.f32.mrf.mxu2 }
 0x348   : > { %v1571_v15 = vadd.f32 %v1551_v50, %v1457_v8  ;;  %v1665_v1 = vpop.f32.mrf.mxu3  ;;  %v1439_v43 = vpop.f32.mrf.mxu1  ;;  %v7585_v50 = vld [vmem:[%s10055_s3 + $0x390] sm:$0xff] }
 0x349   : > { %v1458_v4 = vadd.f32 %v1439_v43, %v1344_v17  ;;  %2573 = vmatpush.bf16.msra.mxu2 %v7577_v11  ;;  %v7567_v17 = vld [vmem:[%s10055_s3 + $0x300] sm:$0xff] }
 0x34a   : > { %v8857_v2 = vadd.f32 %v1665_v1, %v1571_v15  ;;  %2687 = vmatpush.bf16.msra.mxu3 %v7585_v50  ;;  %v7584_v1 = vld [vmem:[%s10055_s3 + $0x388] sm:$0xff] }
 0x34d   : > { %2574 = vmatpush.bf16.msra.mxu2 %v7576_v47 }
 0x34e   : > { %2688 = vmatpush.bf16.msra.mxu3 %v7584_v1 }
 0x34f   : > { %v1553_v48 = vpop.f32.mrf.mxu2 }
 0x350   : > { %v1572_v44 = vadd.f32 %v1553_v48, %v1458_v4  ;;  %v1667_v31 = vpop.f32.mrf.mxu3  ;;  %v1442_v33 = vpop.f32.mrf.mxu1  ;;  %v2045_v48 = vpack.c.bf16 %v8685_v3, %v8923_v38 }
 0x351   : > { %v1459_v29 = vadd.f32 %v1442_v33, %v8732_v5  ;;  %v7570_v5 = vld [vmem:[%s10055_s3 + $0x318] sm:$0xff]  ;;  %2575 = vmatpush.bf16.msra.mxu2 %v7575_v10 }
 0x352   : > { %v8879_v61 = vadd.f32 %v1667_v31, %v1572_v44  ;;  %2458 = vmatpush.bf16.msra.mxu1 %v7570_v5  ;;  %v2159_v44 = vpack.c.bf16 %v8529_v56, %v8497_v18  ;;  %v7583_v31 = vld [vmem:[%s10055_s3 + $0x380] sm:$0xff] }
 0x353   : > { %2125 = vmatmul.bf16.gmra.mxu1 %v2044_v16  ;;  %2689 = vmatpush.bf16.msra.mxu3 %v7583_v31 }
 0x354   : > { %2239 = vmatmul.bf16.gmra.mxu2 %v2158_v45 }
 0x355   : > { %2353 = vmatmul.bf16.gmra.mxu3 %v2272_v0  ;;  %v8950_v0 = vld [vmem:[#allocation2 + $0x90] sm:$0xff] }
 0x356   : > { %2459 = vmatpush.bf16.msra.mxu1 %v7569_v63  ;;  %v2274_v63 = vpack.c.bf16 %v8952_v30, %v8817_v22 }
 0x357   : > { %v1556_v8 = vpop.f32.mrf.mxu2 }
 0x358   : > { %v1573_v57 = vadd.f32 %v1556_v8, %v1459_v29  ;;  %v1670_v37 = vpop.f32.mrf.mxu3  ;;  %v1444_v25 = vpop.f32.mrf.mxu1  ;;  %v8954_v8 = vld [vmem:[#allocation2 + $0x74] sm:$0xff] }
 0x359   : > { %v1460_v15 = vadd.f32 %v1444_v25, %v1346_v14  ;;  %v2160_v25 = vpack.c.bf16 %v8950_v0, %v8956_v19 }
 0x35a   : > { %v8908_v62 = vadd.f32 %v1670_v37, %v1573_v57  ;;  %2460 = vmatpush.bf16.msra.mxu1 %v7568_v32 }
 0x35e   : > { %2461 = vmatpush.bf16.msra.mxu1 %v7567_v17  ;;  %v2491_v17 = vld [vmem:[#allocation2 + $0x23] sm:$0xff] }
 0x35f   : > { %v1558_v43 = vpop.f32.mrf.mxu2 }
 0x360   : > { %v1574_v52 = vadd.f32 %v1558_v43, %v1460_v15  ;;  %v1672_v26 = vpop.f32.mrf.mxu3  ;;  %v1447_v59 = vpop.f32.mrf.mxu1  ;;  %v7598_v15 = vld [vmem:[%s10055_s3 + $0x3f8] sm:$0xff] }
 0x361   : > { %v1461_v4 = vadd.f32 %v1447_v59, %v8805_v41  ;;  %v7709_v41 = vld [vmem:[%s10057_s5 + $0x130] sm:$0xff]  ;;  %v2377_v59 = vld [vmem:[#allocation2 + $0x22] sm:$0xff] }
 0x362   : > { %v8931_v46 = vadd.f32 %v1672_v26, %v1574_v52  ;;  %5206 = vmatpush.bf16.msrb.mxu0 %v7709_v41  ;;  %2796 = vmatpush.bf16.msrb.mxu1 %v7598_v15  ;;  %v8973_v43 = vld [vmem:[#allocation2 + $0x32] sm:$0xff] }
 0x363   : > { %2130 = vmatmul.bf16.gmra.mxu1 %v2045_v48  ;;  %v2385_v48 = vpack.c.bf16 %v8973_v43, %v2377_v59  ;;  %v7597_v41 = vld [vmem:[%s10055_s3 + $0x3f0] sm:$0xff]  ;;  %v7603_v59 = vld [vmem:[%s10055_s3 + $0x420] sm:$0xff] }
 0x364   : > { %2244 = vmatmul.bf16.gmra.mxu2 %v2159_v44  ;;  %v2605_v44 = vld [vmem:[#allocation2 + $0x24] sm:$0xff] }
 0x365   : > { %2358 = vmatmul.bf16.gmra.mxu3 %v8536_v54  ;;  %v2613_v31 = vpack.c.bf16 %v8871_v6, %v2605_v44 }
 0x366   : > { %2797 = vmatpush.bf16.msrb.mxu1 %v7597_v41 }
 0x367   : > { %v1561_v33 = vpop.f32.mrf.mxu2 }
 0x368   : > { %v1575_v55 = vadd.f32 %v1561_v33, %v1461_v4  ;;  %v1675_v56 = vpop.f32.mrf.mxu3  ;;  %v1449_v12 = vpop.f32.mrf.mxu1  ;;  %v7606_v33 = vld [vmem:[%s10055_s3 + $0x438] sm:$0xff] }
 0x369   : > { %v1462_v16 = vadd.f32 %v1449_v12, %v8815_v27  ;;  %v2046_v27 = vpack.c.bf16 %v8948_v13, %v8954_v8  ;;  %2910 = vmatpush.bf16.msrb.mxu2 %v7606_v33 }
 0x36a   : > { %v8945_v29 = vadd.f32 %v1675_v56, %v1575_v55 }
 0x36f   : > { %v1563_v45 = vpop.f32.mrf.mxu2 }
 0x370   : > { %v1576_v54 = vadd.f32 %v1563_v45, %v1462_v16  ;;  %v1677_v5 = vpop.f32.mrf.mxu3  ;;  %v1452_v60 = vpop.f32.mrf.mxu1 }
 0x371   : > { %v1463_v37 = vadd.f32 %v1452_v60, %v8829_v35  ;;  %v7596_v60 = vld [vmem:[%s10055_s3 + $0x3e8] sm:$0xff] }
 0x372   : > { %v8958_v57 = vadd.f32 %v1677_v5, %v1576_v54  ;;  %v7605_v54 = vld [vmem:[%s10055_s3 + $0x430] sm:$0xff]  ;;  %2798 = vmatpush.bf16.msrb.mxu1 %v7596_v60 }
 0x373   : > { %2135 = vmatmul.bf16.gmra.mxu1 %v2046_v27  ;;  %v7613_v5 = vld [vmem:[%s10055_s3 + $0x470] sm:$0xff]  ;;  %2911 = vmatpush.bf16.msrb.mxu2 %v7605_v54 }
 0x374   : > { %2249 = vmatmul.bf16.gmra.mxu2 %v2160_v25  ;;  %v9008_v25 = vld [vmem:[#allocation2 + $0x52] sm:$0xff] }
 0x375   : > { %2363 = vmatmul.bf16.gmra.mxu3 %v2274_v63  ;;  %v9010_v63 = vld [vmem:[#allocation2 + $0x53] sm:$0xff] }
 0x377   : > { %v1566_v11 = vpop.f32.mrf.mxu2 }
 0x378   : > { %v1577_v50 = vadd.f32 %v1566_v11, %v1463_v37  ;;  %v1680_v32 = vpop.f32.mrf.mxu3  ;;  %v1454_v47 = vpop.f32.mrf.mxu1  ;;  %v7604_v37 = vld [vmem:[%s10055_s3 + $0x428] sm:$0xff] }
 0x379   : > { %v1464_v35 = vadd.f32 %v1454_v47, %v8834_v36  ;;  %v2499_v36 = vpack.c.bf16 %v8432_v51, %v2491_v17  ;;  %2912 = vmatpush.bf16.msrb.mxu2 %v7604_v37  ;;  %v9012_v47 = vld [vmem:[#allocation2 + $0x42] sm:$0xff] }
 0x37a   : > { %v8967_v14 = vadd.f32 %v1680_v32, %v1577_v50  ;;  %v7611_v17 = vld [vmem:[%s10055_s3 + $0x460] sm:$0xff] }
 0x37d   : > { %2913 = vmatpush.bf16.msrb.mxu2 %v7603_v59 }
 0x37f   : > { %v1568_v1 = vpop.f32.mrf.mxu2 }
 0x380   : > { %v1578_v22 = vadd.f32 %v1568_v1, %v1464_v35  ;;  %v1682_v52 = vpop.f32.mrf.mxu3  ;;  %v1779_v26 = vpop.f32.mrf.mxu1  ;;  %v9014_v35 = vld [vmem:[#allocation2 + $0x44] sm:$0xff] }
 0x381   : > { %v1799_v4 = vadd.f32 %v1779_v26, %v8857_v2  ;;  %v7614_v2 = vld [vmem:[%s10055_s3 + $0x478] sm:$0xff]  ;;  %v7595_v26 = vld [vmem:[%s10055_s3 + $0x3e0] sm:$0xff] }
 0x382   : > { %v8975_v10 = vadd.f32 %v1682_v52, %v1578_v22  ;;  %3024 = vmatpush.bf16.msrb.mxu3 %v7614_v2  ;;  %v2386_v22 = vpack.c.bf16 %v9008_v25, %v9012_v47  ;;  %v2500_v52 = vpack.c.bf16 %v9010_v63, %v8434_v20  ;;  %2799 = vmatpush.bf16.msrb.mxu1 %v7595_v26 }
 0x383   : > { %2462 = vmatmul.bf16.vlgmr.msra.gmra.mxu1 %v2385_v48  ;;  %v7602_v48 = vld [vmem:[%s10055_s3 + $0x418] sm:$0xff] }
 0x384   : > { %2576 = vmatmul.bf16.vlgmr.msra.gmra.mxu2 %v2499_v36  ;;  %v7610_v36 = vld [vmem:[%s10055_s3 + $0x458] sm:$0xff] }
 0x385   : > { %2690 = vmatmul.bf16.vlgmr.msra.gmra.mxu3 %v2613_v31  ;;  %2914 = vmatpush.bf16.msrb.mxu2 %v7602_v48 }
 0x386   : > { %3025 = vmatpush.bf16.msrb.mxu3 %v7613_v5  ;;  %v9064_v5 = vld [vmem:[#allocation2 + $0x72] sm:$0xff] }
 0x387   : > { %v1893_v55 = vpop.f32.mrf.mxu2 }
 0x388   : > { %v1913_v56 = vadd.f32 %v1893_v55, %v1799_v4  ;;  %v2007_v6 = vpop.f32.mrf.mxu3  ;;  %v1781_v12 = vpop.f32.mrf.mxu1  ;;  %v7594_v4 = vld [vmem:[%s10055_s3 + $0x3d8] sm:$0xff]  ;;  %v7593_v55 = vld [vmem:[%s10055_s3 + $0x3d0] sm:$0xff] }
 0x389   : > { %v1800_v45 = vadd.f32 %v1781_v12, %v8879_v61  ;;  %v7612_v61 = vld [vmem:[%s10055_s3 + $0x468] sm:$0xff]  ;;  %2800 = vmatpush.bf16.msrb.mxu1 %v7594_v4 }
 0x38a   : > { %v8990_v16 = vadd.f32 %v2007_v6, %v1913_v56  ;;  %3026 = vmatpush.bf16.msrb.mxu3 %v7612_v61  ;;  %v7601_v56 = vld [vmem:[%s10055_s3 + $0x410] sm:$0xff]  ;;  %v7592_v12 = vld [vmem:[%s10055_s3 + $0x3c8] sm:$0xff] }
 0x38b   : > { %v7609_v6 = vld [vmem:[%s10055_s3 + $0x450] sm:$0xff]  ;;  %2915 = vmatpush.bf16.msrb.mxu2 %v7601_v56 }
 0x38d   : > { %2801 = vmatpush.bf16.msrb.mxu1 %v7593_v55 }
 0x38e   : > { %3027 = vmatpush.bf16.msrb.mxu3 %v7611_v17 }
 0x38f   : > { %v1895_v27 = vpop.f32.mrf.mxu2 }
 0x390   : > { %v1914_v11 = vadd.f32 %v1895_v27, %v1800_v45  ;;  %v2009_v50 = vpop.f32.mrf.mxu3  ;;  %v1784_v32 = vpop.f32.mrf.mxu1  ;;  %v7608_v45 = vld [vmem:[%s10055_s3 + $0x448] sm:$0xff] }
 0x391   : > { %v1801_v1 = vadd.f32 %v1784_v32, %v8908_v62  ;;  %v2614_v62 = vpack.c.bf16 %v8923_v38, %v9014_v35  ;;  %v9066_v27 = vld [vmem:[#allocation2 + $0x62] sm:$0xff]  ;;  %2802 = vmatpush.bf16.msrb.mxu1 %v7592_v12 }
 0x392   : > { %v9016_v15 = vadd.f32 %v2009_v50, %v1914_v11  ;;  %3028 = vmatpush.bf16.msrb.mxu3 %v7610_v36  ;;  %v2387_v32 = vpack.c.bf16 %v9064_v5, %v9066_v27  ;;  %v7708_v36 = vld [vmem:[%s10057_s5 + $0x128] sm:$0xff] }
 0x393   : > { %2467 = vmatmul.bf16.gmra.mxu1 %v2386_v22  ;;  %v7599_v22 = vld [vmem:[%s10055_s3 + $0x400] sm:$0xff]  ;;  %5207 = vmatpush.bf16.msrb.mxu0 %v7708_v36 }
 0x394   : > { %2581 = vmatmul.bf16.gmra.mxu2 %v2500_v52  ;;  %v7607_v52 = vld [vmem:[%s10055_s3 + $0x440] sm:$0xff] }
 0x395   : > { %2695 = vmatmul.bf16.gmra.mxu3 %v2614_v62 }
 0x396   : > { %3029 = vmatpush.bf16.msrb.mxu3 %v7609_v6 }
 0x397   : > { %v1898_v44 = vpop.f32.mrf.mxu2 }
 0x398   : > { %v1915_v38 = vadd.f32 %v1898_v44, %v1801_v1  ;;  %v2012_v31 = vpop.f32.mrf.mxu3  ;;  %v1786_v41 = vpop.f32.mrf.mxu1  ;;  %v7591_v1 = vld [vmem:[%s10055_s3 + $0x3c0] sm:$0xff] }
 0x399   : > { %v1802_v2 = vadd.f32 %v1786_v41, %v8931_v46  ;;  %v7600_v46 = vld [vmem:[%s10055_s3 + $0x408] sm:$0xff]  ;;  %2803 = vmatpush.bf16.msrb.mxu1 %v7591_v1  ;;  %v2955_v1 = vpack.c.bf16 %v9012_v47, %v8973_v43  ;;  %v7638_v43 = vld [vmem:[%s10055_s3 + $0x538] sm:$0xff] }
 0x39a   : > { %v9043_v33 = vadd.f32 %v2012_v31, %v1915_v38  ;;  %2916 = vmatpush.bf16.msrb.mxu2 %v7600_v46  ;;  %3030 = vmatpush.bf16.msrb.mxu3 %v7608_v45  ;;  %v9095_v31 = vld [vmem:[#allocation2 + $0x94] sm:$0xff] }
 0x39b   : > { %v2616_v6 = vpack.c.bf16 %v9095_v31, %v8948_v13 }
 0x39e   : > { %2917 = vmatpush.bf16.msrb.mxu2 %v7599_v22  ;;  %3031 = vmatpush.bf16.msrb.mxu3 %v7607_v52  ;;  %v10082_v22 = vpack.c.bf16 %v8386_v34, %v8384_v9  ;;  %v7621_v52 = vld [vmem:[%s10055_s3 + $0x4b0] sm:$0xff] }
 0x39f   : > { %v1900_v54 = vpop.f32.mrf.mxu2 }
 0x3a0   : > { %v1916_v60 = vadd.f32 %v1900_v54, %v1802_v2  ;;  %v2014_v37 = vpop.f32.mrf.mxu3  ;;  %v1789_v61 = vpop.f32.mrf.mxu1 }
 0x3a1   : > { %v1803_v50 = vadd.f32 %v1789_v61, %v8945_v29  ;;  %v2615_v29 = vpack.c.bf16 %v8954_v8, %v8685_v3  ;;  %v9091_v8 = vld [vmem:[#allocation2 + $0x92] sm:$0xff] }
 0x3a2   : > { %v9068_v11 = vadd.f32 %v2014_v37, %v1916_v60  ;;  %3366 = vmatpush.bf16.msra.mxu3 %v7638_v43  ;;  %v9202_v43 = vld [vmem:[#allocation2 + $0x82] sm:$0xff] }
 0x3a3   : > { %2472 = vmatmul.bf16.gmra.mxu1 %v2387_v32 }
 0x3a4   : > { %2586 = vmatmul.bf16.gmra.mxu2 %v8693_v39  ;;  %v9093_v39 = vld [vmem:[#allocation2 + $0x93] sm:$0xff] }
 0x3a5   : > { %2700 = vmatmul.bf16.gmra.mxu3 %v2615_v29  ;;  %v2502_v56 = vpack.c.bf16 %v9093_v39, %v8821_v23 }
 0x3a7   : > { %v1903_v26 = vpop.f32.mrf.mxu2 }
 0x3a8   : > { %v1917_v59 = vadd.f32 %v1903_v26, %v1803_v50  ;;  %v2017_v17 = vpop.f32.mrf.mxu3  ;;  %v1791_v62 = vpop.f32.mrf.mxu1  ;;  %v7629_v26 = vld [vmem:[%s10055_s3 + $0x4f0] sm:$0xff] }
 0x3a9   : > { %v1804_v48 = vadd.f32 %v1791_v62, %v8958_v57  ;;  %v2388_v57 = vpack.c.bf16 %v9091_v8, %v8819_v21  ;;  %v7622_v21 = vld [vmem:[%s10055_s3 + $0x4b8] sm:$0xff]  ;;  %v7628_v62 = vld [vmem:[%s10055_s3 + $0x4e8] sm:$0xff] }
 0x3aa   : > { %v9085_v4 = vadd.f32 %v2017_v17, %v1917_v59  ;;  %3138 = vmatpush.bf16.msra.mxu1 %v7622_v21  ;;  %v7637_v59 = vld [vmem:[%s10055_s3 + $0x530] sm:$0xff]  ;;  %v7620_v17 = vld [vmem:[%s10055_s3 + $0x4a8] sm:$0xff] }
 0x3ab   : > { %3367 = vmatpush.bf16.msra.mxu3 %v7637_v59  ;;  %v7615_v59 = vld [vmem:[%s10055_s3 + $0x480] sm:$0xff] }
 0x3ae   : > { %3139 = vmatpush.bf16.msra.mxu1 %v7621_v52 }
 0x3af   : > { %v1905_v3 = vpop.f32.mrf.mxu2 }
 0x3b0   : > { %v1918_v44 = vadd.f32 %v1905_v3, %v1804_v48  ;;  %v2019_v38 = vpop.f32.mrf.mxu3  ;;  %v1794_v41 = vpop.f32.mrf.mxu1 }
 0x3b1   : > { %v1805_v55 = vadd.f32 %v1794_v41, %v8967_v14 }
 0x3b2   : > { %v9097_v2 = vadd.f32 %v2019_v38, %v1918_v44  ;;  %3140 = vmatpush.bf16.msra.mxu1 %v7620_v17  ;;  %v7623_v17 = vld [vmem:[%s10055_s3 + $0x4c0] sm:$0xff] }
 0x3b3   : > { %2477 = vmatmul.bf16.gmra.mxu1 %v2388_v57 }
 0x3b4   : > { %2591 = vmatmul.bf16.gmra.mxu2 %v2502_v56  ;;  %v7619_v56 = vld [vmem:[%s10055_s3 + $0x4a0] sm:$0xff] }
 0x3b5   : > { %2705 = vmatmul.bf16.gmra.mxu3 %v2616_v6  ;;  %v7627_v6 = vld [vmem:[%s10055_s3 + $0x4e0] sm:$0xff] }
 0x3b6   : > { %3141 = vmatpush.bf16.msra.mxu1 %v7619_v56 }
 0x3b7   : > { %v1908_v12 = vpop.f32.mrf.mxu2 }
 0x3b8   : > { %v1919_v46 = vadd.f32 %v1908_v12, %v1805_v55  ;;  %v2022_v45 = vpop.f32.mrf.mxu3  ;;  %v1796_v54 = vpop.f32.mrf.mxu1  ;;  %v7849_v55 = vld [vmem:[#allocation2 + $0x61] sm:$0xff] }
 0x3b9   : > { %v1806_v14 = vadd.f32 %v1796_v54, %v8975_v10  ;;  %v10083_v10 = vpack.c.bf16 %v8430_v24, %v8428_v42  ;;  %v2842_v57 = vpack.c.bf16 %v7849_v55, %v8869_v49  ;;  %v7635_v12 = vld [vmem:[%s10055_s3 + $0x520] sm:$0xff]  ;;  %v7618_v49 = vld [vmem:[%s10055_s3 + $0x498] sm:$0xff] }
 0x3ba   : > { %v9106_v60 = vadd.f32 %v2022_v45, %v1919_v46  ;;  %v2956_v46 = vpack.c.bf16 %v9066_v27, %v9008_v25  ;;  %v7626_v45 = vld [vmem:[%s10055_s3 + $0x4d8] sm:$0xff]  ;;  %3142 = vmatpush.bf16.msra.mxu1 %v7618_v49  ;;  %v9224_v55 = vld [vmem:[#allocation2 + $0xa0] sm:$0xff] }
 0x3bb   : > { %v7634_v25 = vld [vmem:[%s10055_s3 + $0x518] sm:$0xff]  ;;  %v2730_v49 = vpack.c.bf16 %v9224_v55, %v8950_v0 }
 0x3bf   : > { %v1910_v23 = vpop.f32.mrf.mxu2 }
 0x3c0   : > { %v1920_v37 = vadd.f32 %v1910_v23, %v1806_v14  ;;  %v2024_v61 = vpop.f32.mrf.mxu3  ;;  %v2121_v13 = vpop.f32.mrf.mxu1  ;;  %v7617_v23 = vld [vmem:[%s10055_s3 + $0x490] sm:$0xff] }
 0x3c1   : > { %v2141_v32 = vadd.f32 %v2121_v13, %v8990_v16  ;;  %v7630_v16 = vld [vmem:[%s10055_s3 + $0x4f8] sm:$0xff]  ;;  %3143 = vmatpush.bf16.msra.mxu1 %v7617_v23  ;;  %v7616_v13 = vld [vmem:[%s10055_s3 + $0x488] sm:$0xff] }
 0x3c2   : > { %v9112_v50 = vadd.f32 %v2024_v61, %v1920_v37  ;;  %3252 = vmatpush.bf16.msra.mxu2 %v7630_v16  ;;  %v7625_v37 = vld [vmem:[%s10055_s3 + $0x4d0] sm:$0xff] }
 0x3c3   : > { %2804 = vmatmul.bf16.vlgmr.msrb.gmra.mxu1 %v10082_v22  ;;  %v7633_v61 = vld [vmem:[%s10055_s3 + $0x510] sm:$0xff]  ;;  %v9198_v22 = vld [vmem:[#allocation2 + $0x81] sm:$0xff] }
 0x3c4   : > { %2918 = vmatmul.bf16.vlgmr.msrb.gmra.mxu2 %v10083_v10  ;;  %v9200_v16 = vld [vmem:[#allocation2 + $0x70] sm:$0xff] }
 0x3c5   : > { %3032 = vmatmul.bf16.vlgmr.msrb.gmra.mxu3 %v2955_v1  ;;  %3144 = vmatpush.bf16.msra.mxu1 %v7616_v13  ;;  %v3175_v13 = vld [vmem:[#allocation2 + $0x34] sm:$0xff] }
 0x3c6   : > { %3253 = vmatpush.bf16.msra.mxu2 %v7629_v26 }
 0x3c7   : > { %v2235_v47 = vpop.f32.mrf.mxu2 }
 0x3c8   : > { %v2255_v9 = vadd.f32 %v2235_v47, %v2141_v32  ;;  %v2349_v34 = vpop.f32.mrf.mxu3  ;;  %v2123_v42 = vpop.f32.mrf.mxu1  ;;  %v7632_v32 = vld [vmem:[%s10055_s3 + $0x508] sm:$0xff] }
 0x3c9   : > { %v2142_v29 = vadd.f32 %v2123_v42, %v9016_v15  ;;  %v7636_v15 = vld [vmem:[%s10055_s3 + $0x528] sm:$0xff]  ;;  %3145 = vmatpush.bf16.msra.mxu1 %v7615_v59  ;;  %v7653_v59 = vld [vmem:[%s10055_s3 + $0x5b0] sm:$0xff] }
 0x3ca   : > { %v9132_v24 = vadd.f32 %v2349_v34, %v2255_v9  ;;  %3254 = vmatpush.bf16.msra.mxu2 %v7628_v62  ;;  %3368 = vmatpush.bf16.msra.mxu3 %v7636_v15  ;;  %v2729_v9 = vpack.c.bf16 %v8956_v19, %v9200_v16  ;;  %v7631_v19 = vld [vmem:[%s10055_s3 + $0x500] sm:$0xff] }
 0x3ce   : > { %3255 = vmatpush.bf16.msra.mxu2 %v7627_v6  ;;  %3369 = vmatpush.bf16.msra.mxu3 %v7635_v12  ;;  %v9228_v6 = vld [vmem:[#allocation2 + $0xa2] sm:$0xff] }
 0x3cf   : > { %v2237_v48 = vpop.f32.mrf.mxu2 }
 0x3d0   : > { %v2256_v36 = vadd.f32 %v2237_v48, %v2142_v29  ;;  %v2351_v3 = vpop.f32.mrf.mxu3  ;;  %v2126_v44 = vpop.f32.mrf.mxu1  ;;  %v7850_v29 = vld [vmem:[#allocation2 + $0x71] sm:$0xff] }
 0x3d1   : > { %v2143_v41 = vadd.f32 %v2126_v44, %v9043_v33  ;;  %v10084_v33 = vpack.c.bf16 %v8497_v18, %v8495_v58  ;;  %v2843_v26 = vpack.c.bf16 %v9198_v22, %v7850_v29 }
 0x3d2   : > { %v9150_v38 = vadd.f32 %v2351_v3, %v2256_v36  ;;  %3256 = vmatpush.bf16.msra.mxu2 %v7626_v45  ;;  %3370 = vmatpush.bf16.msra.mxu3 %v7634_v25  ;;  %v2958_v45 = vpack.c.bf16 %v9228_v6, %v9091_v8  ;;  %v7707_v25 = vld [vmem:[%s10057_s5 + $0x120] sm:$0xff] }
 0x3d3   : > { %2809 = vmatmul.bf16.gmra.mxu1 %v10084_v33  ;;  %5208 = vmatpush.bf16.msrb.mxu0 %v7707_v25  ;;  %v7651_v25 = vld [vmem:[%s10055_s3 + $0x5a0] sm:$0xff] }
 0x3d4   : > { %2923 = vmatmul.bf16.gmra.mxu2 %v2842_v57  ;;  %v9226_v57 = vld [vmem:[#allocation2 + $0xa1] sm:$0xff] }
 0x3d5   : > { %3037 = vmatmul.bf16.gmra.mxu3 %v2956_v46 }
 0x3d6   : > { %3257 = vmatpush.bf16.msra.mxu2 %v7625_v37  ;;  %3371 = vmatpush.bf16.msra.mxu3 %v7633_v61  ;;  %v3290_v37 = vld [vmem:[#allocation2 + $0x50] sm:$0xff] }
 0x3d7   : > { %v2240_v27 = vpop.f32.mrf.mxu2 }
 0x3d8   : > { %v2257_v58 = vadd.f32 %v2240_v27, %v2143_v41  ;;  %v2354_v18 = vpop.f32.mrf.mxu3  ;;  %v2128_v54 = vpop.f32.mrf.mxu1 }
 0x3d9   : > { %v2144_v21 = vadd.f32 %v2128_v54, %v9068_v11  ;;  %v7624_v11 = vld [vmem:[%s10055_s3 + $0x4c8] sm:$0xff] }
 0x3da   : > { %v9177_v14 = vadd.f32 %v2354_v18, %v2257_v58  ;;  %3258 = vmatpush.bf16.msra.mxu2 %v7624_v11  ;;  %3372 = vmatpush.bf16.msra.mxu3 %v7632_v32 }
 0x3de   : > { %3259 = vmatpush.bf16.msra.mxu2 %v7623_v17  ;;  %3373 = vmatpush.bf16.msra.mxu3 %v7631_v19  ;;  %v7661_v17 = vld [vmem:[%s10055_s3 + $0x5f0] sm:$0xff]  ;;  %v7644_v19 = vld [vmem:[%s10055_s3 + $0x568] sm:$0xff] }
 0x3df   : > { %v2242_v1 = vpop.f32.mrf.mxu2 }
 0x3e0   : > { %v2258_v10 = vadd.f32 %v2242_v1, %v2144_v21  ;;  %v2356_v52 = vpop.f32.mrf.mxu3  ;;  %v2131_v47 = vpop.f32.mrf.mxu1  ;;  %v3183_v1 = vpack.c.bf16 %v9014_v35, %v3175_v13  ;;  %v7662_v35 = vld [vmem:[%s10055_s3 + $0x5f8] sm:$0xff]  ;;  %v7640_v13 = vld [vmem:[%s10055_s3 + $0x548] sm:$0xff] }
 0x3e1   : > { %v2145_v42 = vadd.f32 %v2131_v47, %v9085_v4  ;;  %v2957_v4 = vpack.c.bf16 %v9202_v43, %v9064_v5  ;;  %v7645_v47 = vld [vmem:[%s10055_s3 + $0x570] sm:$0xff] }
 0x3e2   : > { %v9206_v34 = vadd.f32 %v2356_v52, %v2258_v10  ;;  %v3289_v10 = vld [vmem:[#allocation2 + $0x40] sm:$0xff]  ;;  %3708 = vmatpush.bf16.msrb.mxu3 %v7662_v35  ;;  %v3294_v35 = vld [vmem:[#allocation2 + $0x90] sm:$0xff] }
 0x3e3   : > { %2814 = vmatmul.bf16.gmra.mxu1 %v2729_v9  ;;  %v3297_v52 = vpack.c.bf16 %v3290_v37, %v3289_v10  ;;  %v7654_v9 = vld [vmem:[%s10055_s3 + $0x5b8] sm:$0xff]  ;;  %v7649_v37 = vld [vmem:[%s10055_s3 + $0x590] sm:$0xff] }
 0x3e4   : > { %2928 = vmatmul.bf16.gmra.mxu2 %v2843_v26 }
 0x3e5   : > { %3042 = vmatmul.bf16.gmra.mxu3 %v2957_v4  ;;  %3594 = vmatpush.bf16.msrb.mxu2 %v7654_v9  ;;  %v7652_v4 = vld [vmem:[%s10055_s3 + $0x5a8] sm:$0xff]  ;;  %v9336_v9 = vld [vmem:[#allocation2 + $0x73] sm:$0xff] }
 0x3e6   : > { %3709 = vmatpush.bf16.msrb.mxu3 %v7661_v17 }
 0x3e7   : > { %v2245_v62 = vpop.f32.mrf.mxu2 }
 0x3e8   : > { %v2259_v15 = vadd.f32 %v2245_v62, %v2145_v42  ;;  %v2359_v48 = vpop.f32.mrf.mxu3  ;;  %v2133_v36 = vpop.f32.mrf.mxu1 }
 0x3e9   : > { %v2146_v44 = vadd.f32 %v2133_v36, %v9097_v2  ;;  %v2844_v2 = vpack.c.bf16 %v9226_v57, %v8952_v30  ;;  %v7646_v30 = vld [vmem:[%s10055_s3 + $0x578] sm:$0xff]  ;;  %3595 = vmatpush.bf16.msrb.mxu2 %v7653_v59 }
 0x3ea   : > { %v9221_v3 = vadd.f32 %v2359_v48, %v2259_v15  ;;  %3480 = vmatpush.bf16.msrb.mxu1 %v7646_v30  ;;  %v9282_v15 = vld [vmem:[#allocation2 + $0x63] sm:$0xff]  ;;  %v7852_v59 = vld [vmem:[#allocation2 + $0x74] sm:$0xff] }
 0x3ed   : > { %3596 = vmatpush.bf16.msrb.mxu2 %v7652_v4  ;;  %v7647_v4 = vld [vmem:[%s10055_s3 + $0x580] sm:$0xff] }
 0x3ee   : > { %3481 = vmatpush.bf16.msrb.mxu1 %v7645_v47 }
 0x3ef   : > { %v2247_v41 = vpop.f32.mrf.mxu2 }
 0x3f0   : > { %v2260_v5 = vadd.f32 %v2247_v41, %v2146_v44  ;;  %v2361_v56 = vpop.f32.mrf.mxu3  ;;  %v2136_v12 = vpop.f32.mrf.mxu1  ;;  %v9284_v41 = vld [vmem:[#allocation2 + $0x54] sm:$0xff] }
 0x3f1   : > { %v2147_v33 = vadd.f32 %v2136_v12, %v9106_v60  ;;  %3597 = vmatpush.bf16.msrb.mxu2 %v7651_v25 }
 0x3f2   : > { %v9230_v46 = vadd.f32 %v2361_v56, %v2260_v5  ;;  %3482 = vmatpush.bf16.msrb.mxu1 %v7644_v19  ;;  %v3291_v5 = vld [vmem:[#allocation2 + $0x60] sm:$0xff] }
 0x3f3   : > { %2819 = vmatmul.bf16.gmra.mxu1 %v2730_v49  ;;  %v7851_v49 = vld [vmem:[#allocation2 + $0x64] sm:$0xff] }
 0x3f4   : > { %2933 = vmatmul.bf16.gmra.mxu2 %v2844_v2  ;;  %v3184_v2 = vpack.c.bf16 %v7851_v49, %v9284_v41  ;;  %v7639_v19 = vld [vmem:[%s10055_s3 + $0x540] sm:$0xff] }
 0x3f5   : > { %3047 = vmatmul.bf16.gmra.mxu3 %v2958_v45  ;;  %v7643_v45 = vld [vmem:[%s10055_s3 + $0x560] sm:$0xff] }
 0x3f6   : > { %3483 = vmatpush.bf16.msrb.mxu1 %v7643_v45  ;;  %v9356_v49 = vld [vmem:[#allocation2 + $0xa3] sm:$0xff] }
 0x3f7   : > { %v2250_v27 = vpop.f32.mrf.mxu2 }
 0x3f8   : > { %v2261_v58 = vadd.f32 %v2250_v27, %v2147_v33  ;;  %v2364_v60 = vpop.f32.mrf.mxu3  ;;  %v2138_v18 = vpop.f32.mrf.mxu1  ;;  %v3070_v33 = vpack.c.bf16 %v9282_v15, %v9010_v63  ;;  %v7659_v27 = vld [vmem:[%s10055_s3 + $0x5e0] sm:$0xff]  ;;  %v7642_v63 = vld [vmem:[%s10055_s3 + $0x558] sm:$0xff] }
 0x3f9   : > { %v2148_v0 = vadd.f32 %v2138_v18, %v9112_v50  ;;  %v10085_v50 = vpack.c.bf16 %v8434_v20, %v8432_v51 }
 0x3fa   : > { %v9242_v54 = vadd.f32 %v2364_v60, %v2261_v58  ;;  %v7650_v58 = vld [vmem:[%s10055_s3 + $0x598] sm:$0xff]  ;;  %3484 = vmatpush.bf16.msrb.mxu1 %v7642_v63 }
 0x3fb   : > { %v7658_v60 = vld [vmem:[%s10055_s3 + $0x5d8] sm:$0xff]  ;;  %3598 = vmatpush.bf16.msrb.mxu2 %v7650_v58 }
 0x3ff   : > { %v2252_v8 = vpop.f32.mrf.mxu2  ;;  %3599 = vmatpush.bf16.msrb.mxu2 %v7649_v37 }
 0x400   : > { %v2262_v21 = vadd.f32 %v2252_v8, %v2148_v0  ;;  %v2366_v23 = vpop.f32.mrf.mxu3  ;;  %v2463_v61 = vpop.f32.mrf.mxu1 }
 0x401   : > { %v2483_v32 = vadd.f32 %v2463_v61, %v9132_v24  ;;  %v7657_v61 = vld [vmem:[%s10055_s3 + $0x5d0] sm:$0xff] }
 0x402   : > { %v9248_v11 = vadd.f32 %v2366_v23, %v2262_v21  ;;  %v7641_v23 = vld [vmem:[%s10055_s3 + $0x550] sm:$0xff] }
 0x403   : > { %3146 = vmatmul.bf16.vlgmr.msra.gmra.mxu1 %v10085_v50 }
 0x404   : > { %3260 = vmatmul.bf16.vlgmr.msra.gmra.mxu2 %v3183_v1  ;;  %3485 = vmatpush.bf16.msrb.mxu1 %v7641_v23  ;;  %v7656_v1 = vld [vmem:[%s10055_s3 + $0x5c8] sm:$0xff] }
 0x405   : > { %3374 = vmatmul.bf16.vlgmr.msra.gmra.mxu3 %v3297_v52  ;;  %v9334_v52 = vld [vmem:[#allocation2 + $0x84] sm:$0xff] }
 0x406   : > { %v3185_v17 = vpack.c.bf16 %v9334_v52, %v7852_v59  ;;  %v7669_v59 = vld [vmem:[%s10055_s3 + $0x630] sm:$0xff] }
 0x407   : > { %v2577_v24 = vpop.f32.mrf.mxu2 }
 0x408   : > { %v2597_v42 = vadd.f32 %v2577_v24, %v2483_v32  ;;  %v2691_v51 = vpop.f32.mrf.mxu3  ;;  %v2465_v20 = vpop.f32.mrf.mxu1  ;;  %v7648_v32 = vld [vmem:[%s10055_s3 + $0x588] sm:$0xff]  ;;  %3486 = vmatpush.bf16.msrb.mxu1 %v7640_v13 }
 0x409   : > { %v2484_v26 = vadd.f32 %v2465_v20, %v9150_v38  ;;  %v7660_v38 = vld [vmem:[%s10055_s3 + $0x5e8] sm:$0xff]  ;;  %3600 = vmatpush.bf16.msrb.mxu2 %v7648_v32 }
 0x40a   : > { %v9264_v29 = vadd.f32 %v2691_v51, %v2597_v42  ;;  %3710 = vmatpush.bf16.msrb.mxu3 %v7660_v38  ;;  %v3293_v51 = vld [vmem:[#allocation2 + $0x80] sm:$0xff] }
 0x40b   : > { %v7655_v38 = vld [vmem:[%s10055_s3 + $0x5c0] sm:$0xff] }
 0x40c   : > { %3487 = vmatpush.bf16.msrb.mxu1 %v7639_v19 }
 0x40d   : > { %3601 = vmatpush.bf16.msrb.mxu2 %v7647_v4 }
 0x40e   : > { %3711 = vmatpush.bf16.msrb.mxu3 %v7659_v27  ;;  %v3296_v27 = vld [vmem:[#allocation2 + $0xb0] sm:$0xff] }
 0x40f   : > { %v2579_v62 = vpop.f32.mrf.mxu2 }
 0x410   : > { %v2598_v48 = vadd.f32 %v2579_v62, %v2484_v26  ;;  %v2693_v36 = vpop.f32.mrf.mxu3  ;;  %v2468_v44 = vpop.f32.mrf.mxu1  ;;  %v3299_v62 = vpack.c.bf16 %v3294_v35, %v3293_v51  ;;  %v3631_v51 = vld [vmem:[#allocation2 + $0x43] sm:$0xff] }
 0x411   : > { %v2485_v12 = vadd.f32 %v2468_v44, %v9177_v14  ;;  %v3298_v14 = vpack.c.bf16 %v9200_v16, %v3291_v5 }
 0x412   : > { %v9286_v56 = vadd.f32 %v2693_v36, %v2598_v48  ;;  %3712 = vmatpush.bf16.msrb.mxu3 %v7658_v60  ;;  %v3072_v60 = vpack.c.bf16 %v9356_v49, %v9093_v39  ;;  %v7670_v39 = vld [vmem:[%s10055_s3 + $0x638] sm:$0xff] }
 0x413   : > { %3151 = vmatmul.bf16.gmra.mxu1 %v3070_v33 }
 0x414   : > { %3265 = vmatmul.bf16.gmra.mxu2 %v3184_v2  ;;  %v9358_v2 = vld [vmem:[#allocation2 + $0xa4] sm:$0xff]  ;;  %3822 = vmatpush.bf16.msra.mxu1 %v7670_v39 }
 0x415   : > { %3379 = vmatmul.bf16.gmra.mxu3 %v3298_v14 }
 0x416   : > { %3713 = vmatpush.bf16.msrb.mxu3 %v7657_v61  ;;  %v3518_v61 = vld [vmem:[#allocation2 + $0x52] sm:$0xff] }
 0x417   : > { %v2582_v18 = vpop.f32.mrf.mxu2 }
 0x418   : > { %v2599_v16 = vadd.f32 %v2582_v18, %v2485_v12  ;;  %v2696_v0 = vpop.f32.mrf.mxu3  ;;  %v2470_v30 = vpop.f32.mrf.mxu1  ;;  %v3186_v18 = vpack.c.bf16 %v9358_v2, %v9095_v31  ;;  %v7706_v31 = vld [vmem:[%s10057_s5 + $0x118] sm:$0xff]  ;;  %3823 = vmatpush.bf16.msra.mxu1 %v7669_v59 }
 0x419   : > { %v2486_v21 = vadd.f32 %v2470_v30, %v9206_v34  ;;  %v9326_v34 = vld [vmem:[#allocation2 + $0x83] sm:$0xff]  ;;  %5209 = vmatpush.bf16.msrb.mxu0 %v7706_v31 }
 0x41a   : > { %v9311_v8 = vadd.f32 %v2696_v0, %v2599_v16  ;;  %v3071_v42 = vpack.c.bf16 %v9326_v34, %v9336_v9  ;;  %3714 = vmatpush.bf16.msrb.mxu3 %v7656_v1  ;;  %v3632_v1 = vld [vmem:[#allocation2 + $0x53] sm:$0xff] }
 0x41e   : > { %3715 = vmatpush.bf16.msrb.mxu3 %v7655_v38 }
 0x41f   : > { %v2584_v10 = vpop.f32.mrf.mxu2 }
 0x420   : > { %v2600_v50 = vadd.f32 %v2584_v10, %v2486_v21  ;;  %v2698_v47 = vpop.f32.mrf.mxu3  ;;  %v2473_v24 = vpop.f32.mrf.mxu1 }
 0x421   : > { %v2487_v26 = vadd.f32 %v2473_v24, %v9221_v3 }
 0x422   : > { %v9340_v20 = vadd.f32 %v2698_v47, %v2600_v50  ;;  %v3403_v50 = vld [vmem:[#allocation2 + $0x41] sm:$0xff] }
 0x423   : > { %3156 = vmatmul.bf16.gmra.mxu1 %v3071_v42  ;;  %v3517_v47 = vld [vmem:[#allocation2 + $0x42] sm:$0xff] }
 0x424   : > { %3270 = vmatmul.bf16.gmra.mxu2 %v3185_v17  ;;  %v3525_v42 = vpack.c.bf16 %v3518_v61, %v3517_v47  ;;  %v3524_v47 = vld [vmem:[#allocation2 + $0xb2] sm:$0xff] }
 0x425   : > { %3384 = vmatmul.bf16.gmra.mxu3 %v3299_v62 }
 0x427   : > { %v2587_v3 = vpop.f32.mrf.mxu2 }
 0x428   : > { %v2601_v48 = vadd.f32 %v2587_v3, %v2487_v26  ;;  %v2701_v36 = vpop.f32.mrf.mxu3  ;;  %v2475_v44 = vpop.f32.mrf.mxu1  ;;  %v3639_v26 = vpack.c.bf16 %v3632_v1, %v3631_v51  ;;  %v7668_v3 = vld [vmem:[%s10055_s3 + $0x628] sm:$0xff] }
 0x429   : > { %v2488_v12 = vadd.f32 %v2475_v44, %v9230_v46  ;;  %v3300_v46 = vpack.c.bf16 %v3296_v27, %v9224_v55  ;;  %3824 = vmatpush.bf16.msra.mxu1 %v7668_v3  ;;  %v3640_v27 = vpack.c.bf16 %v9336_v9, %v9282_v15  ;;  %v3408_v9 = vld [vmem:[#allocation2 + $0x91] sm:$0xff] }
 0x42a   : > { %v9353_v5 = vadd.f32 %v2701_v36, %v2601_v48  ;;  %v3520_v36 = vld [vmem:[#allocation2 + $0x72] sm:$0xff]  ;;  %v3413_v31 = vpack.c.bf16 %v3408_v9, %v9198_v22 }
 0x42f   : > { %v2589_v33 = vpop.f32.mrf.mxu2 }
 0x430   : > { %v2602_v45 = vadd.f32 %v2589_v33, %v2488_v12  ;;  %v2703_v25 = vpop.f32.mrf.mxu3  ;;  %v2478_v14 = vpop.f32.mrf.mxu1  ;;  %v3519_v33 = vld [vmem:[#allocation2 + $0x62] sm:$0xff] }
 0x431   : > { %v2489_v58 = vadd.f32 %v2478_v14, %v9242_v54  ;;  %v3404_v54 = vld [vmem:[#allocation2 + $0x51] sm:$0xff]  ;;  %v10086_v14 = vpack.c.bf16 %v8545_v7, %v8548_v40  ;;  %v7664_v40 = vld [vmem:[%s10055_s3 + $0x608] sm:$0xff] }
 0x432   : > { %v9360_v63 = vadd.f32 %v2703_v25, %v2602_v45  ;;  %v3411_v24 = vpack.c.bf16 %v3404_v54, %v3403_v50  ;;  %v3526_v25 = vpack.c.bf16 %v3520_v36, %v3519_v33  ;;  %v7665_v7 = vld [vmem:[%s10055_s3 + $0x610] sm:$0xff]  ;;  %v7663_v54 = vld [vmem:[%s10055_s3 + $0x600] sm:$0xff] }
 0x433   : > { %3161 = vmatmul.bf16.gmra.mxu1 %v3072_v60 }
 0x434   : > { %3275 = vmatmul.bf16.gmra.mxu2 %v3186_v18 }
 0x435   : > { %3389 = vmatmul.bf16.gmra.mxu3 %v3300_v46 }
 0x437   : > { %v2592_v16 = vpop.f32.mrf.mxu2 }
 0x438   : > { %v2603_v0 = vadd.f32 %v2592_v16, %v2489_v58  ;;  %v2706_v30 = vpop.f32.mrf.mxu3  ;;  %v2480_v21 = vpop.f32.mrf.mxu1  ;;  %v7666_v58 = vld [vmem:[%s10055_s3 + $0x618] sm:$0xff] }
 0x439   : > { %v2490_v37 = vadd.f32 %v2480_v21, %v9248_v11 }
 0x43a   : > { %v9368_v23 = vadd.f32 %v2706_v30, %v2603_v0  ;;  %v3522_v30 = vld [vmem:[#allocation2 + $0x92] sm:$0xff] }
 0x43f   : > { %v2594_v55 = vpop.f32.mrf.mxu2 }
 0x440   : > { %v2604_v13 = vadd.f32 %v2594_v55, %v2490_v37  ;;  %v2708_v32 = vpop.f32.mrf.mxu3  ;;  %v2805_v10 = vpop.f32.mrf.mxu1  ;;  %v3636_v37 = vld [vmem:[#allocation2 + $0x93] sm:$0xff]  ;;  %v3527_v55 = vpack.c.bf16 %v3522_v30, %v9202_v43 }
 0x441   : > { %v2825_v35 = vadd.f32 %v2805_v10, %v9264_v29  ;;  %v3641_v61 = vpack.c.bf16 %v3636_v37, %v9326_v34  ;;  %v3410_v43 = vld [vmem:[#allocation2 + $0xb1] sm:$0xff] }
 0x442   : > { %v9377_v11 = vadd.f32 %v2708_v32, %v2604_v13  ;;  %v3414_v51 = vpack.c.bf16 %v3410_v43, %v9226_v57 }
 0x443   : > { %3488 = vmatmul.bf16.vlgmr.msrb.gmra.mxu1 %v3411_v24  ;;  %v3638_v24 = vld [vmem:[#allocation2 + $0xb3] sm:$0xff] }
 0x444   : > { %3602 = vmatmul.bf16.vlgmr.msrb.gmra.mxu2 %v3525_v42  ;;  %v3642_v59 = vpack.c.bf16 %v3638_v24, %v9356_v49 }
 0x445   : > { %3716 = vmatmul.bf16.vlgmr.msrb.gmra.mxu3 %v3639_v26  ;;  %v3528_v26 = vpack.c.bf16 %v3524_v47, %v9228_v6  ;;  %v7705_v6 = vld [vmem:[%s10057_s5 + $0x110] sm:$0xff] }
 0x446   : > { %5210 = vmatpush.bf16.msrb.mxu0 %v7705_v6  ;;  %v7684_v6 = vld [vmem:[%s10057_s5 + $0x68] sm:$0xff] }
 0x447   : > { %v2919_v17 = vpop.f32.mrf.mxu2 }
 0x448   : > { %v2939_v19 = vadd.f32 %v2919_v17, %v2825_v35  ;;  %v3033_v4 = vpop.f32.mrf.mxu3  ;;  %v2807_v38 = vpop.f32.mrf.mxu1 }
 0x449   : > { %v9386_v29 = vadd.f32 %v2807_v38, %v9286_v56  ;;  %v7667_v56 = vld [vmem:[%s10055_s3 + $0x620] sm:$0xff] }
 0x44a   : > { %v9383_v62 = vadd.f32 %v3033_v4, %v2939_v19  ;;  %3825 = vmatpush.bf16.msra.mxu1 %v7667_v56 }
 0x44e   : > { %3826 = vmatpush.bf16.msra.mxu1 %v7666_v58 }
 0x44f   : > { %v9391_v48 = vpop.f32.mrf.mxu2 }
 0x450   : > { %v9393_v44 = vpop.f32.mrf.mxu3  ;;  %v2810_v12 = vpop.f32.mrf.mxu1 }
 0x451   : > { %v2827_v45 = vadd.f32 %v2810_v12, %v9311_v8  ;;  %v3745_v12 = vld [vmem:[#allocation2 + $0x44] sm:$0xff] }
 0x452   : > { %3827 = vmatpush.bf16.msra.mxu1 %v7665_v7  ;;  %v3753_v57 = vpack.c.bf16 %v9284_v41, %v3745_v12 }
 0x453   : > { %3493 = vmatmul.bf16.gmra.mxu1 %v10086_v14 }
 0x454   : > { %3607 = vmatmul.bf16.gmra.mxu2 %v3526_v25 }
 0x455   : > { %3721 = vmatmul.bf16.gmra.mxu3 %v3640_v27  ;;  %v3750_v27 = vld [vmem:[#allocation2 + $0x94] sm:$0xff] }
 0x456   : > { %3828 = vmatpush.bf16.msra.mxu1 %v7664_v40 }
 0x457   : > { %v2924_v8 = vpop.f32.mrf.mxu2 }
 0x458   : > { %v2941_v60 = vadd.f32 %v2924_v8, %v2827_v45  ;;  %v3038_v18 = vpop.f32.mrf.mxu3  ;;  %v2812_v46 = vpop.f32.mrf.mxu1 }
 0x459   : > { %v9408_v0 = vadd.f32 %v2812_v46, %v9340_v20 }
 0x45a   : > { %v3055_v16 = vadd.f32 %v3038_v18, %v2941_v60  ;;  %3829 = vmatpush.bf16.msra.mxu1 %v7663_v54  ;;  %v3755_v60 = vpack.c.bf16 %v3750_v27, %v9334_v52 }
 0x45f   : > { %v9416_v15 = vpop.f32.mrf.mxu2 }
 0x460   : > { %v9418_v21 = vpop.f32.mrf.mxu3  ;;  %v2815_v39 = vpop.f32.mrf.mxu1 }
 0x461   : > { %v2829_v20 = vadd.f32 %v2815_v39, %v9353_v5 }
 0x463   : > { %3498 = vmatmul.bf16.gmra.mxu1 %v3413_v31 }
 0x464   : > { %3612 = vmatmul.bf16.gmra.mxu2 %v3527_v55 }
 0x465   : > { %3726 = vmatmul.bf16.gmra.mxu3 %v3641_v61 }
 0x467   : > { %v2929_v13 = vpop.f32.mrf.mxu2 }
 0x468   : > { %v2943_v32 = vadd.f32 %v2929_v13, %v2829_v20  ;;  %v3043_v1 = vpop.f32.mrf.mxu3  ;;  %v2817_v10 = vpop.f32.mrf.mxu1 }
 0x469   : > { %v9428_v5 = vadd.f32 %v2817_v10, %v9360_v63 }
 0x46a   : > { %v3057_v50 = vadd.f32 %v3043_v1, %v2943_v32 }
 0x46f   : > { %v9430_v22 = vpop.f32.mrf.mxu2 }
 0x470   : > { %v9432_v35 = vpop.f32.mrf.mxu3  ;;  %v2820_v34 = vpop.f32.mrf.mxu1 }
 0x471   : > { %v2831_v42 = vadd.f32 %v2820_v34, %v9368_v23 }
 0x473   : > { %3503 = vmatmul.bf16.gmra.mxu1 %v3414_v51 }
 0x474   : > { %3617 = vmatmul.bf16.gmra.mxu2 %v3528_v26 }
 0x475   : > { %3731 = vmatmul.bf16.gmra.mxu3 %v3642_v59 }
 0x477   : > { %v2934_v63 = vpop.f32.mrf.mxu2 }
 0x478   : > { %v2945_v17 = vadd.f32 %v2934_v63, %v2831_v42  ;;  %v3048_v19 = vpop.f32.mrf.mxu3  ;;  %v2822_v4 = vpop.f32.mrf.mxu1  ;;  %v7678_v63 = vld [vmem:[%s10057_s5 + $0x38] sm:$0xff] }
 0x479   : > { %v2832_v3 = vadd.f32 %v2822_v4, %v9377_v11  ;;  %v10087_v11 = vpack.c.bf16 %v8552_v53, %v8550_v28  ;;  %v3752_v28 = vld [vmem:[#allocation2 + $0xb4] sm:$0xff]  ;;  %5153 = vmatpush.bf16.msra.mxu2 %v7678_v63 }
 0x47a   : > { %v3059_v38 = vadd.f32 %v3048_v19, %v2945_v17  ;;  %v3756_v9 = vpack.c.bf16 %v3752_v28, %v9358_v2  ;;  %v7704_v2 = vld [vmem:[%s10057_s5 + $0x108] sm:$0xff]  ;;  %v7686_v17 = vld [vmem:[%s10057_s5 + $0x78] sm:$0xff]  ;;  %v7677_v19 = vld [vmem:[%s10057_s5 + $0x30] sm:$0xff] }
 0x47b   : > { %5211 = vmatpush.bf16.msrb.mxu0 %v7704_v2  ;;  %5166 = vmatpush.bf16.msra.mxu3 %v7686_v17  ;;  %v7685_v4 = vld [vmem:[%s10057_s5 + $0x70] sm:$0xff]  ;;  %v7718_v28 = vld [vmem:[%s10057_s5 + $0x178] sm:$0xff] }
 0x47c   : > { %5218 = vmatpush.bf16.msrb.mxu1 %v7718_v28  ;;  %v7692_v28 = vld [vmem:[%s10057_s5 + $0xa8] sm:$0xff] }
 0x47d   : > { %5154 = vmatpush.bf16.msra.mxu2 %v7677_v19 }
 0x47f   : > { %v2936_v33 = vpop.f32.mrf.mxu2  ;;  %5167 = vmatpush.bf16.msra.mxu3 %v7685_v4  ;;  %v7672_v4 = vld [vmem:[%s10057_s5 + $0x8] sm:$0xff] }
 0x480   : > { %v3147_v36 = vpop.f32.mrf.mxu1  ;;  %v2946_v30 = vadd.f32 %v2936_v33, %v2832_v3 }
 0x481   : > { %v9440_v23 = vadd.f32 %v3147_v36, %v9383_v62  ;;  %v3050_v62 = vpop.f32.mrf.mxu3  ;;  %v2940_v36 = vadd.f32 %v9391_v48, %v9386_v29  ;;  %v7675_v29 = vld [vmem:[%s10057_s5 + $0x20] sm:$0xff] }
 0x482   : > { %v3060_v39 = vadd.f32 %v3050_v62, %v2946_v30  ;;  %v7683_v48 = vld [vmem:[%s10057_s5 + $0x60] sm:$0xff]  ;;  %v7673_v30 = vld [vmem:[%s10057_s5 + $0x10] sm:$0xff] }
 0x483   : > { %3830 = vmatmul.bf16.vlgmr.msra.gmra.mxu1 %v3753_v57  ;;  %v7676_v57 = vld [vmem:[%s10057_s5 + $0x28] sm:$0xff]  ;;  %5168 = vmatpush.bf16.msra.mxu3 %v7684_v6 }
 0x484   : > { %5155 = vmatpush.bf16.msra.mxu2 %v7676_v57 }
 0x487   : > { %v3261_v41 = vpop.f32.mrf.mxu2  ;;  %5169 = vmatpush.bf16.msra.mxu3 %v7683_v48 }
 0x488   : > { %v9446_v49 = vpop.f32.mrf.mxu1  ;;  %v3281_v12 = vadd.f32 %v3261_v41, %v9440_v23  ;;  %5156 = vmatpush.bf16.msra.mxu2 %v7675_v29 }
 0x489   : > { %v3375_v14 = vpop.f32.mrf.mxu3 }
 0x48f   : > { %v3263_v18 = vpop.f32.mrf.mxu2 }
 0x490   : > { %v3152_v45 = vpop.f32.mrf.mxu1 }
 0x491   : > { %v9448_v25 = vadd.f32 %v3152_v45, %v3055_v16  ;;  %v9460_v16 = vpop.f32.mrf.mxu3  ;;  %v3054_v45 = vadd.f32 %v9393_v44, %v2940_v36  ;;  %v7674_v44 = vld [vmem:[%s10057_s5 + $0x18] sm:$0xff]  ;;  %v7716_v36 = vld [vmem:[%s10057_s5 + $0x168] sm:$0xff] }
 0x492   : > { %5157 = vmatpush.bf16.msra.mxu2 %v7674_v44  ;;  %v2944_v44 = vadd.f32 %v9430_v22, %v9428_v5 }
 0x493   : > { %3835 = vmatmul.bf16.gmra.mxu1 %v10087_v11  ;;  %v3395_v11 = vadd.f32 %v3375_v14, %v3281_v12  ;;  %v3168_v62 = vadd.f32 %v9446_v49, %v3054_v45  ;;  %v7682_v14 = vld [vmem:[%s10057_s5 + $0x58] sm:$0xff]  ;;  %v7679_v12 = vld [vmem:[%s10057_s5 + $0x40] sm:$0xff] }
 0x494   : > { %5170 = vmatpush.bf16.msra.mxu3 %v7682_v14 }
 0x496   : > { %5158 = vmatpush.bf16.msra.mxu2 %v7673_v30 }
 0x497   : > { %v9462_v7 = vpop.f32.mrf.mxu2 }
 0x498   : > { %v9453_v56 = vpop.f32.mrf.mxu1  ;;  %v3283_v63 = vadd.f32 %v9462_v7, %v9448_v25  ;;  %v7671_v7 = vld [vmem:[%s10057_s5] sm:$0xff] }
 0x499   : > { %v9467_v37 = vpop.f32.mrf.mxu3 }
 0x49a   : > { %5159 = vmatpush.bf16.msra.mxu2 %v7672_v4 }
 0x49e   : > { %5160 = vmatpush.bf16.msra.mxu2 %v7671_v7 }
 0x49f   : > { %v9469_v52 = vpop.f32.mrf.mxu2 }
 0x4a0   : > { %v3157_v58 = vpop.f32.mrf.mxu1 }
 0x4a1   : > { %v9455_v8 = vadd.f32 %v3157_v58, %v3057_v50  ;;  %v9473_v55 = vpop.f32.mrf.mxu3  ;;  %v3282_v58 = vadd.f32 %v3263_v18, %v3168_v62 }
 0x4a3   : > { %3840 = vmatmul.bf16.gmra.mxu1 %v3755_v60 }
 0x4a7   : > { %v9475_v61 = vpop.f32.mrf.mxu2 }
 0x4a8   : > { %v9458_v46 = vpop.f32.mrf.mxu1  ;;  %v3285_v5 = vadd.f32 %v9475_v61, %v9455_v8 }
 0x4a9   : > { %v9477_v13 = vpop.f32.mrf.mxu3 }
 0x4af   : > { %v9482_v1 = vpop.f32.mrf.mxu2 }
 0x4b0   : > { %v3162_v53 = vpop.f32.mrf.mxu1 }
 0x4b1   : > { %v9464_v40 = vadd.f32 %v3162_v53, %v3059_v38  ;;  %v9486_v50 = vpop.f32.mrf.mxu3  ;;  %v3396_v53 = vadd.f32 %v9460_v16, %v3282_v58  ;;  %v7714_v58 = vld [vmem:[%s10057_s5 + $0x158] sm:$0xff] }
 0x4b3   : > { %3845 = vmatmul.bf16.gmra.mxu1 %v3756_v9  ;;  %v9548_v9 = vld [vmem:[%s10056_s4] ss:$0 sm:$0xff] }
 0x4b7   : > { %v9488_v43 = vpop.f32.mrf.mxu2 }
 0x4b8   : > { %v3164_v20 = vpop.f32.mrf.mxu1 }
 0x4b9   : > { %v9471_v31 = vadd.f32 %v3164_v20, %v3060_v39  ;;  %v9492_v24 = vpop.f32.mrf.mxu3  ;;  %v7681_v39 = vld [vmem:[%s10057_s5 + $0x50] sm:$0xff] }
 0x4ba   : > { %5171 = vmatpush.bf16.msra.mxu3 %v7681_v39 }
 0x4bf   : > { %v9494_v34 = vpop.f32.mrf.mxu2 }
 0x4c0   : > { %v3489_v54 = vpop.f32.mrf.mxu1 }
 0x4c1   : > { %v9498_v51 = vpop.f32.mrf.mxu3  ;;  %v3509_v41 = vadd.f32 %v3489_v54, %v3395_v11  ;;  %v7717_v54 = vld [vmem:[%s10057_s5 + $0x170] sm:$0xff] }
 0x4c2   : > { %5219 = vmatpush.bf16.msrb.mxu1 %v7717_v54 }
 0x4c6   : > { %5220 = vmatpush.bf16.msrb.mxu1 %v7716_v36  ;;  %v3399_v36 = vadd.f32 %v9477_v13, %v3285_v5 }
 0x4c7   : > { %v3603_v59 = vpop.f32.mrf.mxu2 }
 0x4c8   : > { %v3491_v32 = vpop.f32.mrf.mxu1  ;;  %v3623_v60 = vadd.f32 %v3603_v59, %v3509_v41  ;;  %v2942_v59 = vadd.f32 %v9416_v15, %v9408_v0  ;;  %v3397_v15 = vadd.f32 %v9467_v37, %v3283_v63  ;;  %v7715_v37 = vld [vmem:[%s10057_s5 + $0x160] sm:$0xff] }
 0x4c9   : > { %v3717_v38 = vpop.f32.mrf.mxu3  ;;  %v3510_v16 = vadd.f32 %v3491_v32, %v3396_v53  ;;  %v7680_v32 = vld [vmem:[%s10057_s5 + $0x48] sm:$0xff] }
 0x4ca   : > { %v3737_v18 = vadd.f32 %v3717_v38, %v3623_v60  ;;  %5172 = vmatpush.bf16.msra.mxu3 %v7680_v32  ;;  %v3056_v0 = vadd.f32 %v9418_v21, %v2942_v59  ;;  %v7702_v21 = vld [vmem:[%s10057_s5 + $0xf8] sm:$0xff]  ;;  %5221 = vmatpush.bf16.msrb.mxu1 %v7715_v37  ;;  %v3058_v59 = vadd.f32 %v9432_v35, %v2944_v44  ;;  %v7691_v32 = vld [vmem:[%s10057_s5 + $0xa0] sm:$0xff] }
 0x4cc   : > { %v3170_v45 = vadd.f32 %v9453_v56, %v3056_v0  ;;  %v7701_v56 = vld [vmem:[%s10057_s5 + $0xf0] sm:$0xff]  ;;  %v3172_v35 = vadd.f32 %v9458_v46, %v3058_v59 }
 0x4ce   : > { %5173 = vmatpush.bf16.msra.mxu3 %v7679_v12  ;;  %v3284_v48 = vadd.f32 %v9469_v52, %v3170_v45  ;;  %5222 = vmatpush.bf16.msrb.mxu1 %v7714_v58 }
 0x4cf   : > { %v3605_v33 = vpop.f32.mrf.mxu2 }
 0x4d0   : > { %v9484_v10 = vpop.f32.mrf.mxu1  ;;  %v3624_v17 = vadd.f32 %v3605_v33, %v3510_v16  ;;  %v7694_v33 = vld [vmem:[%s10057_s5 + $0xb8] sm:$0xff]  ;;  %v3398_v52 = vadd.f32 %v9473_v55, %v3284_v48  ;;  %v7713_v55 = vld [vmem:[%s10057_s5 + $0x150] sm:$0xff] }
 0x4d1   : > { %v3719_v27 = vpop.f32.mrf.mxu3  ;;  %v3511_v11 = vadd.f32 %v9484_v10, %v3397_v15  ;;  %5179 = vmatpush.bf16.msrb.mxu2 %v7694_v33  ;;  %v7712_v15 = vld [vmem:[%s10057_s5 + $0x148] sm:$0xff]  ;;  %v7690_v48 = vld [vmem:[%s10057_s5 + $0x98] sm:$0xff] }
 0x4d2   : > { %v3738_v25 = vadd.f32 %v3719_v27, %v3624_v17  ;;  %5192 = vmatpush.bf16.msrb.mxu3 %v7702_v21  ;;  %v7693_v27 = vld [vmem:[%s10057_s5 + $0xb0] sm:$0xff]  ;;  %5223 = vmatpush.bf16.msrb.mxu1 %v7713_v55 }
 0x4d5   : > { %5180 = vmatpush.bf16.msrb.mxu2 %v7693_v27  ;;  %v3286_v27 = vadd.f32 %v9482_v1, %v3172_v35 }
 0x4d6   : > { %5193 = vmatpush.bf16.msrb.mxu3 %v7701_v56  ;;  %5224 = vmatpush.bf16.msrb.mxu1 %v7712_v15  ;;  %v7769_v15 = vld [vmem:[%s10057_s5 + $0x310] sm:$0xff] }
 0x4d7   : > { %v3608_v49 = vpop.f32.mrf.mxu2 }
 0x4d8   : > { %v9490_v47 = vpop.f32.mrf.mxu1  ;;  %v3625_v62 = vadd.f32 %v3608_v49, %v3511_v11  ;;  %v7700_v49 = vld [vmem:[%s10057_s5 + $0xe8] sm:$0xff] }
 0x4d9   : > { %v3722_v38 = vpop.f32.mrf.mxu3  ;;  %v3512_v53 = vadd.f32 %v9490_v47, %v3398_v52  ;;  %5181 = vmatpush.bf16.msrb.mxu2 %v7692_v28  ;;  %v7742_v52 = vld [vmem:[%s10057_s5 + $0x238] sm:$0xff] }
 0x4da   : > { %v3739_v60 = vadd.f32 %v3722_v38, %v3625_v62  ;;  %5194 = vmatpush.bf16.msrb.mxu3 %v7700_v49  ;;  %v7699_v38 = vld [vmem:[%s10057_s5 + $0xe0] sm:$0xff]  ;;  %v7698_v62 = vld [vmem:[%s10057_s5 + $0xd8] sm:$0xff] }
 0x4dd   : > { %5182 = vmatpush.bf16.msrb.mxu2 %v7691_v32 }
 0x4de   : > { %5195 = vmatpush.bf16.msrb.mxu3 %v7699_v38  ;;  %v7688_v38 = vld [vmem:[%s10057_s5 + $0x88] sm:$0xff] }
 0x4df   : > { %v3610_v57 = vpop.f32.mrf.mxu2 }
 0x4e0   : > { %v9496_v42 = vpop.f32.mrf.mxu1  ;;  %v3626_v39 = vadd.f32 %v3610_v57, %v3512_v53 }
 0x4e1   : > { %v3724_v10 = vpop.f32.mrf.mxu3  ;;  %v3513_v45 = vadd.f32 %v9496_v42, %v3399_v36  ;;  %v7711_v42 = vld [vmem:[%s10057_s5 + $0x140] sm:$0xff]  ;;  %5183 = vmatpush.bf16.msrb.mxu2 %v7690_v48  ;;  %v7696_v36 = vld [vmem:[%s10057_s5 + $0xc8] sm:$0xff] }
 0x4e2   : > { %5196 = vmatpush.bf16.msrb.mxu3 %v7698_v62  ;;  %5225 = vmatpush.bf16.msrb.mxu1 %v7711_v42 }
 0x4e7   : > { %v3613_v22 = vpop.f32.mrf.mxu2 }
 0x4e8   : > { %v9500_v26 = vpop.f32.mrf.mxu1  ;;  %v3627_v44 = vadd.f32 %v3613_v22, %v3513_v45  ;;  %v7689_v22 = vld [vmem:[%s10057_s5 + $0x90] sm:$0xff] }
 0x4e9   : > { %5184 = vmatpush.bf16.msrb.mxu2 %v7689_v22 }
 0x4ed   : > { %5185 = vmatpush.bf16.msrb.mxu2 %v7688_v38 }
 0x4ef   : > { %v3615_v1 = vpop.f32.mrf.mxu2 }
 0x4f0   : > { %v9514_v3 = vpop.f32.mrf.mxu1 }
 0x4f8   : > { %v9532_v23 = vpop.f32.mrf.mxu1 }
 0x500   : > { %v3831_v20 = vpop.f32.mrf.mxu1 }
 0x501   : > { %v3851_v2 = vadd.f32 %v3831_v20, %v3737_v18 }
 0x503   : > { %v3863_v19 = vadd.f32 %v9548_v9, %v3851_v2 }
 0x505   : > { %3871 = vst [vmem:[#allocation3] sm:$0xff] %v3863_v19 }
 0x508   : > { %v3833_v6 = vpop.f32.mrf.mxu1 }
 0x509   : > { %v3852_v29 = vadd.f32 %v3833_v6, %v3738_v25  ;;  %v3740_v25 = vadd.f32 %v3724_v10, %v3626_v39  ;;  %v3727_v6 = vpop.f32.mrf.mxu3 }
 0x50b   : > { %v3864_v41 = vadd.f32 %v9548_v9, %v3852_v29 }
 0x50c   : > { %v3879_v30 = vld [vmem:[#allocation3] sm:$0x3]  ;;  %v3896_v20 = vld [vmem:[#allocation3 + $0x2] sm:$0x3]  ;;  %v3908_v54 = vld [vmem:[#allocation3 + $0x4] sm:$0x3] }
 0x50d   : > { %3872 = vst [vmem:[#allocation3 + $0x8] sm:$0xff] %v3864_v41  ;;  %v3920_v16 = vld [vmem:[#allocation3 + $0x6] sm:$0x3] }
 0x50e   : > { %v7703_v41 = vld [vmem:[%s10057_s5 + $0x100] sm:$0xff] }
 0x50f   : > { %5212 = vmatpush.bf16.msrb.mxu0 %v7703_v41 }
 0x510   : > { %v3836_v14 = vpop.f32.mrf.mxu1 }
 0x511   : > { %v3853_v18 = vadd.f32 %v3836_v14, %v3739_v60  ;;  %v7750_v60 = vld [vmem:[%s10057_s5 + $0x278] sm:$0xff]  ;;  %v3729_v35 = vpop.f32.mrf.mxu3 }
 0x512   : > { %5270 = vmatpush.bf16.msra.mxu1 %v7750_v60  ;;  %v7695_v60 = vld [vmem:[%s10057_s5 + $0xc0] sm:$0xff] }
 0x513   : > { %v3865_v2 = vadd.f32 %v9548_v9, %v3853_v18  ;;  %5257 = vmatpush.bf16.msra.mxu0 %v7742_v52  ;;  %v7687_v52 = vld [vmem:[%s10057_s5 + $0x80] sm:$0xff] }
 0x514   : > { %v3880_v63 = vld [vmem:[#allocation3 + $0x8] sm:$0x3]  ;;  %v3897_v17 = vld [vmem:[#allocation3 + $0xa] sm:$0x3]  ;;  %v3909_v47 = vld [vmem:[#allocation3 + $0xc] sm:$0x3]  ;;  %5186 = vmatpush.bf16.msrb.mxu2 %v7687_v52 }
 0x515   : > { %v3881_v19 = vmax.f32 %v3879_v30, %v3880_v63  ;;  %v3898_v4 = vmax.f32 %v3896_v20, %v3897_v17  ;;  %v3910_v8 = vmax.f32 %v3908_v54, %v3909_v47  ;;  %v3921_v61 = vld [vmem:[#allocation3 + $0xe] sm:$0x3]  ;;  %3873 = vst [vmem:[#allocation3 + $0x10] sm:$0xff] %v3865_v2  ;;  %v3891_v30 = vlaneseq  ;;  %v7697_v54 = vld [vmem:[%s10057_s5 + $0xd0] sm:$0xff] }
 0x516   : > { %v3922_v0 = vmax.f32 %v3920_v16, %v3921_v61  ;;  %v3400_v16 = vadd.f32 %v9486_v50, %v3286_v27  ;;  %v3741_v2 = vadd.f32 %v3727_v6, %v3627_v44  ;;  %v7741_v63 = vld [vmem:[%s10057_s5 + $0x230] sm:$0xff]  ;;  %5197 = vmatpush.bf16.msrb.mxu3 %v7697_v54 }
 0x517   : > { %v3883_v7 = vsel %vm3882_vm1, %v3881_v19, -inf  ;;  %v3899_v12 = vsel %vm3882_vm1, %v3898_v4, -inf  ;;  %v3911_v57 = vsel %vm3882_vm1, %v3910_v8, -inf  ;;  %v7749_v17 = vld [vmem:[%s10057_s5 + $0x270] sm:$0xff]  ;;  %5258 = vmatpush.bf16.msra.mxu0 %v7741_v63  ;;  %vm9676_vm2 = vcmp.lt.s32.totalorder %v3891_v30, 128 }
 0x518   : > { %v3884_v33 = vrot.slane %v3883_v7, 4  ;;  %v3900_v21 = vrot.slane %v3899_v12, 4  ;;  %v3912_v13 = vrot.slane %v3911_v57, 4  ;;  %v3923_v46 = vsel %vm3882_vm1, %v3922_v0, -inf  ;;  %v3838_v37 = vpop.f32.mrf.mxu1  ;;  %5271 = vmatpush.bf16.msra.mxu1 %v7749_v17 }
 0x519   : > { %v3924_v11 = vrot.slane %v3923_v46, 4  ;;  %v3854_v29 = vadd.f32 %v3838_v37, %v3740_v25  ;;  %v3514_v61 = vadd.f32 %v9500_v26, %v3400_v16  ;;  %v3287_v37 = vadd.f32 %v9488_v43, %v9464_v40 }
 0x51a   : > { %v3885_v56 = vmax.f32 %v3883_v7, %v3884_v33  ;;  %v3901_v10 = vmax.f32 %v3899_v12, %v3900_v21  ;;  %v3913_v58 = vmax.f32 %v3911_v57, %v3912_v13  ;;  %v7740_v7 = vld [vmem:[%s10057_s5 + $0x228] sm:$0xff]  ;;  %5198 = vmatpush.bf16.msrb.mxu3 %v7696_v36  ;;  %v3288_v16 = vadd.f32 %v9494_v34, %v9471_v31  ;;  %v7747_v31 = vld [vmem:[%s10057_s5 + $0x260] sm:$0xff] }
 0x51b   : > { %v3925_v14 = vmax.f32 %v3923_v46, %v3924_v11  ;;  %v3866_v28 = vadd.f32 %v9548_v9, %v3854_v29  ;;  %v7748_v12 = vld [vmem:[%s10057_s5 + $0x268] sm:$0xff]  ;;  %v3628_v57 = vadd.f32 %v3615_v1, %v3514_v61  ;;  %5259 = vmatpush.bf16.msra.mxu0 %v7740_v7  ;;  %v3401_v1 = vadd.f32 %v9492_v24, %v3287_v37 }
 0x51c   : > { %v3886_v49 = vrot.slane %v3885_v56, 2  ;;  %v3902_v55 = vrot.slane %v3901_v10, 2  ;;  %v3914_v53 = vrot.slane %v3913_v58, 2  ;;  %v3932_v33 = vld [vmem:[#allocation3 + $0x10] sm:$0x3]  ;;  %5272 = vmatpush.bf16.msra.mxu1 %v7748_v12  ;;  %v3402_v34 = vadd.f32 %v9498_v51, %v3288_v16  ;;  %v7738_v12 = vld [vmem:[%s10057_s5 + $0x218] sm:$0xff] }
 0x51d   : > { %v3926_v18 = vrot.slane %v3925_v14, 2  ;;  %3874 = vst [vmem:[#allocation3 + $0x18] sm:$0xff] %v3866_v28  ;;  %v3944_v21 = vld [vmem:[#allocation3 + $0x12] sm:$0x3]  ;;  %v3956_v13 = vld [vmem:[#allocation3 + $0x14] sm:$0x3]  ;;  %v3742_v44 = vadd.f32 %v3729_v35, %v3628_v57  ;;  %v3515_v24 = vadd.f32 %v9514_v3, %v3401_v1 }
 0x51e   : > { %v3887_v5 = vmax.f32 %v3885_v56, %v3886_v49  ;;  %v3903_v39 = vmax.f32 %v3901_v10, %v3902_v55  ;;  %v3915_v20 = vmax.f32 %v3913_v58, %v3914_v53  ;;  %v3968_v48 = vld [vmem:[#allocation3 + $0x16] sm:$0x3]  ;;  %v3618_v58 = vpop.f32.mrf.mxu2  ;;  %5199 = vmatpush.bf16.msrb.mxu3 %v7695_v60  ;;  %v7739_v3 = vld [vmem:[%s10057_s5 + $0x220] sm:$0xff]  ;;  %v3516_v57 = vadd.f32 %v9532_v23, %v3402_v34  ;;  %v7746_v51 = vld [vmem:[%s10057_s5 + $0x258] sm:$0xff] }
 0x51f   : > { %v3927_v59 = vmax.f32 %v3925_v14, %v3926_v18  ;;  %v3629_v17 = vadd.f32 %v3618_v58, %v3515_v24  ;;  %5260 = vmatpush.bf16.msra.mxu0 %v7739_v3  ;;  %v7737_v23 = vld [vmem:[%s10057_s5 + $0x210] sm:$0xff]  ;;  %v7736_v16 = vld [vmem:[%s10057_s5 + $0x208] sm:$0xff] }
 0x520   : > { %v3888_v47 = vrot.slane %v3887_v5, 1  ;;  %v3904_v19 = vrot.slane %v3903_v39, 1  ;;  %v3916_v4 = vrot.slane %v3915_v20, 1  ;;  %v3841_v8 = vpop.f32.mrf.mxu1  ;;  %5273 = vmatpush.bf16.msra.mxu1 %v7747_v31 }
 0x521   : > { %v3928_v32 = vrot.slane %v3927_v59, 1  ;;  %v3855_v50 = vadd.f32 %v3841_v8, %v3741_v2 }
 0x522   : > { %v3889_v0 = vmax.f32 %v3887_v5, %v3888_v47  ;;  %v3905_v25 = vmax.f32 %v3903_v39, %v3904_v19  ;;  %v3917_v26 = vmax.f32 %v3915_v20, %v3916_v4  ;;  %v3732_v47 = vpop.f32.mrf.mxu3 }
 0x523   : > { %v3929_v6 = vmax.f32 %v3927_v59, %v3928_v32  ;;  %v3867_v46 = vadd.f32 %v9548_v9, %v3855_v50  ;;  %v3743_v35 = vadd.f32 %v3732_v47, %v3629_v17  ;;  %5261 = vmatpush.bf16.msra.mxu0 %v7738_v12 }
 0x524   : > { %v3890_v45 = vmax.f32 %v3889_v0, 0.0  ;;  %v3906_v11 = vmax.f32 %v3905_v25, 0.0  ;;  %v3918_v29 = vmax.f32 %v3917_v26, 0.0  ;;  %v3933_v62 = vld [vmem:[#allocation3 + $0x18] sm:$0x3]  ;;  %5274 = vmatpush.bf16.msra.mxu1 %v7746_v51 }
 0x525   : > { %v3930_v41 = vmax.f32 %v3929_v6, 0.0  ;;  %v3934_v27 = vmax.f32 %v3932_v33, %v3933_v62  ;;  %v3945_v56 = vld [vmem:[#allocation3 + $0x1a] sm:$0x3]  ;;  %v3957_v10 = vld [vmem:[#allocation3 + $0x1c] sm:$0x3]  ;;  %3875 = vst [vmem:[#allocation3 + $0x20] sm:$0xff] %v3867_v46 }
 0x526   : > { %3895 = vst.msk [vmem:[#allocation4] sm:$0x1] %vm9676_vm2, %v3890_v45  ;;  %v3946_v42 = vmax.f32 %v3944_v21, %v3945_v56  ;;  %v3958_v40 = vmax.f32 %v3956_v13, %v3957_v10  ;;  %v3969_v43 = vld [vmem:[#allocation3 + $0x1e] sm:$0x3]  ;;  %v3620_v0 = vpop.f32.mrf.mxu2 }
 0x527   : > { %3907 = vst.msk [vmem:[#allocation4 + $0x1] sm:$0x1] %vm9676_vm2, %v3906_v11  ;;  %v3935_v14 = vsel %vm3882_vm1, %v3934_v27, -inf  ;;  %v3970_v28 = vmax.f32 %v3968_v48, %v3969_v43  ;;  %v3630_v37 = vadd.f32 %v3620_v0, %v3516_v57  ;;  %5262 = vmatpush.bf16.msra.mxu0 %v7737_v23 }
 0x528   : > { %3919 = vst.msk [vmem:[#allocation4 + $0x2] sm:$0x1] %vm9676_vm2, %v3918_v29  ;;  %v3936_v49 = vrot.slane %v3935_v14, 4  ;;  %v3947_v55 = vsel %vm3882_vm1, %v3946_v42, -inf  ;;  %v3959_v53 = vsel %vm3882_vm1, %v3958_v40, -inf  ;;  %v3843_v18 = vpop.f32.mrf.mxu1 }
 0x529   : > { %3931 = vst.msk [vmem:[#allocation4 + $0x3] sm:$0x1] %vm9676_vm2, %v3930_v41  ;;  %v3948_v5 = vrot.slane %v3947_v55, 4  ;;  %v3960_v30 = vrot.slane %v3959_v53, 4  ;;  %v3971_v39 = vsel %vm3882_vm1, %v3970_v28, -inf  ;;  %v3856_v20 = vadd.f32 %v3843_v18, %v3742_v44  ;;  %v7745_v28 = vld [vmem:[%s10057_s5 + $0x250] sm:$0xff] }
 0x52a   : > { %v3937_v22 = vmax.f32 %v3935_v14, %v3936_v49  ;;  %v3972_v54 = vrot.slane %v3971_v39, 4  ;;  %v3734_v40 = vpop.f32.mrf.mxu3  ;;  %5275 = vmatpush.bf16.msra.mxu1 %v7745_v28 }
 0x52b   : > { %v3949_v2 = vmax.f32 %v3947_v55, %v3948_v5  ;;  %v3961_v59 = vmax.f32 %v3959_v53, %v3960_v30  ;;  %v3868_v63 = vadd.f32 %v9548_v9, %v3856_v20  ;;  %v3744_v1 = vadd.f32 %v3734_v40, %v3630_v37  ;;  %5263 = vmatpush.bf16.msra.mxu0 %v7736_v16 }
 0x52c   : > { %v3938_v19 = vrot.slane %v3937_v22, 2  ;;  %v3973_v4 = vmax.f32 %v3971_v39, %v3972_v54  ;;  %v3980_v29 = vld [vmem:[#allocation3 + $0x20] sm:$0x3]  ;;  %v3992_v41 = vld [vmem:[#allocation3 + $0x22] sm:$0x3] }
 0x52d   : > { %v3950_v8 = vrot.slane %v3949_v2, 2  ;;  %v3962_v61 = vrot.slane %v3961_v59, 2  ;;  %3876 = vst [vmem:[#allocation3 + $0x28] sm:$0xff] %v3868_v63  ;;  %v4004_v27 = vld [vmem:[#allocation3 + $0x24] sm:$0x3]  ;;  %v7744_v63 = vld [vmem:[%s10057_s5 + $0x248] sm:$0xff] }
 0x52e   : > { %v3939_v32 = vmax.f32 %v3937_v22, %v3938_v19  ;;  %v3974_v50 = vrot.slane %v3973_v4, 2  ;;  %v4016_v49 = vld [vmem:[#allocation3 + $0x26] sm:$0x3]  ;;  %5276 = vmatpush.bf16.msra.mxu1 %v7744_v63 }
 0x52f   : > { %v3951_v38 = vmax.f32 %v3949_v2, %v3950_v8  ;;  %v3963_v36 = vmax.f32 %v3961_v59, %v3962_v61  ;;  %v7735_v61 = vld [vmem:[%s10057_s5 + $0x200] sm:$0xff] }
 0x530   : > { %v3940_v25 = vrot.slane %v3939_v32, 1  ;;  %v3975_v26 = vmax.f32 %v3973_v4, %v3974_v50  ;;  %v3846_v7 = vpop.f32.mrf.mxu1  ;;  %5264 = vmatpush.bf16.msra.mxu0 %v7735_v61 }
 0x531   : > { %v3952_v6 = vrot.slane %v3951_v38, 1  ;;  %v3964_v33 = vrot.slane %v3963_v36, 1  ;;  %v3857_v46 = vadd.f32 %v3846_v7, %v3743_v35 }
 0x532   : > { %v3941_v21 = vmax.f32 %v3939_v32, %v3940_v25  ;;  %v3976_v13 = vrot.slane %v3975_v26, 1  ;;  %v7743_v32 = vld [vmem:[%s10057_s5 + $0x240] sm:$0xff] }
 0x533   : > { %v3953_v45 = vmax.f32 %v3951_v38, %v3952_v6  ;;  %v3965_v11 = vmax.f32 %v3963_v36, %v3964_v33  ;;  %v3869_v14 = vadd.f32 %v9548_v9, %v3857_v46  ;;  %5277 = vmatpush.bf16.msra.mxu1 %v7743_v32  ;;  %v7726_v33 = vld [vmem:[%s10057_s5 + $0x1b8] sm:$0xff]  ;;  %v7773_v32 = vld [vmem:[%s10057_s5 + $0x330] sm:$0xff] }
 0x534   : > { %v3942_v48 = vmax.f32 %v3941_v21, 0.0  ;;  %v3977_v62 = vmax.f32 %v3975_v26, %v3976_v13  ;;  %v3981_v58 = vld [vmem:[#allocation3 + $0x28] sm:$0x3]  ;;  %v3993_v42 = vld [vmem:[#allocation3 + $0x2a] sm:$0x3] }
 0x535   : > { %v3954_v56 = vmax.f32 %v3953_v45, 0.0  ;;  %v3966_v10 = vmax.f32 %v3965_v11, 0.0  ;;  %v3982_v52 = vmax.f32 %v3980_v29, %v3981_v58  ;;  %v3994_v60 = vmax.f32 %v3992_v41, %v3993_v42  ;;  %v4005_v44 = vld [vmem:[#allocation3 + $0x2c] sm:$0x3]  ;;  %v4017_v53 = vld [vmem:[#allocation3 + $0x2e] sm:$0x3] }
 0x536   : > { %3943 = vst.msk [vmem:[#allocation4 + $0x4] sm:$0x1] %vm9676_vm2, %v3942_v48  ;;  %v3978_v43 = vmax.f32 %v3977_v62, 0.0  ;;  %v4006_v55 = vmax.f32 %v4004_v27, %v4005_v44  ;;  %v4018_v30 = vmax.f32 %v4016_v49, %v4017_v53  ;;  %v7734_v44 = vld [vmem:[%s10057_s5 + $0x1f8] sm:$0xff] }
 0x537   : > { %3955 = vst.msk [vmem:[#allocation4 + $0x5] sm:$0x1] %vm9676_vm2, %v3954_v56  ;;  %v3983_v18 = vsel %vm3882_vm1, %v3982_v52, -inf  ;;  %v3995_v5 = vsel %vm3882_vm1, %v3994_v60, -inf  ;;  %v7774_v53 = vld [vmem:[%s10057_s5 + $0x338] sm:$0xff] }
 0x538   : > { %3967 = vst.msk [vmem:[#allocation4 + $0x6] sm:$0x1] %vm9676_vm2, %v3966_v10  ;;  %v3848_v39 = vpop.f32.mrf.mxu1  ;;  %v3984_v20 = vrot.slane %v3983_v18, 4  ;;  %v3996_v24 = vrot.slane %v3995_v5, 4  ;;  %v4007_v22 = vsel %vm3882_vm1, %v4006_v55, -inf  ;;  %v4019_v59 = vsel %vm3882_vm1, %v4018_v30, -inf }
 0x539   : > { %3979 = vst.msk [vmem:[#allocation4 + $0x7] sm:$0x1] %vm9676_vm2, %v3978_v43  ;;  %v3858_v54 = vadd.f32 %v3848_v39, %v3744_v1  ;;  %v4008_v2 = vrot.slane %v4007_v22, 4  ;;  %v4020_v19 = vrot.slane %v4019_v59, 4 }
 0x53a   : > { %3877 = vst [vmem:[#allocation3 + $0x30] sm:$0xff] %v3869_v14  ;;  %v3985_v17 = vmax.f32 %v3983_v18, %v3984_v20  ;;  %v3997_v47 = vmax.f32 %v3995_v5, %v3996_v24  ;;  %v7725_v14 = vld [vmem:[%s10057_s5 + $0x1b0] sm:$0xff] }
 0x53b   : > { %v3870_v4 = vadd.f32 %v9548_v9, %v3858_v54  ;;  %v4009_v8 = vmax.f32 %v4007_v22, %v4008_v2  ;;  %v4021_v31 = vmax.f32 %v4019_v59, %v4020_v19  ;;  %v7733_v59 = vld [vmem:[%s10057_s5 + $0x1f0] sm:$0xff]  ;;  %v7724_v19 = vld [vmem:[%s10057_s5 + $0x1a8] sm:$0xff] }
 0x53c   : > { %v3986_v50 = vrot.slane %v3985_v17, 2  ;;  %v3998_v3 = vrot.slane %v3997_v47, 2 }
 0x53d   : > { %3878 = vst [vmem:[#allocation3 + $0x38] sm:$0xff] %v3870_v4  ;;  %v4010_v34 = vrot.slane %v4009_v8, 2  ;;  %v4022_v35 = vrot.slane %v4021_v31, 2  ;;  %v7782_v4 = vld [vmem:[%s10057_s5 + $0x378] sm:$0xff] }
 0x53e   : > { %v3987_v38 = vmax.f32 %v3985_v17, %v3986_v50  ;;  %v3999_v36 = vmax.f32 %v3997_v47, %v3998_v3 }
 0x53f   : > { %v4011_v9 = vmax.f32 %v4009_v8, %v4010_v34  ;;  %v4023_v7 = vmax.f32 %v4021_v31, %v4022_v35 }
 0x540   : > { %v9758_v0 = vld [vmem:[#allocation4] sm:$0xff]  ;;  %v3988_v25 = vrot.slane %v3987_v38, 1  ;;  %v4000_v26 = vrot.slane %v3999_v36, 1 }
 0x541   : > { %v4012_v12 = vrot.slane %v4011_v9, 1  ;;  %v4028_v57 = vld [vmem:[#allocation3 + $0x30] sm:$0x3]  ;;  %v4080_v6 = vperm.slane %v9758_v0, 0  ;;  %v4024_v13 = vrot.slane %v4023_v7, 1  ;;  %v4081_v45 = vperm.slane %v9758_v0, 1 }
 0x542   : > { %v3989_v51 = vmax.f32 %v3987_v38, %v3988_v25  ;;  %v4001_v21 = vmax.f32 %v3999_v36, %v4000_v26  ;;  %v4040_v46 = vld [vmem:[#allocation3 + $0x32] sm:$0x3]  ;;  %v4052_v37 = vld [vmem:[#allocation3 + $0x34] sm:$0x3]  ;;  %v4064_v10 = vld [vmem:[#allocation3 + $0x36] sm:$0x3] }
 0x543   : > { %v4013_v11 = vmax.f32 %v4011_v9, %v4012_v12  ;;  %v4112_v41 = vpack.c.bf16 %v4080_v6, %v4080_v6  ;;  %v4025_v56 = vmax.f32 %v4023_v7, %v4024_v13  ;;  %v4113_v49 = vpack.c.bf16 %v4081_v45, %v4081_v45  ;;  %v7732_v38 = vld [vmem:[%s10057_s5 + $0x1e8] sm:$0xff]  ;;  %v7723_v25 = vld [vmem:[%s10057_s5 + $0x1a0] sm:$0xff]  ;;  %v7781_v26 = vld [vmem:[%s10057_s5 + $0x370] sm:$0xff] }
 0x544   : > { %v4029_v29 = vld [vmem:[#allocation3 + $0x38] sm:$0x3]  ;;  %v4041_v48 = vld [vmem:[#allocation3 + $0x3a] sm:$0x3]  ;;  %v4053_v62 = vld [vmem:[#allocation3 + $0x3c] sm:$0x3] }
 0x545   : > { %v3990_v27 = vmax.f32 %v3989_v51, 0.0  ;;  %v4002_v23 = vmax.f32 %v4001_v21, 0.0  ;;  %v4030_v58 = vmax.f32 %v4028_v57, %v4029_v29  ;;  %v4065_v42 = vld [vmem:[#allocation3 + $0x3e] sm:$0x3]  ;;  %v4014_v40 = vmax.f32 %v4013_v11, 0.0  ;;  %5161 = vmatmul.bf16.vlgmr.msra.gmra.mxu2 %v4112_v41  ;;  %5174 = vmatmul.bf16.vlgmr.msra.gmra.mxu3 %v4113_v49  ;;  %v7772_v57 = vld [vmem:[%s10057_s5 + $0x328] sm:$0xff] }
 0x546   : > { %v4042_v43 = vmax.f32 %v4040_v46, %v4041_v48  ;;  %v4054_v52 = vmax.f32 %v4052_v37, %v4053_v62  ;;  %v4066_v60 = vmax.f32 %v4064_v10, %v4065_v42  ;;  %v4026_v28 = vmax.f32 %v4025_v56, 0.0  ;;  %5231 = vmatpush.bf16.msra.mxu2 %v7726_v33  ;;  %5244 = vmatpush.bf16.msra.mxu3 %v7734_v44  ;;  %v7731_v13 = vld [vmem:[%s10057_s5 + $0x1e0] sm:$0xff]  ;;  %v7722_v29 = vld [vmem:[%s10057_s5 + $0x198] sm:$0xff]  ;;  %v7780_v48 = vld [vmem:[%s10057_s5 + $0x368] sm:$0xff] }
 0x547   : > { %3991 = vst.msk [vmem:[#allocation4 + $0x8] sm:$0x1] %vm9676_vm2, %v3990_v27  ;;  %v4031_v1 = vsel %vm3882_vm1, %v4030_v58, -inf  ;;  %v4084_v55 = vperm.slane %v9758_v0, 4  ;;  %v4085_v2 = vperm.slane %v9758_v0, 5  ;;  %v4082_v12 = vperm.slane %v9758_v0, 2 }
 0x548   : > { %4003 = vst.msk [vmem:[#allocation4 + $0x9] sm:$0x1] %vm9676_vm2, %v4002_v23  ;;  %v4032_v18 = vrot.slane %v4031_v1, 4  ;;  %v4043_v5 = vsel %vm3882_vm1, %v4042_v43, -inf  ;;  %v4055_v30 = vsel %vm3882_vm1, %v4054_v52, -inf  ;;  %v4067_v39 = vsel %vm3882_vm1, %v4066_v60, -inf }
 0x549   : > { %4015 = vst.msk [vmem:[#allocation4 + $0xa] sm:$0x1] %vm9676_vm2, %v4014_v40  ;;  %v4044_v20 = vrot.slane %v4043_v5, 4  ;;  %v4056_v24 = vrot.slane %v4055_v30, 4  ;;  %v4068_v22 = vrot.slane %v4067_v39, 4  ;;  %v4116_v54 = vpack.c.bf16 %v4084_v55, %v4084_v55  ;;  %v7771_v27 = vld [vmem:[%s10057_s5 + $0x320] sm:$0xff] }
 0x54a   : > { %4027 = vst.msk [vmem:[#allocation4 + $0xb] sm:$0x1] %vm9676_vm2, %v4026_v28  ;;  %v4033_v16 = vmax.f32 %v4031_v1, %v4032_v18  ;;  %5232 = vmatpush.bf16.msra.mxu2 %v7725_v14  ;;  %v4117_v61 = vpack.c.bf16 %v4085_v2, %v4085_v2  ;;  %5245 = vmatpush.bf16.msra.mxu3 %v7733_v59  ;;  %v4083_v11 = vperm.slane %v9758_v0, 3  ;;  %v7730_v58 = vld [vmem:[%s10057_s5 + $0x1d8] sm:$0xff]  ;;  %v7721_v40 = vld [vmem:[%s10057_s5 + $0x190] sm:$0xff]  ;;  %v7779_v43 = vld [vmem:[%s10057_s5 + $0x360] sm:$0xff] }
 0x54b   : > { %v4045_v63 = vmax.f32 %v4043_v5, %v4044_v20  ;;  %v4057_v17 = vmax.f32 %v4055_v30, %v4056_v24  ;;  %v4069_v47 = vmax.f32 %v4067_v39, %v4068_v22  ;;  %5213 = vmatmul.bf16.vlgmr.msrb.gmra.mxu0 %v4116_v54  ;;  %v4114_v41 = vpack.c.bf16 %v4082_v12, %v4082_v12  ;;  %v7770_v52 = vld [vmem:[%s10057_s5 + $0x318] sm:$0xff]  ;;  %v7729_v60 = vld [vmem:[%s10057_s5 + $0x1d0] sm:$0xff]  ;;  %v7720_v44 = vld [vmem:[%s10057_s5 + $0x188] sm:$0xff] }
 0x54c   : > { %v4034_v8 = vrot.slane %v4033_v16, 2  ;;  %5309 = vmatpush.bf16.msrb.mxu0 %v7774_v53  ;;  %5226 = vmatmul.bf16.vlgmr.msrb.gmra.mxu1 %v4117_v61  ;;  %v4115_v42 = vpack.c.bf16 %v4083_v11, %v4083_v11  ;;  %v7778_v14 = vld [vmem:[%s10057_s5 + $0x358] sm:$0xff]  ;;  %v7728_v28 = vld [vmem:[%s10057_s5 + $0x1c8] sm:$0xff]  ;;  %v7719_v1 = vld [vmem:[%s10057_s5 + $0x180] sm:$0xff]  ;;  %v4086_v53 = vperm.slane %v9758_v0, 6  ;;  %v4087_v22 = vperm.slane %v9758_v0, 7 }
 0x54d   : > { %v4046_v50 = vrot.slane %v4045_v63, 2  ;;  %v4058_v3 = vrot.slane %v4057_v17, 2  ;;  %v4070_v31 = vrot.slane %v4069_v47, 2  ;;  %5322 = vmatpush.bf16.msrb.mxu1 %v7782_v4  ;;  %v7777_v49 = vld [vmem:[%s10057_s5 + $0x350] sm:$0xff]  ;;  %v7758_v55 = vld [vmem:[%s10057_s5 + $0x2b8] sm:$0xff]  ;;  %v7768_v5 = vld [vmem:[%s10057_s5 + $0x308] sm:$0xff] }
 0x54e   : > { %v4035_v34 = vmax.f32 %v4033_v16, %v4034_v8  ;;  %5233 = vmatpush.bf16.msra.mxu2 %v7724_v19  ;;  %5246 = vmatpush.bf16.msra.mxu3 %v7732_v38  ;;  %v7727_v20 = vld [vmem:[%s10057_s5 + $0x1c0] sm:$0xff]  ;;  %v7766_v24 = vld [vmem:[%s10057_s5 + $0x2f8] sm:$0xff]  ;;  %v7776_v2 = vld [vmem:[%s10057_s5 + $0x348] sm:$0xff]  ;;  %v4118_v59 = vpack.c.bf16 %v4086_v53, %v4086_v53  ;;  %v4119_v0 = vpack.c.bf16 %v4087_v22, %v4087_v22 }
 0x54f   : > { %v4047_v36 = vmax.f32 %v4045_v63, %v4046_v50  ;;  %v4059_v35 = vmax.f32 %v4057_v17, %v4058_v3  ;;  %v4071_v9 = vmax.f32 %v4069_v47, %v4070_v31  ;;  %v7757_v63 = vld [vmem:[%s10057_s5 + $0x2b0] sm:$0xff]  ;;  %v7767_v17 = vld [vmem:[%s10057_s5 + $0x300] sm:$0xff]  ;;  %v7756_v4 = vld [vmem:[%s10057_s5 + $0x2a8] sm:$0xff] }
 0x550   : > { %v4036_v7 = vrot.slane %v4035_v34, 1  ;;  %5310 = vmatpush.bf16.msrb.mxu0 %v7773_v32  ;;  %v7765_v47 = vld [vmem:[%s10057_s5 + $0x2f0] sm:$0xff]  ;;  %v7775_v19 = vld [vmem:[%s10057_s5 + $0x340] sm:$0xff]  ;;  %v7764_v8 = vld [vmem:[%s10057_s5 + $0x2e8] sm:$0xff] }
 0x551   : > { %v4048_v6 = vrot.slane %v4047_v36, 1  ;;  %v4060_v33 = vrot.slane %v4059_v35, 1  ;;  %v4072_v51 = vrot.slane %v4071_v9, 1  ;;  %5323 = vmatpush.bf16.msrb.mxu1 %v7781_v26  ;;  %v7755_v61 = vld [vmem:[%s10057_s5 + $0x2a0] sm:$0xff]  ;;  %v7754_v31 = vld [vmem:[%s10057_s5 + $0x298] sm:$0xff]  ;;  %v7760_v26 = vld [vmem:[%s10057_s5 + $0x2c8] sm:$0xff] }
 0x552   : > { %v4037_v21 = vmax.f32 %v4035_v34, %v4036_v7  ;;  %5234 = vmatpush.bf16.msra.mxu2 %v7723_v25  ;;  %5247 = vmatpush.bf16.msra.mxu3 %v7731_v13  ;;  %v7763_v32 = vld [vmem:[%s10057_s5 + $0x2e0] sm:$0xff]  ;;  %v7762_v34 = vld [vmem:[%s10057_s5 + $0x2d8] sm:$0xff]  ;;  %v7752_v25 = vld [vmem:[%s10057_s5 + $0x288] sm:$0xff] }
 0x553   : > { %v4049_v46 = vmax.f32 %v4047_v36, %v4048_v6  ;;  %v4061_v37 = vmax.f32 %v4059_v35, %v4060_v33  ;;  %v4073_v45 = vmax.f32 %v4071_v9, %v4072_v51  ;;  %v7753_v35 = vld [vmem:[%s10057_s5 + $0x290] sm:$0xff]  ;;  %v7751_v7 = vld [vmem:[%s10057_s5 + $0x280] sm:$0xff]  ;;  %v7790_v12 = vld [vmem:[%s10057_s5 + $0x3b8] sm:$0xff] }
 0x554   : > { %v4038_v62 = vmax.f32 %v4037_v21, 0.0  ;;  %5311 = vmatpush.bf16.msrb.mxu0 %v7772_v57  ;;  %v7761_v9 = vld [vmem:[%s10057_s5 + $0x2d0] sm:$0xff]  ;;  %v7759_v6 = vld [vmem:[%s10057_s5 + $0x2c0] sm:$0xff]  ;;  %v7798_v33 = vld [vmem:[%s10057_s5 + $0x3f8] sm:$0xff] }
 0x555   : > { %v4050_v23 = vmax.f32 %v4049_v46, 0.0  ;;  %v4062_v56 = vmax.f32 %v4061_v37, 0.0  ;;  %v4074_v10 = vmax.f32 %v4073_v45, 0.0  ;;  %5187 = vmatmul.bf16.vlgmr.msrb.gmra.mxu2 %v4114_v41  ;;  %5324 = vmatpush.bf16.msrb.mxu1 %v7780_v48  ;;  %v7789_v13 = vld [vmem:[%s10057_s5 + $0x3b0] sm:$0xff]  ;;  %v7788_v45 = vld [vmem:[%s10057_s5 + $0x3a8] sm:$0xff]  ;;  %v7795_v48 = vld [vmem:[%s10057_s5 + $0x3e0] sm:$0xff] }
 0x556   : > { %4039 = vst.msk [vmem:[#allocation4 + $0xc] sm:$0x1] %vm9676_vm2, %v4038_v62  ;;  %5235 = vmatpush.bf16.msra.mxu2 %v7722_v29  ;;  %5200 = vmatmul.bf16.vlgmr.msrb.gmra.mxu3 %v4115_v42  ;;  %v7797_v37 = vld [vmem:[%s10057_s5 + $0x3f0] sm:$0xff]  ;;  %v7796_v11 = vld [vmem:[%s10057_s5 + $0x3e8] sm:$0xff]  ;;  %v7787_v29 = vld [vmem:[%s10057_s5 + $0x3a0] sm:$0xff] }
 0x557   : > { %4051 = vst.msk [vmem:[#allocation4 + $0xd] sm:$0x1] %vm9676_vm2, %v4050_v23  ;;  %5248 = vmatpush.bf16.msra.mxu3 %v7730_v58  ;;  %v7786_v62 = vld [vmem:[%s10057_s5 + $0x398] sm:$0xff]  ;;  %v7793_v23 = vld [vmem:[%s10057_s5 + $0x3d0] sm:$0xff]  ;;  %v7783_v58 = vld [vmem:[%s10057_s5 + $0x380] sm:$0xff] }
 0x558   : > { %4063 = vst.msk [vmem:[#allocation4 + $0xe] sm:$0x1] %vm9676_vm2, %v4062_v56  ;;  %5312 = vmatpush.bf16.msrb.mxu0 %v7771_v27  ;;  %v7794_v41 = vld [vmem:[%s10057_s5 + $0x3d8] sm:$0xff]  ;;  %v7785_v27 = vld [vmem:[%s10057_s5 + $0x390] sm:$0xff]  ;;  %v7784_v56 = vld [vmem:[%s10057_s5 + $0x388] sm:$0xff] }
 0x559   : > { %4075 = vst.msk [vmem:[#allocation4 + $0xf] sm:$0x1] %vm9676_vm2, %v4074_v10  ;;  %5325 = vmatpush.bf16.msrb.mxu1 %v7779_v43  ;;  %v7792_v10 = vld [vmem:[%s10057_s5 + $0x3c8] sm:$0xff] }
 0x55a   : > { %5236 = vmatpush.bf16.msra.mxu2 %v7721_v40  ;;  %v7791_v40 = vld [vmem:[%s10057_s5 + $0x3c0] sm:$0xff] }
 0x55b   : > { %5249 = vmatpush.bf16.msra.mxu3 %v7729_v60 }
 0x55c   : > { %5313 = vmatpush.bf16.msrb.mxu0 %v7770_v52 }
 0x55d   : > { %5326 = vmatpush.bf16.msrb.mxu1 %v7778_v14 }
 0x55e   : > { %5237 = vmatpush.bf16.msra.mxu2 %v7720_v44 }
 0x55f   : > { %5250 = vmatpush.bf16.msra.mxu3 %v7728_v28 }
 0x560   : > { %v9871_v18 = vld [vmem:[#allocation4 + $0x8] sm:$0xff]  ;;  %5314 = vmatpush.bf16.msrb.mxu0 %v7769_v15 }
 0x561   : > { %v4088_v30 = vperm.slane %v9871_v18, 0  ;;  %v4089_v39 = vperm.slane %v9871_v18, 1  ;;  %5327 = vmatpush.bf16.msrb.mxu1 %v7777_v49  ;;  %v4092_v50 = vperm.slane %v9871_v18, 4  ;;  %v4093_v3 = vperm.slane %v9871_v18, 5  ;;  %v4384_v49 = vld [vmem:[%s10058_s6] sm:$0x1] }
 0x562   : > { %5238 = vmatpush.bf16.msra.mxu2 %v7719_v1  ;;  %v4090_v57 = vperm.slane %v9871_v18, 2  ;;  %v4091_v51 = vperm.slane %v9871_v18, 3  ;;  %v4094_v42 = vperm.slane %v9871_v18, 6  ;;  %v4095_v43 = vperm.slane %v9871_v18, 7 }
 0x563   : > { %v4120_v54 = vpack.c.bf16 %v4088_v30, %v4088_v30  ;;  %v4121_v16 = vpack.c.bf16 %v4089_v39, %v4089_v39  ;;  %5251 = vmatpush.bf16.msra.mxu3 %v7727_v20  ;;  %v4124_v38 = vpack.c.bf16 %v4092_v50, %v4092_v50  ;;  %v4125_v36 = vpack.c.bf16 %v4093_v3, %v4093_v3 }
 0x564   : > { %5315 = vmatpush.bf16.msrb.mxu0 %v7768_v5  ;;  %v4122_v21 = vpack.c.bf16 %v4090_v57, %v4090_v57  ;;  %v4123_v46 = vpack.c.bf16 %v4091_v51, %v4091_v51  ;;  %v4126_v52 = vpack.c.bf16 %v4094_v42, %v4094_v42  ;;  %v4127_v60 = vpack.c.bf16 %v4095_v43, %v4095_v43  ;;  %v7800_v57 = vld [vmem:[%s10059_s7 + $0x8] sm:$0xff]  ;;  %v5379_v42 = vld [vmem:[%s10060_s8] sm:$0x1] }
 0x565   : > { %5265 = vmatmul.bf16.vlgmr.msra.gmra.mxu0 %v4120_v54  ;;  %5278 = vmatmul.bf16.vlgmr.msra.gmra.mxu1 %v4121_v16 }
 0x566   : > { %5283 = vmatpush.bf16.msrb.mxu2 %v7758_v55  ;;  %5328 = vmatpush.bf16.msrb.mxu1 %v7776_v2 }
 0x567   : > { %5239 = vmatmul.bf16.vlgmr.msra.gmra.mxu2 %v4118_v59  ;;  %5296 = vmatpush.bf16.msrb.mxu3 %v7766_v24 }
 0x568   : > { %5316 = vmatpush.bf16.msrb.mxu0 %v7767_v17  ;;  %5252 = vmatmul.bf16.vlgmr.msra.gmra.mxu3 %v4119_v0 }
 0x56a   : > { %5284 = vmatpush.bf16.msrb.mxu2 %v7757_v63  ;;  %5329 = vmatpush.bf16.msrb.mxu1 %v7775_v19 }
 0x56b   : > { %5297 = vmatpush.bf16.msrb.mxu3 %v7765_v47 }
 0x56e   : > { %5285 = vmatpush.bf16.msrb.mxu2 %v7756_v4 }
 0x56f   : > { %5298 = vmatpush.bf16.msrb.mxu3 %v7764_v8  ;;  %v7806_v8 = vld [vmem:[%s10059_s7 + $0x38] sm:$0xff] }
 0x570   : > { %5428 = vmatpush.bf16.msra.mxu0 %v7806_v8 }
 0x572   : > { %5286 = vmatpush.bf16.msrb.mxu2 %v7755_v61 }
 0x573   : > { %5299 = vmatpush.bf16.msrb.mxu3 %v7763_v32  ;;  %v7805_v32 = vld [vmem:[%s10059_s7 + $0x30] sm:$0xff] }
 0x574   : > { %5429 = vmatpush.bf16.msra.mxu0 %v7805_v32 }
 0x575   : > { %5317 = vmatmul.bf16.vlgmr.msrb.gmra.mxu0 %v4124_v38  ;;  %5330 = vmatmul.bf16.vlgmr.msrb.gmra.mxu1 %v4125_v36  ;;  %v7803_v38 = vld [vmem:[%s10059_s7 + $0x20] sm:$0xff] }
 0x576   : > { %5287 = vmatpush.bf16.msrb.mxu2 %v7754_v31  ;;  %v7804_v31 = vld [vmem:[%s10059_s7 + $0x28] sm:$0xff] }
 0x577   : > { %5300 = vmatpush.bf16.msrb.mxu3 %v7762_v34 }
 0x578   : > { %5430 = vmatpush.bf16.msra.mxu0 %v7804_v31 }
 0x57a   : > { %5288 = vmatpush.bf16.msrb.mxu2 %v7753_v35 }
 0x57b   : > { %5301 = vmatpush.bf16.msrb.mxu3 %v7761_v9  ;;  %v7802_v9 = vld [vmem:[%s10059_s7 + $0x18] sm:$0xff] }
 0x57c   : > { %5431 = vmatpush.bf16.msra.mxu0 %v7803_v38 }
 0x57e   : > { %5289 = vmatpush.bf16.msrb.mxu2 %v7752_v25  ;;  %v7801_v25 = vld [vmem:[%s10059_s7 + $0x10] sm:$0xff] }
 0x57f   : > { %5302 = vmatpush.bf16.msrb.mxu3 %v7760_v26 }
 0x580   : > { %5432 = vmatpush.bf16.msra.mxu0 %v7802_v9 }
 0x582   : > { %5290 = vmatpush.bf16.msrb.mxu2 %v7751_v7 }
 0x583   : > { %5303 = vmatpush.bf16.msrb.mxu3 %v7759_v6 }
 0x584   : > { %5433 = vmatpush.bf16.msra.mxu0 %v7801_v25 }
 0x585   : > { %5291 = vmatmul.bf16.vlgmr.msrb.gmra.mxu2 %v4122_v21 }
 0x586   : > { %5335 = vmatpush.bf16.msra.mxu2 %v7790_v12  ;;  %5304 = vmatmul.bf16.vlgmr.msrb.gmra.mxu3 %v4123_v46 }
 0x587   : > { %5348 = vmatpush.bf16.msra.mxu3 %v7798_v33  ;;  %v7799_v33 = vld [vmem:[%s10059_s7] sm:$0xff] }
 0x588   : > { %5434 = vmatpush.bf16.msra.mxu0 %v7800_v57 }
 0x58a   : > { %5336 = vmatpush.bf16.msra.mxu2 %v7789_v13 }
 0x58b   : > { %5349 = vmatpush.bf16.msra.mxu3 %v7797_v37 }
 0x58c   : > { %5435 = vmatpush.bf16.msra.mxu0 %v7799_v33 }
 0x58e   : > { %5337 = vmatpush.bf16.msra.mxu2 %v7788_v45 }
 0x58f   : > { %5350 = vmatpush.bf16.msra.mxu3 %v7796_v11 }
 0x592   : > { %5338 = vmatpush.bf16.msra.mxu2 %v7787_v29 }
 0x593   : > { %5351 = vmatpush.bf16.msra.mxu3 %v7795_v48 }
 0x596   : > { %5339 = vmatpush.bf16.msra.mxu2 %v7786_v62 }
 0x597   : > { %5352 = vmatpush.bf16.msra.mxu3 %v7794_v41 }
 0x59a   : > { %5340 = vmatpush.bf16.msra.mxu2 %v7785_v27 }
 0x59b   : > { %5353 = vmatpush.bf16.msra.mxu3 %v7793_v23 }
 0x59e   : > { %5341 = vmatpush.bf16.msra.mxu2 %v7784_v56 }
 0x59f   : > { %5354 = vmatpush.bf16.msra.mxu3 %v7792_v10 }
 0x5a2   : > { %5342 = vmatpush.bf16.msra.mxu2 %v7783_v58 }
 0x5a3   : > { %5355 = vmatpush.bf16.msra.mxu3 %v7791_v40 }
 0x5a5   : > { %5343 = vmatmul.bf16.vlgmr.msra.gmra.mxu2 %v4126_v52 }
 0x5a6   : > { %5356 = vmatmul.bf16.vlgmr.msra.gmra.mxu3 %v4127_v60 }
 0x5c8   : > { %v5214_v44 = vpop.f32.mrf.mxu0  ;;  %v5162_v14 = vpop.f32.mrf.mxu2 }
 0x5c9   : > { %v5227_v15 = vpop.f32.mrf.mxu1  ;;  %v5175_v28 = vpop.f32.mrf.mxu3  ;;  %v5163_v5 = vadd.f32 %v5162_v14, %v4384_v49 }
 0x5cb   : > { %v5176_v39 = vadd.f32 %v5175_v28, %v5163_v5 }
 0x5d0   : > { %v5216_v1 = vpop.f32.mrf.mxu0  ;;  %v5164_v55 = vpop.f32.mrf.mxu2 }
 0x5d1   : > { %v5229_v53 = vpop.f32.mrf.mxu1  ;;  %v5177_v30 = vpop.f32.mrf.mxu3 }
 0x5d8   : > { %v5188_v18 = vpop.f32.mrf.mxu2 }
 0x5d9   : > { %v5189_v20 = vadd.f32 %v5188_v18, %v5176_v39  ;;  %v5201_v24 = vpop.f32.mrf.mxu3 }
 0x5db   : > { %v5202_v22 = vadd.f32 %v5201_v24, %v5189_v20 }
 0x5dd   : > { %v5215_v54 = vadd.f32 %v5214_v44, %v5202_v22 }
 0x5df   : > { %v5228_v2 = vadd.f32 %v5227_v15, %v5215_v54 }
 0x5e0   : > { %v5190_v16 = vpop.f32.mrf.mxu2 }
 0x5e1   : > { %v5203_v17 = vpop.f32.mrf.mxu3 }
 0x5e2   : > { %v5266_v59 = vpop.f32.mrf.mxu0  ;;  %v5279_v63 = vpop.f32.mrf.mxu1 }
 0x5ea   : > { %v5240_v0 = vpop.f32.mrf.mxu2  ;;  %v5268_v47 = vpop.f32.mrf.mxu0 }
 0x5eb   : > { %v5281_v19 = vpop.f32.mrf.mxu1  ;;  %v5253_v4 = vpop.f32.mrf.mxu3  ;;  %v5241_v7 = vadd.f32 %v5240_v0, %v5228_v2 }
 0x5ed   : > { %v5254_v6 = vadd.f32 %v5253_v4, %v5241_v7 }
 0x5ef   : > { %v5267_v21 = vadd.f32 %v5266_v59, %v5254_v6 }
 0x5f1   : > { %v5280_v46 = vadd.f32 %v5279_v63, %v5267_v21 }
 0x5f2   : > { %v5242_v61 = vpop.f32.mrf.mxu2  ;;  %v5318_v50 = vpop.f32.mrf.mxu0 }
 0x5f3   : > { %v5331_v3 = vpop.f32.mrf.mxu1  ;;  %v5255_v34 = vpop.f32.mrf.mxu3 }
 0x5fa   : > { %v5320_v36 = vpop.f32.mrf.mxu0 }
 0x5fb   : > { %v5333_v35 = vpop.f32.mrf.mxu1 }
 0x608   : > { %v5292_v26 = vpop.f32.mrf.mxu2 }
 0x609   : > { %v5305_v12 = vpop.f32.mrf.mxu3  ;;  %v5293_v37 = vadd.f32 %v5292_v26, %v5280_v46 }
 0x60b   : > { %v5306_v45 = vadd.f32 %v5305_v12, %v5293_v37 }
 0x60d   : > { %v5319_v11 = vadd.f32 %v5318_v50, %v5306_v45 }
 0x60f   : > { %v5332_v29 = vadd.f32 %v5331_v3, %v5319_v11 }
 0x610   : > { %v5294_v51 = vpop.f32.mrf.mxu2 }
 0x611   : > { %v5307_v13 = vpop.f32.mrf.mxu3 }
 0x628   : > { %v5344_v48 = vpop.f32.mrf.mxu2 }
 0x629   : > { %v5345_v62 = vadd.f32 %v5344_v48, %v5332_v29  ;;  %v5357_v41 = vpop.f32.mrf.mxu3 }
 0x62b   : > { %v5358_v27 = vadd.f32 %v5357_v41, %v5345_v62 }
 0x62d   : > { %v5361_v23 = vmax.f32 %v5358_v27, 0.0 }
 0x62f   : > { %v5362_v56 = vpack.c.bf16 %v5361_v23, %v5361_v23 }
 0x630   : > { %v5346_v10 = vpop.f32.mrf.mxu2 }
 0x631   : > { %5436 = vmatmul.bf16.vlgmr.msra.gmra.mxu0 %v5362_v56  ;;  %v5359_v58 = vpop.f32.mrf.mxu3 }
 0x6ae   : > { %v5437_v40 = vpop.f32.mrf.mxu0 }
 0x6af   : > { %v5438_v43 = vadd.f32 %v5437_v40, %v5379_v42 }
 0x6b1   : > { %5441 = vst [vmem:[%s324_s29] sm:$0x1] %v5438_v43 }
 0x6b2   : > { %7880 = shalt.err (!%p7877_p3)
}
 0x6b3   : > { %7808 = dma.vmem_to_hbm [thread:$0]  (%p8005_p5), %s5454_s22, 16, %s5456_s23, %s5443_s24  }
 0x6b6   : > { %v5439_v52 = vpop.f32.mrf.mxu0 }
 0x6b7 PF: > { %p7814_p4 = scmp.ge.s32.totalorder %s7915_s12, 2  ;;  %s5467_s27 = sand.u32 1, %s7903_s30  }
 0x6b8   : > { %s5468_s16 = scalar_lea.sflag [#allocation6], %s5467_s27 }
 0x6b9   : > { %p7811_p7 = pnand %p7814_p4, %p8009_p6 }
 0x6bb   : > { %p7812_p8 = pneg %p7811_p7 }
 0x6bd   : > { %7898 = dma.done.wait (%p7812_p8), %s5468_s16, 16  }
 0x6be   : > { %7900 = vsyncadd (%p7812_p8), %s5468_s16, 4294967280  ;;  %p19_p9 = scmp.ge.s32.totalorder %s7992_s15, 4   ;;  %s10090_s30 = smov %s7907_s10 }
 0x6bf   : > { %s10091_s10 = smov %s7911_s11  ;;  %s10092_s11 = smov %s8003_s18 }
 0x6c0   : > { %s10093_s12 = smov %s7992_s15  ;;  %21 = sbr.rel (!%p19_p9) target bundleno = 3 (0x3), region = 126 }
 0x6c5   :  { %5473 = vsyncpa [#allocation6], 1 }
 0x6c6   :  { %5475 = vsyncpa [#allocation6 + $0x1], 1 }

</bundles_post_ra>
